<compile_context>
chip_gen: v5e
topology: v5e:2x2
jax: 0.10.0
libtpu: 0.0.40
codegen_flags: <defaults>
</compile_context>

<pallas_src>
import jax
import jax.numpy as jnp
from jax.experimental import pallas as pl
from jax.experimental.pallas import tpu as pltpu


# ---------------------------------------------------------------------------
# Kernel 1: fused conv1 + ReLU + conv2 + ReLU (as two matmuls), one image/step.
# ---------------------------------------------------------------------------
def _conv_block_kernel(xt_ref, g1_ref, b1_ref, w2_ref, b2_ref, o_ref):
    h = jnp.dot(xt_ref[...], g1_ref[...], preferred_element_type=jnp.float32)
    h = jnp.maximum(h + b1_ref[...], 0.0).astype(w2_ref.dtype)      # ReLU, cast for MXU
    y = jnp.dot(h, w2_ref[...], preferred_element_type=jnp.float32)
    o_ref[...] = jnp.maximum(y + b2_ref[...], 0.0).astype(o_ref.dtype)


def conv_stage(xtaps, g1, b1t, w2s, b2):
    """xtaps: (N*144, 128) bf16 -> (N*144, 64) bf16 conv2 activations (HWC rows)."""
    m, ka = xtaps.shape
    n = m // 144
    na = g1.shape[1]            # 1152
    nb = w2s.shape[1]           # 64
    return pl.pallas_call(
        _conv_block_kernel,
        out_shape=jax.ShapeDtypeStruct((m, nb), jnp.bfloat16),
        grid=(n,),
        in_specs=[
            pl.BlockSpec((144, ka), lambda i: (i, 0)),   # per-image tap block
            pl.BlockSpec((ka, na), lambda i: (0, 0)),    # weights resident across grid
            pl.BlockSpec((1, na), lambda i: (0, 0)),
            pl.BlockSpec((na, nb), lambda i: (0, 0)),
            pl.BlockSpec((1, nb), lambda i: (0, 0)),
        ],
        out_specs=pl.BlockSpec((144, nb), lambda i: (i, 0)),
        compiler_params=pltpu.CompilerParams(dimension_semantics=("parallel",)),
    )(xtaps, g1, b1t, w2s, b2)
    # TODO(synk): for very large batches, process several images per grid step to
    # amortize per-step overhead further.


# ---------------------------------------------------------------------------
# Kernel 2: fused fc1 + ReLU + fc2 (fc2 lane-padded to 128 output columns).
# ---------------------------------------------------------------------------
def _fc_block_kernel(x_ref, w1_ref, b1_ref, w2_ref, b2_ref, o_ref):
    h = jnp.dot(x_ref[...], w1_ref[...], preferred_element_type=jnp.float32)
    h = jnp.maximum(h + b1_ref[...], 0.0).astype(w2_ref.dtype)      # ReLU, cast for MXU
    y = jnp.dot(h, w2_ref[...], preferred_element_type=jnp.float32)
    o_ref[...] = (y + b2_ref[...]).astype(o_ref.dtype)


def fc_stage(x, fw1, fb1, fw2p, fb2p):
    """x: (N, 9216) bf16 -> (N, 128) f32 (real logits in columns [:10])."""
    n, k = x.shape
    na = fw1.shape[1]           # 128
    nb = fw2p.shape[1]          # 128 (padded; lane-dense output store)
    return pl.pallas_call(
        _fc_block_kernel,
        out_shape=jax.ShapeDtypeStruct((n, nb), jnp.float32),
        grid=(1,),
        in_specs=[
            pl.BlockSpec((n, k), lambda i: (0, 0)),
            pl.BlockSpec((k, na), lambda i: (0, 0)),
            pl.BlockSpec((1, na), lambda i: (0, 0)),
            pl.BlockSpec((na, nb), lambda i: (0, 0)),
            pl.BlockSpec((1, nb), lambda i: (0, 0)),
        ],
        out_specs=pl.BlockSpec((n, nb), lambda i: (0, 0)),
        compiler_params=pltpu.CompilerParams(dimension_semantics=("arbitrary",)),
    )(x, fw1, fb1, fw2p, fb2p)
    # TODO(synk): for large batches tile the batch dim into 8-row-aligned M blocks
    # and mark that grid axis "parallel".


# ---------------------------------------------------------------------------
# Parameters: PyTorch-style init, then a ONE-TIME prepack into kernel layout.
# ---------------------------------------------------------------------------
def init_params(key):
    def uinit(k, shape, fan_in):
        bound = 1.0 / jnp.sqrt(jnp.float32(fan_in))
        return jax.random.uniform(k, shape, jnp.float32, -bound, bound)

    ks = jax.random.split(key, 8)
    return {
        "conv1_w": uinit(ks[0], (128, 1, 3, 3), 1 * 3 * 3),
        "conv1_b": uinit(ks[1], (128,), 1 * 3 * 3),
        "conv2_w": uinit(ks[2], (64, 128, 3, 3), 128 * 3 * 3),
        "conv2_b": uinit(ks[3], (64,), 128 * 3 * 3),
        "fc1_w": uinit(ks[4], (128, 9216), 9216),   # (out, in), NCHW flatten order
        "fc1_b": uinit(ks[5], (128,), 9216),
        "fc2_w": uinit(ks[6], (10, 128), 128),
        "fc2_b": uinit(ks[7], (10,), 128),
    }


def prepack_params(p, compute_dtype=jnp.bfloat16):
    """Pack PyTorch-layout params into padded, MXU-friendly matrices (runs once)."""
    # Composed im2col weight G: xtaps column rc = R*5 + C holds x[n, 2*oh+R, 2*ow+C];
    # G[rc, t2*128 + c1] = conv1_w[c1, 0, i1, j1] with rc = (i1+i2)*5 + (j1+j2),
    # so xtaps @ G = conv1 pre-activation at every conv2 tap position.
    w1 = p["conv1_w"].reshape(128, 9)                      # [c1, i1*3 + j1]
    g = jnp.zeros((128, 9 * 128), jnp.float32)             # rc padded 25 -> 128
    for i2 in range(3):
        for j2 in range(3):
            k0 = (i2 * 3 + j2) * 128
            for i1 in range(3):
                for j1 in range(3):
                    rc = (i1 + i2) * 5 + (j1 + j2)
                    g = g.at[rc, k0:k0 + 128].set(w1[:, i1 * 3 + j1])

    # conv2 weight stacked along the (t2, c1) contraction axis: (1152, 64)
    w2s = p["conv2_w"].transpose(2, 3, 1, 0).reshape(9 * 128, 64)

    # fc1 weight permuted so the kernel's channels-last (h, w, c) flatten matches
    # PyTorch's NCHW x.view(-1, 9216):
    fw1 = (p["fc1_w"].reshape(128, 64, 12, 12)
           .transpose(2, 3, 1, 0).reshape(9216, 128))

    # fc2 padded to 128 output lanes (zeros beyond class 9) for unmasked stores.
    fw2p = jnp.zeros((128, 128), jnp.float32).at[:, :10].set(p["fc2_w"].T)
    fb2p = jnp.zeros((1, 128), jnp.float32).at[0, :10].set(p["fc2_b"])

    return {
        "g1": g.astype(compute_dtype),                                       # (128, 1152)
        "b1t": jnp.tile(p["conv1_b"].reshape(1, 128), (1, 9)).astype(jnp.float32),
        "w2s": w2s.astype(compute_dtype),                                    # (1152, 64)
        "b2": p["conv2_b"].reshape(1, 64).astype(jnp.float32),
        "fw1": fw1.astype(compute_dtype),                                    # (9216, 128)
        "fb1": p["fc1_b"].reshape(1, 128).astype(jnp.float32),
        "fw2p": fw2p.astype(compute_dtype),                                  # (128, 128)
        "fb2p": fb2p,                                                        # (1, 128)
    }


# ---------------------------------------------------------------------------
# Forward pass (mirrors classifier_c.forward at inference; dropout = identity).
# ---------------------------------------------------------------------------
def classifier_c_forward(packed, x):
    # x: (N, 1, 28, 28) float32 (NCHW, single input channel)
    n = x.shape[0]
    xs = x.reshape(n, 28, 28)

    # Stride-2 tap matrix of the raw input: column (R, C) = x[:, R::2, C::2] on the
    # 12x12 conv2 output grid, padded to 128 lanes so all matmuls are (8,128)-aligned.
    cols = [xs[:, r:r + 23:2, c:c + 23:2].reshape(n * 144)
            for r in range(5) for c in range(5)]
    xtaps = jnp.stack(cols, axis=1)                                    # (N*144, 25)
    xtaps = jnp.pad(xtaps, ((0, 0), (0, 128 - 25))).astype(jnp.bfloat16)

    # Fused conv1 + ReLU + conv2 + ReLU (dropout1 = identity at inference).
    act2 = conv_stage(xtaps, packed["g1"], packed["b1t"],
                      packed["w2s"], packed["b2"])                     # (N*144, 64)

    # torch x.view(-1, 9216): free row-major reshape; fc1 weight was pre-permuted
    # at init so the ordering matches PyTorch's NCHW flatten.
    act_flat = act2.reshape(n, 9216)

    # Fused fc1 + ReLU + fc2 (dropout2 = identity at inference); slice real logits.
    logits_pad = fc_stage(act_flat, packed["fw1"], packed["fb1"],
                          packed["fw2p"], packed["fb2p"])              # (N, 128)
    return logits_pad[:, :10]


if __name__ == "__main__":
    key = jax.random.PRNGKey(0)
    pkey, xkey = jax.random.split(key)
    params = init_params(pkey)
    packed = prepack_params(params)          # one-time weight packing (not in jit)

    # Spatial size 28x28 is dictated by fc1's in_features=9216; small batch = 2.
    x = jax.random.normal(xkey, (2, 1, 28, 28), jnp.float32)

    fwd = jax.jit(classifier_c_forward)
    out = jax.block_until_ready(fwd(packed, x))

    assert out.shape == (2, 10), out.shape
    assert out.dtype == jnp.float32, out.dtype
    assert bool(jnp.all(jnp.isfinite(out)))
    print("KERNEL_OK")
</pallas_src>

<mosaic_0001>
module attributes {stable_mosaic.version = 11 : i64} {
  func.func @_conv_block_kernel(%arg0: i32, %arg1: memref<144x128xbf16, #tpu.memory_space<vmem>>, %arg2: memref<128x1152xbf16, #tpu.memory_space<vmem>>, %arg3: memref<1x1152xf32, #tpu.memory_space<vmem>>, %arg4: memref<1152x64xbf16, #tpu.memory_space<vmem>>, %arg5: memref<1x64xf32, #tpu.memory_space<vmem>>, %arg6: memref<144x64xbf16, #tpu.memory_space<vmem>>) attributes {dimension_semantics = [#tpu.dimension_semantics<parallel>], iteration_bounds = array<i64: 2>, scalar_prefetch = 0 : i64, scratch_operands = 0 : i64, tpu.core_type = #tpu.core_type<tc>, window_params = [{transform_indices = @transform_0, window_bounds = array<i64: 144, 128>}, {pipeline_mode = #tpu.pipeline_mode<synchronous>, transform_indices = @transform_1, window_bounds = array<i64: 128, 1152>}, {pipeline_mode = #tpu.pipeline_mode<synchronous>, transform_indices = @transform_2, window_bounds = array<i64: 1, 1152>}, {pipeline_mode = #tpu.pipeline_mode<synchronous>, transform_indices = @transform_3, window_bounds = array<i64: 1152, 64>}, {pipeline_mode = #tpu.pipeline_mode<synchronous>, transform_indices = @transform_4, window_bounds = array<i64: 1, 64>}, {transform_indices = @transform_5, window_bounds = array<i64: 144, 64>}]} {
    %c0 = arith.constant 0 : index
    %c0_0 = arith.constant 0 : index
    %0 = vector.load %arg1[%c0, %c0_0] : memref<144x128xbf16, #tpu.memory_space<vmem>>, vector<144x128xbf16>
    %c0_1 = arith.constant 0 : index
    %c0_2 = arith.constant 0 : index
    %1 = vector.load %arg2[%c0_1, %c0_2] : memref<128x1152xbf16, #tpu.memory_space<vmem>>, vector<128x1152xbf16>
    %cst = arith.constant dense<0.000000e+00> : vector<144x1152xf32>
    %2 = tpu.matmul %0, %1, %cst {dimension_numbers = #tpu.dot_dimension_numbers<[1], [0], [0], [1], [0, 0, 1, 1], [], []>} : vector<144x128xbf16>, vector<128x1152xbf16>, vector<144x1152xf32> -> vector<144x1152xf32>
    %c0_3 = arith.constant 0 : index
    %c0_4 = arith.constant 0 : index
    %3 = vector.load %arg3[%c0_3, %c0_4] : memref<1x1152xf32, #tpu.memory_space<vmem>>, vector<1x1152xf32>
    %4 = vector.broadcast %3 : vector<1x1152xf32> to vector<144x1152xf32>
    %5 = arith.addf %2, %4 : vector<144x1152xf32>
    %cst_5 = arith.constant 0.000000e+00 : f32
    %6 = vector.broadcast %cst_5 : f32 to vector<144x1152xf32>
    %7 = arith.maximumf %5, %6 : vector<144x1152xf32>
    %8 = arith.truncf %7 : vector<144x1152xf32> to vector<144x1152xbf16>
    %c0_6 = arith.constant 0 : index
    %c0_7 = arith.constant 0 : index
    %9 = vector.load %arg4[%c0_6, %c0_7] : memref<1152x64xbf16, #tpu.memory_space<vmem>>, vector<1152x64xbf16>
    %cst_8 = arith.constant dense<0.000000e+00> : vector<144x64xf32>
    %10 = tpu.matmul %8, %9, %cst_8 {dimension_numbers = #tpu.dot_dimension_numbers<[1], [0], [0], [1], [0, 0, 1, 1], [], []>} : vector<144x1152xbf16>, vector<1152x64xbf16>, vector<144x64xf32> -> vector<144x64xf32>
    %c0_9 = arith.constant 0 : index
    %c0_10 = arith.constant 0 : index
    %11 = vector.load %arg5[%c0_9, %c0_10] : memref<1x64xf32, #tpu.memory_space<vmem>>, vector<1x64xf32>
    %12 = vector.broadcast %11 : vector<1x64xf32> to vector<144x64xf32>
    %13 = arith.addf %10, %12 : vector<144x64xf32>
    %cst_11 = arith.constant 0.000000e+00 : f32
    %14 = vector.broadcast %cst_11 : f32 to vector<144x64xf32>
    %15 = arith.maximumf %13, %14 : vector<144x64xf32>
    %16 = arith.truncf %15 : vector<144x64xf32> to vector<144x64xbf16>
    %c0_12 = arith.constant 0 : index
    %c0_13 = arith.constant 0 : index
    %17 = vector.load %arg6[%c0_12, %c0_13] : memref<144x64xbf16, #tpu.memory_space<vmem>>, vector<144x64xbf16>
    tpu.vector_store %arg6[%c0_12, %c0_13], %16 {strides = array<i32>} : memref<144x64xbf16, #tpu.memory_space<vmem>>, vector<144x64xbf16>,
    return
  }
  func.func @transform_0(%arg0: i32) -> (i32, i32) {
    %c0_i32 = arith.constant 0 : i32
    %c0_i32_0 = arith.constant 0 : i32
    return %arg0, %c0_i32 : i32, i32
  }
  func.func @transform_1(%arg0: i32) -> (i32, i32) {
    %c0_i32 = arith.constant 0 : i32
    %c0_i32_0 = arith.constant 0 : i32
    %c0_i32_1 = arith.constant 0 : i32
    return %c0_i32, %c0_i32_0 : i32, i32
  }
  func.func @transform_2(%arg0: i32) -> (i32, i32) {
    %c0_i32 = arith.constant 0 : i32
    %c0_i32_0 = arith.constant 0 : i32
    %c0_i32_1 = arith.constant 0 : i32
    return %c0_i32, %c0_i32_0 : i32, i32
  }
  func.func @transform_3(%arg0: i32) -> (i32, i32) {
    %c0_i32 = arith.constant 0 : i32
    %c0_i32_0 = arith.constant 0 : i32
    %c0_i32_1 = arith.constant 0 : i32
    return %c0_i32, %c0_i32_0 : i32, i32
  }
  func.func @transform_4(%arg0: i32) -> (i32, i32) {
    %c0_i32 = arith.constant 0 : i32
    %c0_i32_0 = arith.constant 0 : i32
    %c0_i32_1 = arith.constant 0 : i32
    return %c0_i32, %c0_i32_0 : i32, i32
  }
  func.func @transform_5(%arg0: i32) -> (i32, i32) {
    %c0_i32 = arith.constant 0 : i32
    %c0_i32_0 = arith.constant 0 : i32
    return %arg0, %c0_i32 : i32, i32
  }
}

module attributes {stable_mosaic.version = 11 : i64} {
  func.func @_fc_block_kernel(%arg0: i32, %arg1: memref<2x9216xbf16, #tpu.memory_space<vmem>>, %arg2: memref<9216x128xbf16, #tpu.memory_space<vmem>>, %arg3: memref<1x128xf32, #tpu.memory_space<vmem>>, %arg4: memref<128x128xbf16, #tpu.memory_space<vmem>>, %arg5: memref<1x128xf32, #tpu.memory_space<vmem>>, %arg6: memref<2x128xf32, #tpu.memory_space<vmem>>) attributes {dimension_semantics = [#tpu.dimension_semantics<arbitrary>], iteration_bounds = array<i64: 1>, scalar_prefetch = 0 : i64, scratch_operands = 0 : i64, tpu.core_type = #tpu.core_type<tc>, window_params = [{pipeline_mode = #tpu.pipeline_mode<synchronous>, transform_indices = @transform_0, window_bounds = array<i64: 2, 9216>}, {pipeline_mode = #tpu.pipeline_mode<synchronous>, transform_indices = @transform_1, window_bounds = array<i64: 9216, 128>}, {pipeline_mode = #tpu.pipeline_mode<synchronous>, transform_indices = @transform_2, window_bounds = array<i64: 1, 128>}, {pipeline_mode = #tpu.pipeline_mode<synchronous>, transform_indices = @transform_3, window_bounds = array<i64: 128, 128>}, {pipeline_mode = #tpu.pipeline_mode<synchronous>, transform_indices = @transform_4, window_bounds = array<i64: 1, 128>}, {pipeline_mode = #tpu.pipeline_mode<synchronous>, transform_indices = @transform_5, window_bounds = array<i64: 2, 128>}]} {
    %c0 = arith.constant 0 : index
    %c0_0 = arith.constant 0 : index
    %0 = vector.load %arg1[%c0, %c0_0] : memref<2x9216xbf16, #tpu.memory_space<vmem>>, vector<2x9216xbf16>
    %c0_1 = arith.constant 0 : index
    %c0_2 = arith.constant 0 : index
    %1 = vector.load %arg2[%c0_1, %c0_2] : memref<9216x128xbf16, #tpu.memory_space<vmem>>, vector<9216x128xbf16>
    %cst = arith.constant dense<0.000000e+00> : vector<2x128xf32>
    %2 = tpu.matmul %0, %1, %cst {dimension_numbers = #tpu.dot_dimension_numbers<[1], [0], [0], [1], [0, 0, 1, 1], [], []>} : vector<2x9216xbf16>, vector<9216x128xbf16>, vector<2x128xf32> -> vector<2x128xf32>
    %c0_3 = arith.constant 0 : index
    %c0_4 = arith.constant 0 : index
    %3 = vector.load %arg3[%c0_3, %c0_4] : memref<1x128xf32, #tpu.memory_space<vmem>>, vector<1x128xf32>
    %4 = vector.broadcast %3 : vector<1x128xf32> to vector<2x128xf32>
    %5 = arith.addf %2, %4 : vector<2x128xf32>
    %cst_5 = arith.constant 0.000000e+00 : f32
    %6 = vector.broadcast %cst_5 : f32 to vector<2x128xf32>
    %7 = arith.maximumf %5, %6 : vector<2x128xf32>
    %8 = arith.truncf %7 : vector<2x128xf32> to vector<2x128xbf16>
    %c0_6 = arith.constant 0 : index
    %c0_7 = arith.constant 0 : index
    %9 = vector.load %arg4[%c0_6, %c0_7] : memref<128x128xbf16, #tpu.memory_space<vmem>>, vector<128x128xbf16>
    %cst_8 = arith.constant dense<0.000000e+00> : vector<2x128xf32>
    %10 = tpu.matmul %8, %9, %cst_8 {dimension_numbers = #tpu.dot_dimension_numbers<[1], [0], [0], [1], [0, 0, 1, 1], [], []>} : vector<2x128xbf16>, vector<128x128xbf16>, vector<2x128xf32> -> vector<2x128xf32>
    %c0_9 = arith.constant 0 : index
    %c0_10 = arith.constant 0 : index
    %11 = vector.load %arg5[%c0_9, %c0_10] : memref<1x128xf32, #tpu.memory_space<vmem>>, vector<1x128xf32>
    %12 = vector.broadcast %11 : vector<1x128xf32> to vector<2x128xf32>
    %13 = arith.addf %10, %12 : vector<2x128xf32>
    %c0_11 = arith.constant 0 : index
    %c0_12 = arith.constant 0 : index
    %14 = vector.load %arg6[%c0_11, %c0_12] : memref<2x128xf32, #tpu.memory_space<vmem>>, vector<2x128xf32>
    tpu.vector_store %arg6[%c0_11, %c0_12], %13 {strides = array<i32>} : memref<2x128xf32, #tpu.memory_space<vmem>>, vector<2x128xf32>,
    return
  }
  func.func @transform_0(%arg0: i32) -> (i32, i32) {
    %c0_i32 = arith.constant 0 : i32
    %c0_i32_0 = arith.constant 0 : i32
    %c0_i32_1 = arith.constant 0 : i32
    return %c0_i32, %c0_i32_0 : i32, i32
  }
  func.func @transform_1(%arg0: i32) -> (i32, i32) {
    %c0_i32 = arith.constant 0 : i32
    %c0_i32_0 = arith.constant 0 : i32
    %c0_i32_1 = arith.constant 0 : i32
    return %c0_i32, %c0_i32_0 : i32, i32
  }
  func.func @transform_2(%arg0: i32) -> (i32, i32) {
    %c0_i32 = arith.constant 0 : i32
    %c0_i32_0 = arith.constant 0 : i32
    %c0_i32_1 = arith.constant 0 : i32
    return %c0_i32, %c0_i32_0 : i32, i32
  }
  func.func @transform_3(%arg0: i32) -> (i32, i32) {
    %c0_i32 = arith.constant 0 : i32
    %c0_i32_0 = arith.constant 0 : i32
    %c0_i32_1 = arith.constant 0 : i32
    return %c0_i32, %c0_i32_0 : i32, i32
  }
  func.func @transform_4(%arg0: i32) -> (i32, i32) {
    %c0_i32 = arith.constant 0 : i32
    %c0_i32_0 = arith.constant 0 : i32
    %c0_i32_1 = arith.constant 0 : i32
    return %c0_i32, %c0_i32_0 : i32, i32
  }
  func.func @transform_5(%arg0: i32) -> (i32, i32) {
    %c0_i32 = arith.constant 0 : i32
    %c0_i32_0 = arith.constant 0 : i32
    %c0_i32_1 = arith.constant 0 : i32
    return %c0_i32, %c0_i32_0 : i32, i32
  }
}

</mosaic_0001>

<bundles_post_ra>
// kernel: classifier_c_forward.2
= control target key start
LH: loop header
LB: loop body
LE: loop exit
PB: predicated region body
PF: predicated region fallthrough
CT: control target
= control target key end

     0   :  { %10 = vsyncpa [#allocation3], 0  ;;  %s4712_s0 = inlined_call_operand.vmem [shape: bf16[288,128], index: 0, kind: input, shape index: {}]   ;;  %s4713_s1 = inlined_call_operand.hbm [shape: bf16[128,1152], index: 1, kind: input, shape index: {}]   ;;  %s4714_s2 = inlined_call_operand.hbm [shape: f32[1,1152], index: 2, kind: input, shape index: {}]   ;;  %s4715_s3 = inlined_call_operand.vmem [shape: bf16[1152,64], index: 3, kind: input, shape index: {}]   ;;  %s4716_s4 = inlined_call_operand.hbm [shape: f32[1,64], index: 4, kind: input, shape index: {}]   ;;  %s4717_s5 = inlined_call_operand.vmem [shape: bf16[288,64], index: 5, kind: output, shape index: {}]  }
   0x1   :  { %11 = vsyncpa [#allocation5], 0  ;;  %s3738_s18 = smov 0  }
   0x2 LB: > { %s184_s21 = sshll.u32 %s4714_s2, 4  ;;  %s2753_s22 = sadd.s32 4294967295, %s3701_s18   ;;  %s3701_s18 = sphi %s3738_s18, %s17_s18   ;;  %s185_s21 = int_to_ptr.hbm [resolvable:$true] %s184_s21 }
   0x3   : > { %p2755_p0 = scmp.ge.s32.totalorder %s3701_s18, 1  ;;  %p158_p1 = scmp.lt.s32.totalorder %s3701_s18, 3 }
   0x4   : > { %p3751_p2 = scmp.eq.s32.totalorder %s2753_s22, 0  ;;  %s3703_s25 = smov [#allocation4]  }
   0x5   : > { %p3755_p3 = pnand %p2755_p0, %p158_p1  ;;  %s186_s26 = sshll.u32 %s3703_s25, 4  ;;  %s187_s26 = int_to_ptr.vmem [resolvable:$true] %s186_s26 }
   0x6   : > { %s169_s29 = sshll.u32 %s4713_s1, 4  ;;  %s3704_s30 = smov [#allocation2]   ;;  %s170_s29 = int_to_ptr.hbm [resolvable:$true] %s169_s29 }
   0x7   : > { %p3561_p4 = pneg %p3755_p3  ;;  %s171_s6 = sshll.u32 %s3704_s30, 4  ;;  %s172_s6 = int_to_ptr.vmem [resolvable:$true] %s171_s6 }
   0x8   : > { %s199_s9 = sshll.u32 %s4716_s4, 4  ;;  %s3705_s10 = smov 576   ;;  %s200_s9 = int_to_ptr.hbm [resolvable:$true] %s199_s9 }
   0x9   : > { %p3562_p5 = pnand %p3751_p2, %p3561_p4  ;;  %s3706_s11 = smov 36  }
   0xa   : > { %s3707_s12 = smov [#allocation6]   ;;  %223 = sbr.rel (%p3755_p3) target bundleno = 835 (0x343), region = 40 }
   0xb   : > { %3567 = dma.hbm_to_vmem [thread:$0]  (!%p3562_p5), %s185_s21, 144, %s187_s26, [#allocation5]  }
   0xc   : > { %3564 = dma.hbm_to_vmem [thread:$0]  (!%p3562_p5), %s170_s29, 9216, %s172_s6, [#allocation3], %s3705_s10, %s3705_s10, %s3706_s11  }
   0xd   : > { %s201_s13 = sshll.u32 %s3707_s12, 4  ;;  %s202_s13 = int_to_ptr.vmem [resolvable:$true] %s201_s13 }
   0xe   : > { %3570 = dma.hbm_to_vmem [thread:$0]  (!%p3562_p5), %s200_s9, 16, %s202_s13, [#allocation5]  }
   0xf   : > { %3692 = dma.done.wait (%p3751_p2), [#allocation3], 9216  }
  0x10   : > { %3694 = vsyncadd (%p3751_p2), [#allocation3], 4294958080 }
  0x11   : > { %3696 = dma.done.wait (%p3751_p2), [#allocation5], 160  }
  0x12   : > { %3698 = vsyncadd (%p3751_p2), [#allocation5], 4294967136  ;;  %v3056_v0 = vld [vmem:[#allocation2 + $0x1f8] sm:$0xf]  ;;  %v3456_v1 = vld [vmem:[#allocation2 + $0x218] sm:$0xf0] }
  0x13   : > { %v3452_v2 = vld [vmem:[#allocation2 + $0x1fc] sm:$0xf]  ;;  %v3057_v3 = vor.u32 %v3456_v1, %v3056_v0  ;;  %v3058_v4 = vld [vmem:[#allocation2 + $0x21c] sm:$0xf0]  ;;  %v3020_v5 = vld [vmem:[#allocation2 + $0x1b0] sm:$0xf] }
  0x14   : > { %v3447_v6 = vld [vmem:[#allocation2 + $0x1d0] sm:$0xf0]  ;;  %v3061_v7 = vor.u32 %v3452_v2, %v3058_v4  ;;  %v3022_v9 = vld [vmem:[#allocation2 + $0x1d4] sm:$0xf0]  ;;  %v2984_v12 = vld [vmem:[#allocation2 + $0x168] sm:$0xf] }
  0x15   : > { %v3443_v8 = vld [vmem:[#allocation2 + $0x1b4] sm:$0xf]  ;;  %816 = vmatpush.bf16.msra.mxu0 %v3057_v3  ;;  %3533 = vmatpush.bf16.msra.mxu2 %v3057_v3  ;;  %v3021_v10 = vor.u32 %v3447_v6, %v3020_v5  ;;  %v3438_v13 = vld [vmem:[#allocation2 + $0x188] sm:$0xf0]  ;;  %v2986_v15 = vld [vmem:[#allocation2 + $0x18c] sm:$0xf0] }
  0x16   : > { %870 = vmatpush.bf16.msra.mxu1 %v3061_v7  ;;  %3541 = vmatpush.bf16.msra.mxu3 %v3061_v7  ;;  %v3025_v11 = vor.u32 %v3443_v8, %v3022_v9  ;;  %v3434_v14 = vld [vmem:[#allocation2 + $0x16c] sm:$0xf]  ;;  %v2985_v16 = vor.u32 %v3438_v13, %v2984_v12  ;;  %v2948_v18 = vld [vmem:[#allocation2 + $0x120] sm:$0xf]  ;;  %v3429_v19 = vld [vmem:[#allocation2 + $0x140] sm:$0xf0] }
  0x17   : > { %v2989_v17 = vor.u32 %v3434_v14, %v2986_v15  ;;  %v3425_v20 = vld [vmem:[#allocation2 + $0x124] sm:$0xf]  ;;  %v2950_v21 = vld [vmem:[#allocation2 + $0x144] sm:$0xf0]  ;;  %s262_s14 = smul.u32 18, %s2753_s22  ;;  %v2949_v22 = vor.u32 %v3429_v19, %v2948_v18  ;;  %vm2647_vm0 = vcmask 519168  }
  0x18   : > { %v2953_v23 = vor.u32 %v3425_v20, %v2950_v21  ;;  %v2912_v24 = vld [vmem:[#allocation2 + $0xd8] sm:$0xf]  ;;  %v3420_v25 = vld [vmem:[#allocation2 + $0xf8] sm:$0xf0]  ;;  %v2914_v27 = vld [vmem:[#allocation2 + $0xfc] sm:$0xf0] }
  0x19   : > { %817 = vmatpush.bf16.msra.mxu0 %v3021_v10  ;;  %3534 = vmatpush.bf16.msra.mxu2 %v3021_v10  ;;  %v3416_v26 = vld [vmem:[#allocation2 + $0xdc] sm:$0xf]  ;;  %p263_p6 = scmp.lt.s32.totalorder %s262_s14, 35  ;;  %v2913_v28 = vor.u32 %v3420_v25, %v2912_v24  ;;  %v2876_v29 = vld [vmem:[#allocation2 + $0x90] sm:$0xf] }
  0x1a   : > { %871 = vmatpush.bf16.msra.mxu1 %v3025_v11  ;;  %3542 = vmatpush.bf16.msra.mxu3 %v3025_v11  ;;  %v2917_v30 = vor.u32 %v3416_v26, %v2914_v27  ;;  %v3411_v31 = vld [vmem:[#allocation2 + $0xb0] sm:$0xf0]  ;;  %v2878_v33 = vld [vmem:[#allocation2 + $0xb4] sm:$0xf0]  ;;  %v2840_v36 = vld [vmem:[#allocation2 + $0x48] sm:$0xf] }
  0x1b   : > { %v3407_v32 = vld [vmem:[#allocation2 + $0x94] sm:$0xf]  ;;  %s4743_s14 = smov (!%p263_p6, %s262_s14), 35  ;;  %v2877_v34 = vor.u32 %v3411_v31, %v2876_v29  ;;  %v3402_v37 = vld [vmem:[#allocation2 + $0x68] sm:$0xf0] }
  0x1c   : > { %v2881_v35 = vor.u32 %v3407_v32, %v2878_v33  ;;  %v3398_v38 = vld [vmem:[#allocation2 + $0x4c] sm:$0xf]  ;;  %v2842_v39 = vld [vmem:[#allocation2 + $0x6c] sm:$0xf0]  ;;  %s2764_s15 = sshll.u32 %s4743_s14, 2  ;;  %v2841_v40 = vor.u32 %v3402_v37, %v2840_v36 }
  0x1d   : > { %818 = vmatpush.bf16.msra.mxu0 %v2985_v16  ;;  %3535 = vmatpush.bf16.msra.mxu2 %v2985_v16  ;;  %v2845_v41 = vor.u32 %v3398_v38, %v2842_v39  ;;  %v2804_v42 = vld [vmem:[#allocation2] sm:$0xf]  ;;  %v3393_v43 = vld [vmem:[#allocation2 + $0x20] sm:$0xf0]  ;;  %v2806_v45 = vld [vmem:[#allocation2 + $0x24] sm:$0xf0]  ;;  %s3789_s19 = scalar_lea.vmem %s4712_s0, %s2764_s15  ;;  %s4655_s12 = scalar_lea.vmem %s4717_s5, %s2764_s15 }
  0x1e   : > { %872 = vmatpush.bf16.msra.mxu1 %v2989_v17  ;;  %3543 = vmatpush.bf16.msra.mxu3 %v2989_v17  ;;  %v3389_v44 = vld [vmem:[#allocation2 + $0x4] sm:$0xf]  ;;  %v3072_v46 = vld [vmem:[#allocation2 + $0x208] sm:$0xf]  ;;  %v3458_v47 = vld [vmem:[#allocation2 + $0x228] sm:$0xf0]  ;;  %v2805_v50 = vor.u32 %v3393_v43, %v2804_v42 }
  0x1f   : > { %v3454_v48 = vld [vmem:[#allocation2 + $0x20c] sm:$0xf]  ;;  %v3074_v49 = vld [vmem:[#allocation2 + $0x22c] sm:$0xf0]  ;;  %v2809_v51 = vor.u32 %v3389_v44, %v2806_v45  ;;  %v3792_v52 = vld [vmem:[%s3789_s19] sm:$0xff]  ;;  %v3073_v56 = vor.u32 %v3458_v47, %v3072_v46 }
  0x20   : > { %v3795_v53 = vld [vmem:[%s3789_s19 + $0x28] sm:$0xff]  ;;  %v3064_v54 = vld [vmem:[#allocation2 + $0x200] sm:$0xf]  ;;  %v3457_v55 = vld [vmem:[#allocation2 + $0x220] sm:$0xf0]  ;;  %v3077_v57 = vor.u32 %v3454_v48, %v3074_v49 }
  0x21   : > { %819 = vmatpush.bf16.msra.mxu0 %v2949_v22  ;;  %3536 = vmatpush.bf16.msra.mxu2 %v2949_v22  ;;  %v3453_v58 = vld [vmem:[#allocation2 + $0x204] sm:$0xf]  ;;  %v3066_v59 = vld [vmem:[#allocation2 + $0x224] sm:$0xf0]  ;;  %v3036_v60 = vld [vmem:[#allocation2 + $0x1c0] sm:$0xf]  ;;  %v3065_v0 = vor.u32 %v3457_v55, %v3064_v54 }
  0x22   : > { %873 = vmatpush.bf16.msra.mxu1 %v2953_v23  ;;  %3544 = vmatpush.bf16.msra.mxu3 %v2953_v23  ;;  %v3449_v61 = vld [vmem:[#allocation2 + $0x1e0] sm:$0xf0]  ;;  %v3038_v63 = vld [vmem:[#allocation2 + $0x1e4] sm:$0xf0]  ;;  %v3069_v1 = vor.u32 %v3453_v58, %v3066_v59  ;;  %v3028_v2 = vld [vmem:[#allocation2 + $0x1b8] sm:$0xf] }
  0x23   : > { %v3445_v62 = vld [vmem:[#allocation2 + $0x1c4] sm:$0xf]  ;;  %v3448_v3 = vld [vmem:[#allocation2 + $0x1d8] sm:$0xf0]  ;;  %v3037_v4 = vor.u32 %v3449_v61, %v3036_v60  ;;  %v3030_v7 = vld [vmem:[#allocation2 + $0x1dc] sm:$0xf0] }
  0x24   : > { %v3041_v5 = vor.u32 %v3445_v62, %v3038_v63  ;;  %v3444_v6 = vld [vmem:[#allocation2 + $0x1bc] sm:$0xf]  ;;  %v3000_v8 = vld [vmem:[#allocation2 + $0x178] sm:$0xf]  ;;  %v3002_v11 = vld [vmem:[#allocation2 + $0x19c] sm:$0xf0]  ;;  %v3029_v12 = vor.u32 %v3448_v3, %v3028_v2 }
  0x25   : > { %820 = vmatpush.bf16.msra.mxu0 %v2913_v28  ;;  %3537 = vmatpush.bf16.msra.mxu2 %v2913_v28  ;;  %v3440_v9 = vld [vmem:[#allocation2 + $0x198] sm:$0xf0]  ;;  %v3033_v13 = vor.u32 %v3444_v6, %v3030_v7  ;;  %v2992_v14 = vld [vmem:[#allocation2 + $0x170] sm:$0xf]  ;;  %v3439_v15 = vld [vmem:[#allocation2 + $0x190] sm:$0xf0] }
  0x26   : > { %874 = vmatpush.bf16.msra.mxu1 %v2917_v30  ;;  %3545 = vmatpush.bf16.msra.mxu3 %v2917_v30  ;;  %v3436_v10 = vld [vmem:[#allocation2 + $0x17c] sm:$0xf]  ;;  %v3001_v16 = vor.u32 %v3440_v9, %v3000_v8  ;;  %v3435_v18 = vld [vmem:[#allocation2 + $0x174] sm:$0xf]  ;;  %v2994_v19 = vld [vmem:[#allocation2 + $0x194] sm:$0xf0]  ;;  %v2993_v24 = vor.u32 %v3439_v15, %v2992_v14 }
  0x27   : > { %v3005_v17 = vor.u32 %v3436_v10, %v3002_v11  ;;  %v2964_v20 = vld [vmem:[#allocation2 + $0x130] sm:$0xf]  ;;  %v3431_v21 = vld [vmem:[#allocation2 + $0x150] sm:$0xf0]  ;;  %v2966_v23 = vld [vmem:[#allocation2 + $0x154] sm:$0xf0]  ;;  %v2997_v25 = vor.u32 %v3435_v18, %v2994_v19 }
  0x28   : > { %v3427_v22 = vld [vmem:[#allocation2 + $0x134] sm:$0xf]  ;;  %v2956_v26 = vld [vmem:[#allocation2 + $0x128] sm:$0xf]  ;;  %v3430_v27 = vld [vmem:[#allocation2 + $0x148] sm:$0xf0]  ;;  %v2965_v28 = vor.u32 %v3431_v21, %v2964_v20 }
  0x29   : > { %821 = vmatpush.bf16.msra.mxu0 %v2877_v34  ;;  %3538 = vmatpush.bf16.msra.mxu2 %v2877_v34  ;;  %v3426_v29 = vld [vmem:[#allocation2 + $0x12c] sm:$0xf]  ;;  %v2958_v30 = vld [vmem:[#allocation2 + $0x14c] sm:$0xf0]  ;;  %v2969_v31 = vor.u32 %v3427_v22, %v2966_v23  ;;  %v2928_v32 = vld [vmem:[#allocation2 + $0xe8] sm:$0xf]  ;;  %v2957_v36 = vor.u32 %v3430_v27, %v2956_v26 }
  0x2a   : > { %875 = vmatpush.bf16.msra.mxu1 %v2881_v35  ;;  %3546 = vmatpush.bf16.msra.mxu3 %v2881_v35  ;;  %v3422_v33 = vld [vmem:[#allocation2 + $0x108] sm:$0xf0]  ;;  %v2930_v35 = vld [vmem:[#allocation2 + $0x10c] sm:$0xf0]  ;;  %v2961_v37 = vor.u32 %v3426_v29, %v2958_v30  ;;  %v2920_v38 = vld [vmem:[#allocation2 + $0xe0] sm:$0xf] }
  0x2b   : > { %v3418_v34 = vld [vmem:[#allocation2 + $0xec] sm:$0xf]  ;;  %v3421_v39 = vld [vmem:[#allocation2 + $0x100] sm:$0xf0]  ;;  %v2929_v42 = vor.u32 %v3422_v33, %v2928_v32  ;;  %v3805_v45 = vld [vmem:[%s3789_s19 + $0x30] sm:$0xff] }
  0x2c   : > { %v2933_v43 = vor.u32 %v3418_v34, %v2930_v35  ;;  %v3802_v44 = vld [vmem:[%s3789_s19 + $0x8] sm:$0xff]  ;;  %v2921_v46 = vor.u32 %v3421_v39, %v2920_v38  ;;  %v2884_v48 = vld [vmem:[#allocation2 + $0x98] sm:$0xf]  ;;  %v3412_v49 = vld [vmem:[#allocation2 + $0xb8] sm:$0xf0] }
  0x2d   : > { %822 = vmatpush.bf16.msra.mxu0 %v2841_v40  ;;  %3539 = vmatpush.bf16.msra.mxu2 %v2841_v40  ;;  %v3417_v40 = vld [vmem:[#allocation2 + $0xe4] sm:$0xf]  ;;  %v2892_v54 = vld [vmem:[#allocation2 + $0xa0] sm:$0xf]  ;;  %v2885_v55 = vor.u32 %v3412_v49, %v2884_v48  ;;  %v2894_v59 = vld [vmem:[#allocation2 + $0xc4] sm:$0xf0] }
  0x2e   : > { %876 = vmatpush.bf16.msra.mxu1 %v2845_v41  ;;  %3547 = vmatpush.bf16.msra.mxu3 %v2845_v41  ;;  %v2922_v41 = vld [vmem:[#allocation2 + $0x104] sm:$0xf0]  ;;  %v3409_v58 = vld [vmem:[#allocation2 + $0xa4] sm:$0xf]  ;;  %v2848_v62 = vld [vmem:[#allocation2 + $0x50] sm:$0xf] }
  0x2f   : > { %v2925_v47 = vor.u32 %v3417_v40, %v2922_v41  ;;  %v2897_v61 = vor.u32 %v3409_v58, %v2894_v59  ;;  %v3403_v63 = vld [vmem:[#allocation2 + $0x70] sm:$0xf0]  ;;  %v2856_v2 = vld [vmem:[#allocation2 + $0x58] sm:$0xf]  ;;  %v3404_v3 = vld [vmem:[#allocation2 + $0x78] sm:$0xf0] }
  0x30   : > { %v2812_v7 = vld [vmem:[#allocation2 + $0x8] sm:$0xf]  ;;  %v3400_v8 = vld [vmem:[#allocation2 + $0x5c] sm:$0xf]  ;;  %v2858_v9 = vld [vmem:[#allocation2 + $0x7c] sm:$0xf0] }
  0x31   : > { %823 = vmatpush.bf16.msra.mxu0 %v2805_v50  ;;  %3540 = vmatpush.bf16.msra.mxu2 %v2805_v50  ;;  %v3408_v50 = vld [vmem:[#allocation2 + $0x9c] sm:$0xf]  ;;  %v3394_v10 = vld [vmem:[#allocation2 + $0x28] sm:$0xf0]  ;;  %v2820_v18 = vld [vmem:[#allocation2 + $0x10] sm:$0xf] }
  0x32   : > { %877 = vmatpush.bf16.msra.mxu1 %v2809_v51  ;;  %3548 = vmatpush.bf16.msra.mxu3 %v2809_v51  ;;  %v2886_v51 = vld [vmem:[#allocation2 + $0xbc] sm:$0xf0]  ;;  %v3390_v11 = vld [vmem:[#allocation2 + $0xc] sm:$0xf]  ;;  %v2813_v14 = vor.u32 %v3394_v10, %v2812_v7  ;;  %v3395_v19 = vld [vmem:[#allocation2 + $0x30] sm:$0xf0] }
  0x33   : > { %v3080_v20 = vld [vmem:[#allocation2 + $0x210] sm:$0xf]  ;;  %v2821_v21 = vor.u32 %v3395_v19, %v2820_v18  ;;  %v3459_v22 = vld [vmem:[#allocation2 + $0x230] sm:$0xf0]  ;;  %v3822_v30 = vld [vmem:[%s3789_s19 + $0x18] sm:$0xff] }
  0x34   : > { %824 = vmatmul.bf16.vlgmr.msra.gmra.mxu0 %v3792_v52  ;;  %849 = vmatmul.bf16.vlgmr.msra.gmra.mxu2 %v3795_v53  ;;  %v3391_v23 = vld [vmem:[#allocation2 + $0x14] sm:$0xf]  ;;  %v3088_v32 = vld [vmem:[#allocation2 + $0x218] sm:$0xf]  ;;  %v3460_v33 = vld [vmem:[#allocation2 + $0x238] sm:$0xf0] }
  0x35   : > { %1032 = vmatpush.bf16.msrb.mxu0 %v3073_v56  ;;  %878 = vmatmul.bf16.vlgmr.msra.gmra.mxu1 %v3792_v52  ;;  %v2889_v56 = vor.u32 %v3408_v50, %v2886_v51  ;;  %v3455_v27 = vld [vmem:[#allocation2 + $0x214] sm:$0xf]  ;;  %v3468_v34 = vld [vmem:[%s4715_s3 + $0x38] sm:$0xff]  ;;  %v3089_v35 = vor.u32 %v3460_v33, %v3088_v32  ;;  %v3446_v38 = vld [vmem:[#allocation2 + $0x1cc] sm:$0xf] }
  0x36   : > { %1086 = vmatpush.bf16.msrb.mxu1 %v3077_v57  ;;  %903 = vmatmul.bf16.vlgmr.msra.gmra.mxu3 %v3795_v53  ;;  %v3413_v57 = vld [vmem:[#allocation2 + $0xc0] sm:$0xf0]  ;;  %v3046_v40 = vld [vmem:[#allocation2 + $0x1ec] sm:$0xf0]  ;;  %v3008_v49 = vld [vmem:[#allocation2 + $0x180] sm:$0xf] }
  0x37   : > { %924 = vmatpush.bf16.msrb.mxu2 %v3065_v0  ;;  %978 = vmatpush.bf16.msrb.mxu3 %v3069_v1  ;;  %v2893_v60 = vor.u32 %v3413_v57, %v2892_v54  ;;  %v3399_v0 = vld [vmem:[#allocation2 + $0x54] sm:$0xf]  ;;  %v2850_v1 = vld [vmem:[#allocation2 + $0x74] sm:$0xf0]  ;;  %v3049_v41 = vor.u32 %v3446_v38, %v3046_v40  ;;  %v3441_v50 = vld [vmem:[#allocation2 + $0x1a0] sm:$0xf0] }
  0x38   : > { %v2853_v6 = vor.u32 %v3399_v0, %v2850_v1  ;;  %v3437_v51 = vld [vmem:[#allocation2 + $0x184] sm:$0xf]  ;;  %v3009_v54 = vor.u32 %v3441_v50, %v3008_v49  ;;  %v3016_v57 = vld [vmem:[#allocation2 + $0x188] sm:$0xf]  ;;  %v3442_v58 = vld [vmem:[#allocation2 + $0x1a8] sm:$0xf0] }
  0x39   : > { %1033 = vmatpush.bf16.msrb.mxu0 %v3037_v4  ;;  %v2857_v4 = vor.u32 %v3404_v3, %v2856_v2  ;;  %v3466_v59 = vld [vmem:[%s4715_s3 + $0x28] sm:$0xff]  ;;  %v3428_v0 = vld [vmem:[#allocation2 + $0x13c] sm:$0xf]  ;;  %v2974_v1 = vld [vmem:[#allocation2 + $0x15c] sm:$0xf0] }
  0x3a   : > { %1087 = vmatpush.bf16.msrb.mxu1 %v3041_v5  ;;  %v2849_v5 = vor.u32 %v3403_v63, %v2848_v62  ;;  %v3432_v62 = vld [vmem:[#allocation2 + $0x158] sm:$0xf0]  ;;  %v2977_v2 = vor.u32 %v3428_v0, %v2974_v1  ;;  %v2980_v3 = vld [vmem:[#allocation2 + $0x140] sm:$0xf]  ;;  %v2936_v7 = vld [vmem:[#allocation2 + $0xf0] sm:$0xf] }
  0x3b   : > { %925 = vmatpush.bf16.msrb.mxu2 %v3029_v12  ;;  %979 = vmatpush.bf16.msrb.mxu3 %v3033_v13  ;;  %v2814_v12 = vld [vmem:[#allocation2 + $0x2c] sm:$0xf0]  ;;  %v2861_v13 = vor.u32 %v3400_v8, %v2858_v9  ;;  %v3423_v8 = vld [vmem:[#allocation2 + $0x110] sm:$0xf0]  ;;  %v3865_v19 = vld [vmem:[#allocation4] sm:$0xff] }
  0x3c   : > { %v2817_v15 = vor.u32 %v3390_v11, %v2814_v12  ;;  %v3419_v9 = vld [vmem:[#allocation2 + $0xf4] sm:$0xf]  ;;  %v2937_v10 = vor.u32 %v3423_v8, %v2936_v7  ;;  %v2938_v11 = vld [vmem:[#allocation2 + $0x114] sm:$0xf0] }
  0x3d   : > { %1034 = vmatpush.bf16.msrb.mxu0 %v3001_v16  ;;  %v3812_v16 = vld [vmem:[%s3789_s19 + $0x10] sm:$0xff]  ;;  %v2941_v12 = vor.u32 %v3419_v9, %v2938_v11 }
  0x3e   : > { %1088 = vmatpush.bf16.msrb.mxu1 %v3005_v17  ;;  %v3815_v17 = vld [vmem:[%s3789_s19 + $0x38] sm:$0xff]  ;;  %v3415_v49 = vld [vmem:[#allocation2 + $0xd0] sm:$0xf0] }
  0x3f   : > { %926 = vmatpush.bf16.msrb.mxu2 %v2993_v24  ;;  %980 = vmatpush.bf16.msrb.mxu3 %v2997_v25  ;;  %v2822_v24 = vld [vmem:[#allocation2 + $0x34] sm:$0xf0]  ;;  %v3081_v25 = vor.u32 %v3459_v22, %v3080_v20  ;;  %v3868_v22 = vperm.slane %v3865_v19, 0 }
  0x40   : > { %v2825_v26 = vor.u32 %v3391_v23, %v2822_v24  ;;  %v3873_v23 = vperm.slane %v3865_v19, 1  ;;  %v2900_v24 = vld [vmem:[#allocation2 + $0xa8] sm:$0xf] }
  0x41   : > { %1035 = vmatpush.bf16.msrb.mxu0 %v2965_v28  ;;  %v3082_v28 = vld [vmem:[#allocation2 + $0x234] sm:$0xf0] }
  0x42   : > { %1089 = vmatpush.bf16.msrb.mxu1 %v2969_v31  ;;  %v3085_v29 = vor.u32 %v3455_v27, %v3082_v28  ;;  %v3825_v31 = vld [vmem:[%s3789_s19 + $0x40] sm:$0xff]  ;;  %v3410_v27 = vld [vmem:[#allocation2 + $0xac] sm:$0xf]  ;;  %v2902_v28 = vld [vmem:[#allocation2 + $0xcc] sm:$0xf0] }
  0x43   : > { %927 = vmatpush.bf16.msrb.mxu2 %v2957_v36  ;;  %981 = vmatpush.bf16.msrb.mxu3 %v2961_v37  ;;  %v3044_v36 = vld [vmem:[#allocation2 + $0x1c8] sm:$0xf]  ;;  %v3450_v37 = vld [vmem:[#allocation2 + $0x1e8] sm:$0xf0]  ;;  %v2905_v32 = vor.u32 %v3410_v27, %v2902_v28 }
  0x44   : > { %829 = vmatmul.bf16.gmra.mxu0 %v3802_v44  ;;  %854 = vmatmul.bf16.gmra.mxu2 %v3805_v45  ;;  %v3045_v39 = vor.u32 %v3450_v37, %v3044_v36 }
  0x45   : > { %1036 = vmatpush.bf16.msrb.mxu0 %v2929_v42  ;;  %883 = vmatmul.bf16.gmra.mxu1 %v3802_v44  ;;  %v3835_v42 = vld [vmem:[%s3789_s19 + $0x20] sm:$0xff] }
  0x46   : > { %1090 = vmatpush.bf16.msrb.mxu1 %v2933_v43  ;;  %908 = vmatmul.bf16.gmra.mxu3 %v3805_v45  ;;  %v3052_v43 = vld [vmem:[#allocation2 + $0x1d0] sm:$0xf] }
  0x47   : > { %928 = vmatpush.bf16.msrb.mxu2 %v2921_v46  ;;  %982 = vmatpush.bf16.msrb.mxu3 %v2925_v47  ;;  %v3451_v46 = vld [vmem:[#allocation2 + $0x1f0] sm:$0xf0] }
  0x48   : > { %v3467_v47 = vld [vmem:[%s4715_s3 + $0x30] sm:$0xff]  ;;  %v3053_v48 = vor.u32 %v3451_v46, %v3052_v43 }
  0x49   : > { %1037 = vmatpush.bf16.msrb.mxu0 %v2893_v60  ;;  %v3017_v60 = vor.u32 %v3442_v58, %v3016_v57 }
  0x4a   : > { %1091 = vmatpush.bf16.msrb.mxu1 %v2897_v61  ;;  %v2972_v61 = vld [vmem:[#allocation2 + $0x138] sm:$0xf] }
  0x4b   : > { %929 = vmatpush.bf16.msrb.mxu2 %v2885_v55  ;;  %983 = vmatpush.bf16.msrb.mxu3 %v2889_v56  ;;  %v3010_v55 = vld [vmem:[#allocation2 + $0x1a4] sm:$0xf0]  ;;  %v2973_v63 = vor.u32 %v3432_v62, %v2972_v61 }
  0x4c   : > { %v3013_v56 = vor.u32 %v3437_v51, %v3010_v55 }
  0x4d   : > { %1038 = vmatpush.bf16.msrb.mxu0 %v2857_v4  ;;  %v3433_v4 = vld [vmem:[#allocation2 + $0x160] sm:$0xf0] }
  0x4e   : > { %1092 = vmatpush.bf16.msrb.mxu1 %v2861_v13  ;;  %v2944_v13 = vld [vmem:[#allocation2 + $0xf8] sm:$0xf] }
  0x4f   : > { %930 = vmatpush.bf16.msrb.mxu2 %v2849_v5  ;;  %984 = vmatpush.bf16.msrb.mxu3 %v2853_v6  ;;  %v3465_v5 = vld [vmem:[%s4715_s3 + $0x20] sm:$0xff]  ;;  %v2981_v6 = vor.u32 %v3433_v4, %v2980_v3 }
  0x50   : > { %v2864_v4 = vld [vmem:[#allocation2 + $0x60] sm:$0xf] }
  0x51   : > { %1039 = vmatpush.bf16.msrb.mxu0 %v2821_v21 }
  0x52   : > { %1093 = vmatpush.bf16.msrb.mxu1 %v2825_v26 }
  0x53   : > { %931 = vmatpush.bf16.msrb.mxu2 %v2813_v14  ;;  %985 = vmatpush.bf16.msrb.mxu3 %v2817_v15  ;;  %v3424_v14 = vld [vmem:[#allocation2 + $0x118] sm:$0xf0] }
  0x54   : > { %834 = vmatmul.bf16.gmra.mxu0 %v3812_v16  ;;  %859 = vmatmul.bf16.gmra.mxu2 %v3815_v17  ;;  %v3464_v15 = vld [vmem:[%s4715_s3 + $0x18] sm:$0xff]  ;;  %v2945_v18 = vor.u32 %v3424_v14, %v2944_v13 }
  0x55   : > { %888 = vmatmul.bf16.gmra.mxu1 %v3812_v16  ;;  %1248 = vmatpush.bf16.msra.mxu0 %v3089_v35 }
  0x56   : > { %913 = vmatmul.bf16.gmra.mxu3 %v3815_v17  ;;  %2125 = vmatpush.bf16.msra.mxu1 %v3468_v34 }
  0x57   : > { %1140 = vmatpush.bf16.msra.mxu2 %v3081_v25  ;;  %1194 = vmatpush.bf16.msra.mxu3 %v3085_v29  ;;  %v3414_v25 = vld [vmem:[#allocation2 + $0xc8] sm:$0xf0] }
  0x58   : > { %v2901_v26 = vor.u32 %v3414_v25, %v2900_v24 }
  0x59   : > { %1249 = vmatpush.bf16.msra.mxu0 %v3053_v48  ;;  %v2908_v48 = vld [vmem:[#allocation2 + $0xb0] sm:$0xf] }
  0x5a   : > { %2126 = vmatpush.bf16.msra.mxu1 %v3467_v47 }
  0x5b   : > { %1141 = vmatpush.bf16.msra.mxu2 %v3045_v39  ;;  %1195 = vmatpush.bf16.msra.mxu3 %v3049_v41 }
  0x5d   : > { %1250 = vmatpush.bf16.msra.mxu0 %v3017_v60 }
  0x5e   : > { %2127 = vmatpush.bf16.msra.mxu1 %v3466_v59 }
  0x5f   : > { %1142 = vmatpush.bf16.msra.mxu2 %v3009_v54  ;;  %1196 = vmatpush.bf16.msra.mxu3 %v3013_v56  ;;  %v2909_v54 = vor.u32 %v3415_v49, %v2908_v48  ;;  %v3406_v48 = vld [vmem:[#allocation2 + $0x88] sm:$0xf0] }
  0x61   : > { %1251 = vmatpush.bf16.msra.mxu0 %v2981_v6 }
  0x62   : > { %2128 = vmatpush.bf16.msra.mxu1 %v3465_v5  ;;  %v3405_v5 = vld [vmem:[#allocation2 + $0x80] sm:$0xf0] }
  0x63   : > { %1143 = vmatpush.bf16.msra.mxu2 %v2973_v63  ;;  %1197 = vmatpush.bf16.msra.mxu3 %v2977_v2  ;;  %v3463_v2 = vld [vmem:[%s4715_s3 + $0x10] sm:$0xff]  ;;  %v2865_v7 = vor.u32 %v3405_v5, %v2864_v4 }
  0x64   : > { %839 = vmatmul.bf16.gmra.mxu0 %v3822_v30  ;;  %864 = vmatmul.bf16.gmra.mxu2 %v3825_v31 }
  0x65   : > { %893 = vmatmul.bf16.gmra.mxu1 %v3822_v30  ;;  %1252 = vmatpush.bf16.msra.mxu0 %v2945_v18  ;;  %v3401_v18 = vld [vmem:[#allocation2 + $0x64] sm:$0xf] }
  0x66   : > { %918 = vmatmul.bf16.gmra.mxu3 %v3825_v31  ;;  %2129 = vmatpush.bf16.msra.mxu1 %v3464_v15 }
  0x67   : > { %1144 = vmatpush.bf16.msra.mxu2 %v2937_v10  ;;  %1198 = vmatpush.bf16.msra.mxu3 %v2941_v12 }
  0x69   : > { %1253 = vmatpush.bf16.msra.mxu0 %v2909_v54  ;;  %v3462_v54 = vld [vmem:[%s4715_s3 + $0x8] sm:$0xff] }
  0x6a   : > { %2130 = vmatpush.bf16.msra.mxu1 %v3463_v2 }
  0x6b   : > { %1145 = vmatpush.bf16.msra.mxu2 %v2901_v26  ;;  %1199 = vmatpush.bf16.msra.mxu3 %v2905_v32 }
  0x6e   : > { %2131 = vmatpush.bf16.msra.mxu1 %v3462_v54 }
  0x6f   : > { %1146 = vmatpush.bf16.msra.mxu2 %v2865_v7 }
  0x74   : > { %844 = vmatmul.bf16.gmra.mxu0 %v3835_v42  ;;  %932 = vmatmul.bf16.vlgmr.msrb.gmra.mxu2 %v3792_v52 }
  0x75   : > { %898 = vmatmul.bf16.gmra.mxu1 %v3835_v42 }
  0x76   : > { %986 = vmatmul.bf16.vlgmr.msrb.gmra.mxu3 %v3792_v52 }
  0x84   : > { %937 = vmatmul.bf16.gmra.mxu2 %v3802_v44  ;;  %1040 = vmatmul.bf16.vlgmr.msrb.gmra.mxu0 %v3792_v52 }
  0x85   : > { %1094 = vmatmul.bf16.vlgmr.msrb.gmra.mxu1 %v3792_v52 }
  0x86   : > { %991 = vmatmul.bf16.gmra.mxu3 %v3802_v44 }
  0x94   : > { %942 = vmatmul.bf16.gmra.mxu2 %v3812_v16  ;;  %1045 = vmatmul.bf16.gmra.mxu0 %v3802_v44 }
  0x95   : > { %1099 = vmatmul.bf16.gmra.mxu1 %v3802_v44 }
  0x96   : > { %996 = vmatmul.bf16.gmra.mxu3 %v3812_v16 }
  0xa4   : > { %947 = vmatmul.bf16.gmra.mxu2 %v3822_v30  ;;  %1050 = vmatmul.bf16.gmra.mxu0 %v3812_v16 }
  0xa5   : > { %1104 = vmatmul.bf16.gmra.mxu1 %v3812_v16 }
  0xa6   : > { %1001 = vmatmul.bf16.gmra.mxu3 %v3822_v30 }
  0xb1   : > { %v825_v20 = vpop.f32.mrf.mxu0 }
  0xb2   : > { %v879_v21 = vpop.f32.mrf.mxu1  ;;  %v826_v33 = vadd.f32 %v825_v20, %v3868_v22  ;;  %v2866_v20 = vld [vmem:[#allocation2 + $0x84] sm:$0xf0] }
  0xb3   : > { %v880_v35 = vadd.f32 %v879_v21, %v3873_v23  ;;  %v2869_v25 = vor.u32 %v3401_v18, %v2866_v20 }
  0xb4   : > { %952 = vmatmul.bf16.gmra.mxu2 %v3835_v42  ;;  %1055 = vmatmul.bf16.gmra.mxu0 %v3822_v30  ;;  %v1302_v40 = vmax.f32 %v826_v33, 0.0 }
  0xb5   : > { %1109 = vmatmul.bf16.gmra.mxu1 %v3822_v30  ;;  %v1303_v43 = vmax.f32 %v880_v35, 0.0  ;;  %1200 = vmatpush.bf16.msra.mxu3 %v2869_v25 }
  0xb6   : > { %1006 = vmatmul.bf16.gmra.mxu3 %v3835_v42 }
  0xb7   : > { %v850_v29 = vpop.f32.mrf.mxu2 }
  0xb8   : > { %v851_v50 = vadd.f32 %v850_v29, %v3868_v22 }
  0xb9   : > { %v904_v34 = vpop.f32.mrf.mxu3  ;;  %v827_v36 = vpop.f32.mrf.mxu0 }
  0xba   : > { %v828_v37 = vadd.f32 %v827_v36, %v3868_v22  ;;  %v881_v38 = vpop.f32.mrf.mxu1  ;;  %v905_v46 = vadd.f32 %v904_v34, %v3873_v23  ;;  %v1392_v62 = vmax.f32 %v851_v50, 0.0 }
  0xbb   : > { %v882_v39 = vadd.f32 %v881_v38, %v3873_v23 }
  0xbc   : > { %v1311_v41 = vmax.f32 %v828_v37, 0.0  ;;  %v1393_v59 = vmax.f32 %v905_v46, 0.0 }
  0xbd   : > { %v1312_v47 = vmax.f32 %v882_v39, 0.0 }
  0xbe   : > { %v3883_v51 = vpack.c.bf16 %v1311_v41, %v1302_v40 }
  0xbf   : > { %v3885_v55 = vpack.c.bf16 %v1312_v47, %v1303_v43  ;;  %v852_v56 = vpop.f32.mrf.mxu2  ;;  %v2872_v47 = vld [vmem:[#allocation2 + $0x68] sm:$0xf] }
  0xc0   : > { %v853_v57 = vadd.f32 %v852_v56, %v3868_v22  ;;  %v2873_v49 = vor.u32 %v3406_v48, %v2872_v47 }
  0xc1   : > { %v906_v58 = vpop.f32.mrf.mxu3  ;;  %v830_v61 = vpop.f32.mrf.mxu0 }
  0xc2   : > { %v907_v60 = vadd.f32 %v906_v58, %v3873_v23  ;;  %v1401_v63 = vmax.f32 %v853_v57, 0.0  ;;  %v884_v0 = vpop.f32.mrf.mxu1  ;;  %v831_v9 = vadd.f32 %v830_v61, %v3868_v22  ;;  %1254 = vmatpush.bf16.msra.mxu0 %v2873_v49 }
  0xc3   : > { %v885_v11 = vadd.f32 %v884_v0, %v3873_v23  ;;  %v2828_v0 = vld [vmem:[#allocation2 + $0x18] sm:$0xf] }
  0xc4   : > { %v1402_v1 = vmax.f32 %v907_v60, 0.0  ;;  %957 = vmatmul.bf16.gmra.mxu2 %v3795_v53  ;;  %1060 = vmatmul.bf16.gmra.mxu0 %v3835_v42  ;;  %v3894_v3 = vpack.c.bf16 %v1401_v63, %v1392_v62  ;;  %v1320_v21 = vmax.f32 %v831_v9, 0.0 }
  0xc5   : > { %1114 = vmatmul.bf16.gmra.mxu1 %v3835_v42  ;;  %v1321_v26 = vmax.f32 %v885_v11, 0.0  ;;  %v2830_v11 = vld [vmem:[#allocation2 + $0x3c] sm:$0xf0] }
  0xc6   : > { %1011 = vmatmul.bf16.gmra.mxu3 %v3795_v53  ;;  %v3898_v6 = vpack.c.bf16 %v1402_v1, %v1393_v59  ;;  %v3396_v1 = vld [vmem:[#allocation2 + $0x38] sm:$0xf0] }
  0xc7   : > { %v855_v8 = vpop.f32.mrf.mxu2  ;;  %v2829_v5 = vor.u32 %v3396_v1, %v2828_v0  ;;  %v3476_v0 = vld [vmem:[%s4715_s3 + $0x78] sm:$0xff] }
  0xc8   : > { %v856_v29 = vadd.f32 %v855_v8, %v3868_v22  ;;  %v3484_v1 = vld [vmem:[%s4715_s3 + $0xb8] sm:$0xff] }
  0xc9   : > { %v909_v10 = vpop.f32.mrf.mxu3  ;;  %v832_v12 = vpop.f32.mrf.mxu0  ;;  %1147 = vmatpush.bf16.msra.mxu2 %v2829_v5 }
  0xca   : > { %v833_v13 = vadd.f32 %v832_v12, %v3868_v22  ;;  %v886_v14 = vpop.f32.mrf.mxu1  ;;  %v910_v27 = vadd.f32 %v909_v10, %v3873_v23  ;;  %v1410_v40 = vmax.f32 %v856_v29, 0.0  ;;  %v3392_v10 = vld [vmem:[#allocation2 + $0x1c] sm:$0xf] }
  0xcb   : > { %v887_v15 = vadd.f32 %v886_v14, %v3873_v23 }
  0xcc   : > { %v1329_v24 = vmax.f32 %v833_v13, 0.0  ;;  %v1411_v37 = vmax.f32 %v910_v27, 0.0  ;;  %v2833_v13 = vor.u32 %v3392_v10, %v2830_v11 }
  0xcd   : > { %v1330_v28 = vmax.f32 %v887_v15, 0.0  ;;  %2179 = vmatpush.bf16.msrb.mxu2 %v3476_v0 }
  0xce   : > { %v3906_v32 = vpack.c.bf16 %v1329_v24, %v1320_v21  ;;  %1201 = vmatpush.bf16.msra.mxu3 %v2833_v13 }
  0xcf   : > { %v857_v33 = vpop.f32.mrf.mxu2  ;;  %v3908_v34 = vpack.c.bf16 %v1330_v28, %v1321_v26 }
  0xd0   : > { %v858_v35 = vadd.f32 %v857_v33, %v3868_v22 }
  0xd1   : > { %v911_v36 = vpop.f32.mrf.mxu3  ;;  %v835_v39 = vpop.f32.mrf.mxu0 }
  0xd2   : > { %v912_v38 = vadd.f32 %v911_v36, %v3873_v23  ;;  %v1419_v41 = vmax.f32 %v858_v35, 0.0  ;;  %v889_v43 = vpop.f32.mrf.mxu1  ;;  %v836_v58 = vadd.f32 %v835_v39, %v3868_v22  ;;  %v2836_v36 = vld [vmem:[#allocation2 + $0x20] sm:$0xf]  ;;  %2233 = vmatpush.bf16.msrb.mxu3 %v3484_v1 }
  0xd3   : > { %v890_v60 = vadd.f32 %v889_v43, %v3873_v23 }
  0xd4   : > { %v1420_v46 = vmax.f32 %v912_v38, 0.0  ;;  %962 = vmatmul.bf16.gmra.mxu2 %v3805_v45  ;;  %1065 = vmatmul.bf16.gmra.mxu0 %v3795_v53  ;;  %v3914_v50 = vpack.c.bf16 %v1419_v41, %v1410_v40  ;;  %v1338_v2 = vmax.f32 %v836_v58, 0.0  ;;  %v3461_v38 = vld [vmem:[%s4715_s3] sm:$0xff] }
  0xd5   : > { %1119 = vmatmul.bf16.gmra.mxu1 %v3795_v53  ;;  %v1339_v7 = vmax.f32 %v890_v60, 0.0 }
  0xd6   : > { %1016 = vmatmul.bf16.gmra.mxu3 %v3805_v45  ;;  %v3921_v56 = vpack.c.bf16 %v1420_v46, %v1411_v37  ;;  %v3397_v37 = vld [vmem:[#allocation2 + $0x40] sm:$0xf0]  ;;  %2132 = vmatpush.bf16.msra.mxu1 %v3461_v38 }
  0xd7   : > { %v860_v57 = vpop.f32.mrf.mxu2  ;;  %v2837_v40 = vor.u32 %v3397_v37, %v2836_v36 }
  0xd8   : > { %v861_v12 = vadd.f32 %v860_v57, %v3868_v22 }
  0xd9   : > { %v914_v59 = vpop.f32.mrf.mxu3  ;;  %v837_v61 = vpop.f32.mrf.mxu0  ;;  %1255 = vmatpush.bf16.msra.mxu0 %v2837_v40 }
  0xda   : > { %v838_v62 = vadd.f32 %v837_v61, %v3868_v22  ;;  %v891_v63 = vpop.f32.mrf.mxu1  ;;  %v915_v8 = vadd.f32 %v914_v59, %v3873_v23  ;;  %v1428_v27 = vmax.f32 %v861_v12, 0.0 }
  0xdb   : > { %v892_v53 = vadd.f32 %v891_v63, %v3873_v23 }
  0xdc   : > { %v1347_v4 = vmax.f32 %v838_v62, 0.0  ;;  %v1429_v24 = vmax.f32 %v915_v8, 0.0 }
  0xdd   : > { %v1348_v9 = vmax.f32 %v892_v53, 0.0 }
  0xde   : > { %v3929_v14 = vpack.c.bf16 %v1347_v4, %v1338_v2 }
  0xdf   : > { %v862_v15 = vpop.f32.mrf.mxu2  ;;  %v3931_v18 = vpack.c.bf16 %v1348_v9, %v1339_v7 }
  0xe0   : > { %v863_v20 = vadd.f32 %v862_v15, %v3868_v22 }
  0xe1   : > { %v916_v21 = vpop.f32.mrf.mxu3  ;;  %v840_v26 = vpop.f32.mrf.mxu0 }
  0xe2   : > { %v917_v25 = vadd.f32 %v916_v21, %v3873_v23  ;;  %v1437_v28 = vmax.f32 %v863_v20, 0.0  ;;  %v894_v29 = vpop.f32.mrf.mxu1  ;;  %v841_v43 = vadd.f32 %v840_v26, %v3868_v22  ;;  %v3492_v20 = vld [vmem:[%s4715_s3 + $0xf8] sm:$0xff] }
  0xe3   : > { %v895_v47 = vadd.f32 %v894_v29, %v3873_v23  ;;  %v3500_v21 = vld [vmem:[%s4715_s3 + $0x138] sm:$0xff]  ;;  %2287 = vmatpush.bf16.msrb.mxu0 %v3492_v20 }
  0xe4   : > { %v1438_v33 = vmax.f32 %v917_v25, 0.0  ;;  %967 = vmatmul.bf16.gmra.mxu2 %v3815_v17  ;;  %1070 = vmatmul.bf16.gmra.mxu0 %v3805_v45  ;;  %v3937_v35 = vpack.c.bf16 %v1437_v28, %v1428_v27  ;;  %v1356_v57 = vmax.f32 %v841_v43, 0.0 }
  0xe5   : > { %1124 = vmatmul.bf16.gmra.mxu1 %v3805_v45  ;;  %v1357_v59 = vmax.f32 %v895_v47, 0.0 }
  0xe6   : > { %1021 = vmatmul.bf16.gmra.mxu3 %v3815_v17  ;;  %v3944_v39 = vpack.c.bf16 %v1438_v33, %v1429_v24  ;;  %2341 = vmatpush.bf16.msrb.mxu1 %v3500_v21  ;;  %v3984_v33 = vperm.slane %v3865_v19, 2 }
  0xe7   : > { %v865_v41 = vpop.f32.mrf.mxu2 }
  0xe8   : > { %v866_v62 = vadd.f32 %v865_v41, %v3868_v22 }
  0xe9   : > { %v919_v46 = vpop.f32.mrf.mxu3  ;;  %v842_v48 = vpop.f32.mrf.mxu0 }
  0xea   : > { %v843_v45 = vadd.f32 %v842_v48, %v3868_v22  ;;  %v896_v49 = vpop.f32.mrf.mxu1  ;;  %v920_v60 = vadd.f32 %v919_v46, %v3873_v23  ;;  %v1446_v10 = vmax.f32 %v866_v62, 0.0  ;;  %v3475_v48 = vld [vmem:[%s4715_s3 + $0x70] sm:$0xff] }
  0xeb   : > { %v897_v54 = vadd.f32 %v896_v49, %v3873_v23  ;;  %2180 = vmatpush.bf16.msrb.mxu2 %v3475_v48 }
  0xec   : > { %v1365_v58 = vmax.f32 %v843_v45, 0.0  ;;  %v1447_v7 = vmax.f32 %v920_v60, 0.0  ;;  %v3483_v45 = vld [vmem:[%s4715_s3 + $0xb0] sm:$0xff] }
  0xed   : > { %v1366_v61 = vmax.f32 %v897_v54, 0.0  ;;  %2234 = vmatpush.bf16.msrb.mxu3 %v3483_v45 }
  0xee   : > { %v3952_v63 = vpack.c.bf16 %v1365_v58, %v1356_v57 }
  0xef   : > { %v867_v53 = vpop.f32.mrf.mxu2  ;;  %v3960_v2 = vpack.c.bf16 %v1366_v61, %v1357_v59 }
  0xf0   : > { %v868_v4 = vadd.f32 %v867_v53, %v3868_v22 }
  0xf1   : > { %v921_v5 = vpop.f32.mrf.mxu3  ;;  %v845_v9 = vpop.f32.mrf.mxu0 }
  0xf2   : > { %v922_v8 = vadd.f32 %v921_v5, %v3873_v23  ;;  %v1455_v11 = vmax.f32 %v868_v4, 0.0  ;;  %v899_v12 = vpop.f32.mrf.mxu1  ;;  %v846_v26 = vadd.f32 %v845_v9, %v3868_v22  ;;  %v4005_v5 = vperm.slane %v3865_v19, 4  ;;  %v3491_v9 = vld [vmem:[%s4715_s3 + $0xf0] sm:$0xff] }
  0xf3   : > { %v900_v28 = vadd.f32 %v899_v12, %v3873_v23  ;;  %2288 = vmatpush.bf16.msrb.mxu0 %v3491_v9 }
  0xf4   : > { %v1456_v13 = vmax.f32 %v922_v8, 0.0  ;;  %972 = vmatmul.bf16.gmra.mxu2 %v3825_v31  ;;  %1075 = vmatmul.bf16.gmra.mxu0 %v3815_v17  ;;  %v3966_v15 = vpack.c.bf16 %v1455_v11, %v1446_v10  ;;  %v1374_v40 = vmax.f32 %v846_v26, 0.0  ;;  %v4012_v8 = vperm.slane %v3865_v19, 5 }
  0xf5   : > { %1129 = vmatmul.bf16.gmra.mxu1 %v3815_v17  ;;  %v3981_v17 = vperm.slane %v3865_v19, 3  ;;  %v1375_v43 = vmax.f32 %v900_v28, 0.0 }
  0xf6   : > { %1026 = vmatmul.bf16.gmra.mxu3 %v3825_v31  ;;  %v3976_v24 = vpack.c.bf16 %v1456_v13, %v1447_v7 }
  0xf7   : > { %v933_v25 = vpop.f32.mrf.mxu2 }
  0xf8   : > { %v934_v49 = vadd.f32 %v933_v25, %v3984_v33 }
  0xf9   : > { %v987_v27 = vpop.f32.mrf.mxu3  ;;  %v847_v29 = vpop.f32.mrf.mxu0 }
  0xfa   : > { %v848_v36 = vadd.f32 %v847_v29, %v3868_v22  ;;  %v901_v37 = vpop.f32.mrf.mxu1  ;;  %v988_v46 = vadd.f32 %v987_v27, %v3981_v17  ;;  %v1304_v62 = vmax.f32 %v934_v49, 0.0 }
  0xfb   : > { %v902_v38 = vadd.f32 %v901_v37, %v3873_v23  ;;  %v3474_v37 = vld [vmem:[%s4715_s3 + $0x68] sm:$0xff] }
  0xfc   : > { %v1383_v41 = vmax.f32 %v848_v36, 0.0  ;;  %v1305_v59 = vmax.f32 %v988_v46, 0.0  ;;  %2181 = vmatpush.bf16.msrb.mxu2 %v3474_v37 }
  0xfd   : > { %v1384_v47 = vmax.f32 %v902_v38, 0.0 }
  0xfe   : > { %v3996_v22 = vpack.c.bf16 %v1383_v41, %v1374_v40 }
  0xff   : > { %v935_v54 = vpop.f32.mrf.mxu2  ;;  %v3998_v23 = vpack.c.bf16 %v1384_v47, %v1375_v43 }
 0x100   : > { %v936_v57 = vadd.f32 %v935_v54, %v3984_v33 }
 0x101   : > { %v989_v58 = vpop.f32.mrf.mxu3  ;;  %v1041_v61 = vpop.f32.mrf.mxu0 }
 0x102   : > { %v990_v60 = vadd.f32 %v989_v58, %v3981_v17  ;;  %v1313_v53 = vmax.f32 %v936_v57, 0.0  ;;  %v1095_v0 = vpop.f32.mrf.mxu1  ;;  %v1042_v11 = vadd.f32 %v1041_v61, %v4005_v5 }
 0x103   : > { %v1096_v13 = vadd.f32 %v1095_v0, %v4012_v8 }
 0x104   : > { %v1314_v1 = vmax.f32 %v990_v60, 0.0  ;;  %v4002_v4 = vpack.c.bf16 %v1313_v53, %v1304_v62  ;;  %1080 = vmatmul.bf16.gmra.mxu0 %v3825_v31  ;;  %1148 = vmatmul.bf16.vlgmr.msra.gmra.mxu2 %v3792_v52  ;;  %v1306_v26 = vmax.f32 %v1042_v11, 0.0  ;;  %v3482_v60 = vld [vmem:[%s4715_s3 + $0xa8] sm:$0xff] }
 0x105   : > { %1134 = vmatmul.bf16.gmra.mxu1 %v3825_v31  ;;  %v3499_v31 = vld [vmem:[%s4715_s3 + $0x130] sm:$0xff]  ;;  %v1307_v28 = vmax.f32 %v1096_v13, 0.0  ;;  %2235 = vmatpush.bf16.msrb.mxu3 %v3482_v60  ;;  %v3490_v13 = vld [vmem:[%s4715_s3 + $0xe8] sm:$0xff] }
 0x106   : > { %v4009_v7 = vpack.c.bf16 %v1314_v1, %v1305_v59  ;;  %1202 = vmatmul.bf16.vlgmr.msra.gmra.mxu3 %v3792_v52  ;;  %2342 = vmatpush.bf16.msrb.mxu1 %v3499_v31  ;;  %v3498_v31 = vld [vmem:[%s4715_s3 + $0x128] sm:$0xff] }
 0x107   : > { %v938_v10 = vpop.f32.mrf.mxu2  ;;  %2289 = vmatpush.bf16.msrb.mxu0 %v3490_v13 }
 0x108   : > { %v939_v38 = vadd.f32 %v938_v10, %v3984_v33 }
 0x109   : > { %v992_v12 = vpop.f32.mrf.mxu3  ;;  %v1043_v20 = vpop.f32.mrf.mxu0 }
 0x10a   : > { %v1044_v21 = vadd.f32 %v1043_v20, %v4005_v5  ;;  %v1097_v19 = vpop.f32.mrf.mxu1  ;;  %v993_v29 = vadd.f32 %v992_v12, %v3981_v17  ;;  %v1322_v54 = vmax.f32 %v939_v38, 0.0  ;;  %2343 = vmatpush.bf16.msrb.mxu1 %v3498_v31 }
 0x10b   : > { %v1098_v25 = vadd.f32 %v1097_v19, %v4012_v8 }
 0x10c   : > { %v1315_v27 = vmax.f32 %v1044_v21, 0.0  ;;  %v1323_v48 = vmax.f32 %v993_v29, 0.0 }
 0x10d   : > { %v1316_v36 = vmax.f32 %v1098_v25, 0.0 }
 0x10e   : > { %v4031_v40 = vpack.c.bf16 %v1315_v27, %v1306_v26 }
 0x10f   : > { %v4033_v41 = vpack.c.bf16 %v1316_v36, %v1307_v28  ;;  %v940_v43 = vpop.f32.mrf.mxu2 }
 0x110   : > { %v941_v46 = vadd.f32 %v940_v43, %v3984_v33 }
 0x111   : > { %v994_v47 = vpop.f32.mrf.mxu3  ;;  %v1046_v49 = vpop.f32.mrf.mxu0 }
 0x112   : > { %v995_v45 = vadd.f32 %v994_v47, %v3981_v17  ;;  %v1331_v57 = vmax.f32 %v941_v46, 0.0  ;;  %v1100_v58 = vpop.f32.mrf.mxu1  ;;  %v1047_v0 = vadd.f32 %v1046_v49, %v4005_v5 }
 0x113   : > { %v1101_v9 = vadd.f32 %v1100_v58, %v4012_v8  ;;  %v3481_v58 = vld [vmem:[%s4715_s3 + $0xa0] sm:$0xff] }
 0x114   : > { %v1332_v59 = vmax.f32 %v995_v45, 0.0  ;;  %1153 = vmatmul.bf16.gmra.mxu2 %v3802_v44  ;;  %1256 = vmatmul.bf16.vlgmr.msra.gmra.mxu0 %v3792_v52  ;;  %v4042_v61 = vpack.c.bf16 %v1331_v57, %v1322_v54  ;;  %v3473_v54 = vld [vmem:[%s4715_s3 + $0x60] sm:$0xff] }
 0x115   : > { %2133 = vmatmul.bf16.vlgmr.msra.gmra.mxu1 %v3883_v51  ;;  %v1324_v51 = vmax.f32 %v1047_v0, 0.0  ;;  %v1325_v21 = vmax.f32 %v1101_v9, 0.0  ;;  %2182 = vmatpush.bf16.msrb.mxu2 %v3473_v54  ;;  %v3472_v54 = vld [vmem:[%s4715_s3 + $0x58] sm:$0xff] }
 0x116   : > { %1207 = vmatmul.bf16.gmra.mxu3 %v3802_v44  ;;  %v4046_v62 = vpack.c.bf16 %v1332_v59, %v1323_v48 }
 0x117   : > { %v943_v53 = vpop.f32.mrf.mxu2  ;;  %2236 = vmatpush.bf16.msrb.mxu3 %v3481_v58  ;;  %v3480_v58 = vld [vmem:[%s4715_s3 + $0x98] sm:$0xff] }
 0x118   : > { %v944_v26 = vadd.f32 %v943_v53, %v3984_v33 }
 0x119   : > { %v997_v1 = vpop.f32.mrf.mxu3  ;;  %v1048_v10 = vpop.f32.mrf.mxu0  ;;  %2183 = vmatpush.bf16.msrb.mxu2 %v3472_v54 }
 0x11a   : > { %v1049_v11 = vadd.f32 %v1048_v10, %v4005_v5  ;;  %v1102_v12 = vpop.f32.mrf.mxu1  ;;  %v998_v19 = vadd.f32 %v997_v1, %v3981_v17  ;;  %v1340_v47 = vmax.f32 %v944_v26, 0.0 }
 0x11b   : > { %v1103_v52 = vadd.f32 %v1102_v12, %v4012_v8  ;;  %2237 = vmatpush.bf16.msrb.mxu3 %v3480_v58 }
 0x11c   : > { %v1333_v20 = vmax.f32 %v1049_v11, 0.0  ;;  %v1341_v38 = vmax.f32 %v998_v19, 0.0 }
 0x11d   : > { %v1334_v25 = vmax.f32 %v1103_v52, 0.0 }
 0x11e   : > { %v4060_v27 = vpack.c.bf16 %v1333_v20, %v1324_v51  ;;  %v3489_v20 = vld [vmem:[%s4715_s3 + $0xe0] sm:$0xff] }
 0x11f   : > { %v945_v28 = vpop.f32.mrf.mxu2  ;;  %v4062_v29 = vpack.c.bf16 %v1334_v25, %v1325_v21  ;;  %v3497_v21 = vld [vmem:[%s4715_s3 + $0x120] sm:$0xff]  ;;  %2290 = vmatpush.bf16.msrb.mxu0 %v3489_v20  ;;  %v3496_v20 = vld [vmem:[%s4715_s3 + $0x118] sm:$0xff] }
 0x120   : > { %v946_v36 = vadd.f32 %v945_v28, %v3984_v33  ;;  %2344 = vmatpush.bf16.msrb.mxu1 %v3497_v21 }
 0x121   : > { %v999_v37 = vpop.f32.mrf.mxu3  ;;  %v1051_v46 = vpop.f32.mrf.mxu0 }
 0x122   : > { %v1000_v43 = vadd.f32 %v999_v37, %v3981_v17  ;;  %v1349_v48 = vmax.f32 %v946_v36, 0.0  ;;  %v1105_v45 = vpop.f32.mrf.mxu1  ;;  %v1052_v53 = vadd.f32 %v1051_v46, %v4005_v5 }
 0x124   : > { %v1350_v49 = vmax.f32 %v1000_v43, 0.0  ;;  %1158 = vmatmul.bf16.gmra.mxu2 %v3812_v16  ;;  %1261 = vmatmul.bf16.gmra.mxu0 %v3802_v44  ;;  %v4071_v57 = vpack.c.bf16 %v1349_v48, %v1340_v47  ;;  %v1106_v44 = vadd.f32 %v1105_v45, %v4012_v8  ;;  %v1342_v11 = vmax.f32 %v1052_v53, 0.0 }
 0x125   : > { %2138 = vmatmul.bf16.gmra.mxu1 %v3906_v32 }
 0x126   : > { %1212 = vmatmul.bf16.gmra.mxu3 %v3812_v16  ;;  %v4078_v59 = vpack.c.bf16 %v1350_v49, %v1341_v38  ;;  %v1343_v52 = vmax.f32 %v1106_v44, 0.0  ;;  %2345 = vmatpush.bf16.msrb.mxu1 %v3496_v20  ;;  %v3487_v20 = vld [vmem:[%s4715_s3 + $0xd0] sm:$0xff] }
 0x127   : > { %v948_v60 = vpop.f32.mrf.mxu2 }
 0x128   : > { %v949_v19 = vadd.f32 %v948_v60, %v3984_v33 }
 0x129   : > { %v1002_v0 = vpop.f32.mrf.mxu3  ;;  %v1053_v1 = vpop.f32.mrf.mxu0 }
 0x12a   : > { %v1054_v9 = vadd.f32 %v1053_v1, %v4005_v5  ;;  %v1107_v10 = vpop.f32.mrf.mxu1  ;;  %v1003_v13 = vadd.f32 %v1002_v0, %v3981_v17  ;;  %v1358_v46 = vmax.f32 %v949_v19, 0.0 }
 0x12b   : > { %v1108_v32 = vadd.f32 %v1107_v10, %v4012_v8 }
 0x12c   : > { %v1351_v12 = vmax.f32 %v1054_v9, 0.0  ;;  %v1359_v37 = vmax.f32 %v1003_v13, 0.0 }
 0x12d   : > { %v1352_v51 = vmax.f32 %v1108_v32, 0.0 }
 0x12e   : > { %v4092_v25 = vpack.c.bf16 %v1351_v12, %v1342_v11 }
 0x12f   : > { %v950_v31 = vpop.f32.mrf.mxu2  ;;  %v4094_v26 = vpack.c.bf16 %v1352_v51, %v1343_v52  ;;  %v3488_v51 = vld [vmem:[%s4715_s3 + $0xd8] sm:$0xff] }
 0x130   : > { %v951_v28 = vadd.f32 %v950_v31, %v3984_v33  ;;  %2291 = vmatpush.bf16.msrb.mxu0 %v3488_v51 }
 0x131   : > { %v1004_v36 = vpop.f32.mrf.mxu3  ;;  %v1056_v43 = vpop.f32.mrf.mxu0 }
 0x132   : > { %v1005_v38 = vadd.f32 %v1004_v36, %v3981_v17  ;;  %v1367_v47 = vmax.f32 %v951_v28, 0.0  ;;  %v1110_v48 = vpop.f32.mrf.mxu1 }
 0x133   : > { %v1111_v44 = vadd.f32 %v1110_v48, %v4012_v8 }
 0x134   : > { %v1368_v45 = vmax.f32 %v1005_v38, 0.0  ;;  %1163 = vmatmul.bf16.gmra.mxu2 %v3822_v30  ;;  %1266 = vmatmul.bf16.gmra.mxu0 %v3812_v16  ;;  %v4100_v49 = vpack.c.bf16 %v1367_v47, %v1358_v46  ;;  %v1057_v16 = vadd.f32 %v1056_v43, %v4005_v5 }
 0x135   : > { %2143 = vmatmul.bf16.gmra.mxu1 %v3929_v14  ;;  %v1361_v12 = vmax.f32 %v1111_v44, 0.0  ;;  %2292 = vmatpush.bf16.msrb.mxu0 %v3487_v20 }
 0x136   : > { %1217 = vmatmul.bf16.gmra.mxu3 %v3822_v30  ;;  %v4110_v60 = vpack.c.bf16 %v1368_v45, %v1359_v37  ;;  %v1360_v32 = vmax.f32 %v1057_v16, 0.0  ;;  %v3479_v16 = vld [vmem:[%s4715_s3 + $0x90] sm:$0xff] }
 0x137   : > { %v953_v53 = vpop.f32.mrf.mxu2  ;;  %2238 = vmatpush.bf16.msrb.mxu3 %v3479_v16 }
 0x138   : > { %v954_v21 = vadd.f32 %v953_v53, %v3984_v33  ;;  %v3471_v53 = vld [vmem:[%s4715_s3 + $0x50] sm:$0xff] }
 0x139   : > { %v1007_v0 = vpop.f32.mrf.mxu3  ;;  %v1058_v1 = vpop.f32.mrf.mxu0  ;;  %2184 = vmatpush.bf16.msrb.mxu2 %v3471_v53 }
 0x13a   : > { %v1059_v14 = vadd.f32 %v1058_v1, %v4005_v5  ;;  %v1112_v9 = vpop.f32.mrf.mxu1  ;;  %v1008_v52 = vadd.f32 %v1007_v0, %v3981_v17  ;;  %v1376_v47 = vmax.f32 %v954_v21, 0.0 }
 0x13b   : > { %v1113_v10 = vadd.f32 %v1112_v9, %v4012_v8 }
 0x13c   : > { %v1369_v11 = vmax.f32 %v1059_v14, 0.0  ;;  %v1377_v38 = vmax.f32 %v1008_v52, 0.0 }
 0x13d   : > { %v1370_v13 = vmax.f32 %v1113_v10, 0.0 }
 0x13e   : > { %v4124_v19 = vpack.c.bf16 %v1369_v11, %v1360_v32 }
 0x13f   : > { %v955_v31 = vpop.f32.mrf.mxu2  ;;  %v4126_v28 = vpack.c.bf16 %v1370_v13, %v1361_v12 }
 0x140   : > { %v956_v36 = vadd.f32 %v955_v31, %v3984_v33 }
 0x141   : > { %4720 = vst [vmem:[#allocation9_spill] sm:$0xff] %v4126_v28  ;;  %v1009_v37 = vpop.f32.mrf.mxu3  ;;  %v1061_v46 = vpop.f32.mrf.mxu0 }
 0x142   : > { %v1010_v43 = vadd.f32 %v1009_v37, %v3981_v17  ;;  %v1385_v48 = vmax.f32 %v956_v36, 0.0  ;;  %v1115_v45 = vpop.f32.mrf.mxu1 }
 0x143   : > { %v1116_v14 = vadd.f32 %v1115_v45, %v4012_v8 }
 0x144   : > { %v1386_v54 = vmax.f32 %v1010_v43, 0.0  ;;  %1168 = vmatmul.bf16.gmra.mxu2 %v3835_v42  ;;  %1271 = vmatmul.bf16.gmra.mxu0 %v3822_v30  ;;  %v4132_v58 = vpack.c.bf16 %v1385_v48, %v1376_v47  ;;  %v1062_v30 = vadd.f32 %v1061_v46, %v4005_v5 }
 0x145   : > { %2148 = vmatmul.bf16.gmra.mxu1 %v3952_v63  ;;  %v1379_v52 = vmax.f32 %v1116_v14, 0.0  ;;  %v3470_v14 = vld [vmem:[%s4715_s3 + $0x48] sm:$0xff] }
 0x146   : > { %1222 = vmatmul.bf16.gmra.mxu3 %v3835_v42  ;;  %v4142_v0 = vpack.c.bf16 %v1386_v54, %v1377_v38  ;;  %v1378_v11 = vmax.f32 %v1062_v30, 0.0  ;;  %v3592_v30 = vld [vmem:[%s3789_s19 + $0x28] sm:$0xff]  ;;  %2185 = vmatpush.bf16.msrb.mxu2 %v3470_v14 }
 0x147   : > { %v958_v44 = vpop.f32.mrf.mxu2 }
 0x148   : > { %v959_v21 = vadd.f32 %v958_v44, %v3984_v33  ;;  %v3495_v44 = vld [vmem:[%s4715_s3 + $0x110] sm:$0xff] }
 0x149   : > { %v1012_v1 = vpop.f32.mrf.mxu3  ;;  %v1063_v9 = vpop.f32.mrf.mxu0  ;;  %2346 = vmatpush.bf16.msrb.mxu1 %v3495_v44 }
 0x14a   : > { %v1064_v63 = vadd.f32 %v1063_v9, %v4005_v5  ;;  %v1117_v10 = vpop.f32.mrf.mxu1  ;;  %v1013_v13 = vadd.f32 %v1012_v1, %v3981_v17  ;;  %v1394_v45 = vmax.f32 %v959_v21, 0.0 }
 0x14b   : > { %v1118_v32 = vadd.f32 %v1117_v10, %v4012_v8 }
 0x14c   : > { %v1387_v12 = vmax.f32 %v1064_v63, 0.0  ;;  %v1395_v46 = vmax.f32 %v1013_v13, 0.0  ;;  %v3478_v13 = vld [vmem:[%s4715_s3 + $0x88] sm:$0xff] }
 0x14d   : > { %v1388_v51 = vmax.f32 %v1118_v32, 0.0  ;;  %2239 = vmatpush.bf16.msrb.mxu3 %v3478_v13 }
 0x14e   : > { %v4153_v31 = vpack.c.bf16 %v1387_v12, %v1378_v11 }
 0x14f   : > { %v960_v36 = vpop.f32.mrf.mxu2  ;;  %v4155_v37 = vpack.c.bf16 %v1388_v51, %v1379_v52 }
 0x150   : > { %v961_v38 = vadd.f32 %v960_v36, %v3984_v33 }
 0x151   : > { %4721 = vst [vmem:[#allocation10_spill] sm:$0xff] %v4155_v37  ;;  %v1014_v43 = vpop.f32.mrf.mxu3  ;;  %v1066_v48 = vpop.f32.mrf.mxu0  ;;  %v3595_v37 = vld [vmem:[%s3789_s19 + $0x40] sm:$0xff] }
 0x152   : > { %v1015_v47 = vadd.f32 %v1014_v43, %v3981_v17  ;;  %v1403_v54 = vmax.f32 %v961_v38, 0.0  ;;  %v1120_v53 = vpop.f32.mrf.mxu1  ;;  %v1067_v10 = vadd.f32 %v1066_v48, %v4005_v5 }
 0x153   : > { %v1121_v11 = vadd.f32 %v1120_v53, %v4012_v8 }
 0x154   : > { %v1404_v16 = vmax.f32 %v1015_v47, 0.0  ;;  %1173 = vmatmul.bf16.gmra.mxu2 %v3592_v30  ;;  %1276 = vmatmul.bf16.gmra.mxu0 %v3835_v42  ;;  %v4164_v1 = vpack.c.bf16 %v1403_v54, %v1394_v45  ;;  %v1396_v51 = vmax.f32 %v1067_v10, 0.0 }
 0x155   : > { %2153 = vmatmul.bf16.gmra.mxu1 %v3996_v22  ;;  %v1397_v21 = vmax.f32 %v1121_v11, 0.0 }
 0x156   : > { %1227 = vmatmul.bf16.gmra.mxu3 %v3592_v30  ;;  %v4170_v9 = vpack.c.bf16 %v1404_v16, %v1395_v46 }
 0x157   : > { %v963_v63 = vpop.f32.mrf.mxu2 }
 0x158   : > { %v964_v43 = vadd.f32 %v963_v63, %v3984_v33  ;;  %v3486_v63 = vld [vmem:[%s4715_s3 + $0xc8] sm:$0xff] }
 0x159   : > { %v1017_v32 = vpop.f32.mrf.mxu3  ;;  %v1068_v42 = vpop.f32.mrf.mxu0  ;;  %2293 = vmatpush.bf16.msrb.mxu0 %v3486_v63 }
 0x15a   : > { %v1069_v12 = vadd.f32 %v1068_v42, %v4005_v5  ;;  %v1122_v52 = vpop.f32.mrf.mxu1  ;;  %v1018_v36 = vadd.f32 %v1017_v32, %v3981_v17  ;;  %v1412_v14 = vmax.f32 %v964_v43, 0.0  ;;  %v3593_v42 = vld [vmem:[%s3789_s19 + $0x30] sm:$0xff]  ;;  %v3469_v43 = vld [vmem:[%s4715_s3 + $0x40] sm:$0xff] }
 0x15b   : > { %v1123_v22 = vadd.f32 %v1122_v52, %v4012_v8  ;;  %v3494_v52 = vld [vmem:[%s4715_s3 + $0x108] sm:$0xff]  ;;  %2186 = vmatpush.bf16.msrb.mxu2 %v3469_v43  ;;  %v3594_v43 = vld [vmem:[%s3789_s19 + $0x38] sm:$0xff] }
 0x15c   : > { %v1405_v20 = vmax.f32 %v1069_v12, 0.0  ;;  %v1413_v53 = vmax.f32 %v1018_v36, 0.0  ;;  %2347 = vmatpush.bf16.msrb.mxu1 %v3494_v52 }
 0x15d   : > { %v1406_v38 = vmax.f32 %v1123_v22, 0.0 }
 0x15e   : > { %v4181_v46 = vpack.c.bf16 %v1405_v20, %v1396_v51 }
 0x15f   : > { %v965_v47 = vpop.f32.mrf.mxu2  ;;  %v4183_v48 = vpack.c.bf16 %v1406_v38, %v1397_v21 }
 0x160   : > { %v966_v45 = vadd.f32 %v965_v47, %v3984_v33 }
 0x161   : > { %4722 = vst [vmem:[#allocation11_spill] sm:$0xff] %v4183_v48  ;;  %v1019_v54 = vpop.f32.mrf.mxu3  ;;  %v1071_v44 = vpop.f32.mrf.mxu0 }
 0x162   : > { %v1020_v16 = vadd.f32 %v1019_v54, %v3981_v17  ;;  %v1421_v10 = vmax.f32 %v966_v45, 0.0  ;;  %v1125_v32 = vpop.f32.mrf.mxu1  ;;  %v1072_v51 = vadd.f32 %v1071_v44, %v4005_v5  ;;  %v3477_v44 = vld [vmem:[%s4715_s3 + $0x80] sm:$0xff] }
 0x163   : > { %v1126_v21 = vadd.f32 %v1125_v32, %v4012_v8  ;;  %2240 = vmatpush.bf16.msrb.mxu3 %v3477_v44 }
 0x164   : > { %v1422_v11 = vmax.f32 %v1020_v16, 0.0  ;;  %1178 = vmatmul.bf16.gmra.mxu2 %v3593_v42  ;;  %1281 = vmatmul.bf16.gmra.mxu0 %v3592_v30  ;;  %v4191_v12 = vpack.c.bf16 %v1421_v10, %v1412_v14  ;;  %v1414_v47 = vmax.f32 %v1072_v51, 0.0 }
 0x165   : > { %2158 = vmatmul.bf16.gmra.mxu1 %v3894_v3  ;;  %v1415_v54 = vmax.f32 %v1126_v21, 0.0 }
 0x166   : > { %1232 = vmatmul.bf16.gmra.mxu3 %v3593_v42  ;;  %v4197_v22 = vpack.c.bf16 %v1422_v11, %v1413_v53 }
 0x167   : > { %v968_v13 = vpop.f32.mrf.mxu2 }
 0x168   : > { %v969_v14 = vadd.f32 %v968_v13, %v3984_v33 }
 0x169   : > { %v1022_v20 = vpop.f32.mrf.mxu3  ;;  %v1073_v30 = vpop.f32.mrf.mxu0 }
 0x16a   : > { %v1074_v36 = vadd.f32 %v1073_v30, %v4005_v5  ;;  %v1127_v38 = vpop.f32.mrf.mxu1  ;;  %v1023_v53 = vadd.f32 %v1022_v20, %v3981_v17  ;;  %v1430_v30 = vmax.f32 %v969_v14, 0.0 }
 0x16b   : > { %v1128_v3 = vadd.f32 %v1127_v38, %v4012_v8 }
 0x16c   : > { %v1423_v45 = vmax.f32 %v1074_v36, 0.0  ;;  %v1431_v51 = vmax.f32 %v1023_v53, 0.0 }
 0x16d   : > { %v1424_v16 = vmax.f32 %v1128_v3, 0.0 }
 0x16e   : > { %v4211_v10 = vpack.c.bf16 %v1423_v45, %v1414_v47  ;;  %v3485_v47 = vld [vmem:[%s4715_s3 + $0xc0] sm:$0xff] }
 0x16f   : > { %v970_v32 = vpop.f32.mrf.mxu2  ;;  %v4213_v11 = vpack.c.bf16 %v1424_v16, %v1415_v54  ;;  %v3493_v45 = vld [vmem:[%s4715_s3 + $0x100] sm:$0xff]  ;;  %2294 = vmatpush.bf16.msrb.mxu0 %v3485_v47 }
 0x170   : > { %v971_v63 = vadd.f32 %v970_v32, %v3984_v33  ;;  %2348 = vmatpush.bf16.msrb.mxu1 %v3493_v45 }
 0x171   : > { %4723 = vst [vmem:[#allocation12_spill] sm:$0xff] %v4213_v11  ;;  %v1024_v52 = vpop.f32.mrf.mxu3  ;;  %v1076_v21 = vpop.f32.mrf.mxu0 }
 0x172   : > { %v1025_v20 = vadd.f32 %v1024_v52, %v3981_v17  ;;  %v1439_v36 = vmax.f32 %v971_v63, 0.0  ;;  %v1130_v38 = vpop.f32.mrf.mxu1 }
 0x173   : > { %v1131_v44 = vadd.f32 %v1130_v38, %v4012_v8  ;;  %v3516_v38 = vld [vmem:[%s4715_s3 + $0x1b8] sm:$0xff] }
 0x174   : > { %v1440_v3 = vmax.f32 %v1025_v20, 0.0  ;;  %1183 = vmatmul.bf16.gmra.mxu2 %v3594_v43  ;;  %1286 = vmatmul.bf16.gmra.mxu0 %v3593_v42  ;;  %v4218_v13 = vpack.c.bf16 %v1439_v36, %v1430_v30  ;;  %v1077_v42 = vadd.f32 %v1076_v21, %v4005_v5  ;;  %v3508_v21 = vld [vmem:[%s4715_s3 + $0x178] sm:$0xff] }
 0x175   : > { %2163 = vmatmul.bf16.gmra.mxu1 %v3914_v50  ;;  %v1433_v30 = vmax.f32 %v1131_v44, 0.0  ;;  %2395 = vmatpush.bf16.msra.mxu2 %v3508_v21 }
 0x176   : > { %1237 = vmatmul.bf16.gmra.mxu3 %v3594_v43  ;;  %v4227_v54 = vpack.c.bf16 %v1440_v3, %v1431_v51  ;;  %v1432_v52 = vmax.f32 %v1077_v42, 0.0 }
 0x177   : > { %v973_v53 = vpop.f32.mrf.mxu2  ;;  %2449 = vmatpush.bf16.msra.mxu3 %v3516_v38 }
 0x178   : > { %v974_v3 = vadd.f32 %v973_v53, %v3984_v33 }
 0x179   : > { %v1027_v16 = vpop.f32.mrf.mxu3  ;;  %v1078_v14 = vpop.f32.mrf.mxu0 }
 0x17a   : > { %v1079_v50 = vadd.f32 %v1078_v14, %v4005_v5  ;;  %v1132_v32 = vpop.f32.mrf.mxu1  ;;  %v1028_v51 = vadd.f32 %v1027_v16, %v3981_v17 }
 0x17b   : > { %v1133_v63 = vadd.f32 %v1132_v32, %v4012_v8  ;;  %v1448_v32 = vmax.f32 %v974_v3, 0.0  ;;  %v3596_v3 = vld [vmem:[#allocation4] sm:$0xff] }
 0x17c   : > { %v1441_v20 = vmax.f32 %v1079_v50, 0.0  ;;  %v1449_v53 = vmax.f32 %v1028_v51, 0.0  ;;  %v4263_v38 = vperm.slane %v3596_v3, 6 }
 0x17d   : > { %v1442_v36 = vmax.f32 %v1133_v63, 0.0 }
 0x17e   : > { %v4241_v47 = vpack.c.bf16 %v1441_v20, %v1432_v52 }
 0x17f   : > { %v975_v45 = vpop.f32.mrf.mxu2  ;;  %v4243_v42 = vpack.c.bf16 %v1442_v36, %v1433_v30 }
 0x180   : > { %v976_v44 = vadd.f32 %v975_v45, %v3984_v33  ;;  %v3524_v33 = vld [vmem:[%s4715_s3 + $0x1f8] sm:$0xff] }
 0x181   : > { %4724 = vst [vmem:[#allocation13_spill] sm:$0xff] %v4243_v42  ;;  %v1029_v16 = vpop.f32.mrf.mxu3  ;;  %v1081_v50 = vpop.f32.mrf.mxu0  ;;  %2503 = vmatpush.bf16.msra.mxu0 %v3524_v33 }
 0x182   : > { %v1030_v14 = vadd.f32 %v1029_v16, %v3981_v17  ;;  %v1457_v63 = vmax.f32 %v976_v44, 0.0  ;;  %v1135_v11 = vpop.f32.mrf.mxu1  ;;  %v3532_v17 = vld [vmem:[%s4715_s3 + $0x238] sm:$0xff] }
 0x183   : > { %2557 = vmatpush.bf16.msra.mxu1 %v3532_v17  ;;  %v1136_v36 = vadd.f32 %v1135_v11, %v4012_v8  ;;  %v3515_v11 = vld [vmem:[%s4715_s3 + $0x1b0] sm:$0xff] }
 0x184   : > { %v1458_v48 = vmax.f32 %v1030_v14, 0.0  ;;  %1188 = vmatmul.bf16.gmra.mxu2 %v3595_v37  ;;  %1291 = vmatmul.bf16.gmra.mxu0 %v3594_v43  ;;  %v4248_v52 = vpack.c.bf16 %v1457_v63, %v1448_v32  ;;  %v1082_v43 = vadd.f32 %v1081_v50, %v4005_v5  ;;  %v3507_v14 = vld [vmem:[%s4715_s3 + $0x170] sm:$0xff] }
 0x185   : > { %2168 = vmatmul.bf16.gmra.mxu1 %v3937_v35  ;;  %v4261_v35 = vperm.slane %v3596_v3, 7  ;;  %v1451_v50 = vmax.f32 %v1136_v36, 0.0  ;;  %2396 = vmatpush.bf16.msra.mxu2 %v3507_v14  ;;  %v4285_v14 = vld [vmem:[#allocation4 + $0x8] ss:$0 sm:$0xff] }
 0x186   : > { %1242 = vmatmul.bf16.gmra.mxu3 %v3595_v37  ;;  %v4257_v20 = vpack.c.bf16 %v1458_v48, %v1449_v53  ;;  %v1450_v16 = vmax.f32 %v1082_v43, 0.0 }
 0x187   : > { %v1149_v30 = vpop.f32.mrf.mxu2  ;;  %2450 = vmatpush.bf16.msra.mxu3 %v3515_v11 }
 0x188   : > { %v1150_v33 = vadd.f32 %v1149_v30, %v4263_v38 }
 0x189   : > { %v1203_v51 = vpop.f32.mrf.mxu3  ;;  %v1083_v21 = vpop.f32.mrf.mxu0 }
 0x18a   : > { %v1084_v45 = vadd.f32 %v1083_v21, %v4005_v5  ;;  %v1137_v44 = vpop.f32.mrf.mxu1  ;;  %v1204_v32 = vadd.f32 %v1203_v51, %v4261_v35  ;;  %v1308_v36 = vmax.f32 %v1150_v33, 0.0  ;;  %v3506_v33 = vld [vmem:[%s4715_s3 + $0x168] sm:$0xff] }
 0x18b   : > { %v1138_v48 = vadd.f32 %v1137_v44, %v4012_v8  ;;  %2397 = vmatpush.bf16.msra.mxu2 %v3506_v33 }
 0x18c   : > { %v1459_v53 = vmax.f32 %v1084_v45, 0.0  ;;  %v1309_v21 = vmax.f32 %v1204_v32, 0.0 }
 0x18d   : > { %v1460_v63 = vmax.f32 %v1138_v48, 0.0 }
 0x18e   : > { %v4275_v5 = vpack.c.bf16 %v1459_v53, %v1450_v16  ;;  %v3523_v53 = vld [vmem:[%s4715_s3 + $0x1f0] sm:$0xff] }
 0x18f   : > { %v1151_v8 = vpop.f32.mrf.mxu2  ;;  %v4277_v17 = vpack.c.bf16 %v1460_v63, %v1451_v50  ;;  %2504 = vmatpush.bf16.msra.mxu0 %v3523_v53 }
 0x190   : > { %v1152_v43 = vadd.f32 %v1151_v8, %v4263_v38 }
 0x191   : > { %4725 = vst [vmem:[#allocation14_spill] sm:$0xff] %v4277_v17  ;;  %v1205_v3 = vpop.f32.mrf.mxu3  ;;  %v1257_v44 = vpop.f32.mrf.mxu0 }
 0x192   : > { %v1206_v45 = vadd.f32 %v1205_v3, %v4261_v35  ;;  %v1317_v42 = vmax.f32 %v1152_v43, 0.0  ;;  %v4281_v51 = vpop.f32.mrf.mxu1 }
 0x194   : > { %v1318_v48 = vmax.f32 %v1206_v45, 0.0  ;;  %v4283_v30 = vpack.c.bf16 %v1317_v42, %v1308_v36  ;;  %1296 = vmatmul.bf16.gmra.mxu0 %v3595_v37  ;;  %2187 = vmatmul.bf16.vlgmr.msrb.gmra.mxu2 %v3885_v55  ;;  %v1258_v42 = vadd.f32 %v4285_v14, %v1257_v44  ;;  %v3531_v55 = vld [vmem:[%s4715_s3 + $0x230] sm:$0xff] }
 0x195   : > { %2173 = vmatmul.bf16.gmra.mxu1 %v3966_v15 }
 0x196   : > { %v4288_v16 = vpack.c.bf16 %v1318_v48, %v1309_v21  ;;  %2241 = vmatmul.bf16.vlgmr.msrb.gmra.mxu3 %v4002_v4  ;;  %v1310_v15 = vmax.f32 %v1258_v42, 0.0  ;;  %2558 = vmatpush.bf16.msra.mxu1 %v3531_v55 }
 0x197   : > { %v1154_v11 = vpop.f32.mrf.mxu2 }
 0x198   : > { %v1155_v43 = vadd.f32 %v1154_v11, %v4263_v38  ;;  %v3514_v11 = vld [vmem:[%s4715_s3 + $0x1a8] sm:$0xff] }
 0x199   : > { %v1208_v50 = vpop.f32.mrf.mxu3  ;;  %v1259_v32 = vpop.f32.mrf.mxu0  ;;  %2451 = vmatpush.bf16.msra.mxu3 %v3514_v11 }
 0x19a   : > { %v1260_v37 = vadd.f32 %v4285_v14, %v1259_v32  ;;  %v4297_v63 = vpop.f32.mrf.mxu1  ;;  %v1209_v8 = vadd.f32 %v1208_v50, %v4261_v35  ;;  %v1326_v42 = vmax.f32 %v1155_v43, 0.0 }
 0x19c   : > { %v1319_v4 = vmax.f32 %v1260_v37, 0.0  ;;  %v1327_v36 = vmax.f32 %v1209_v8, 0.0 }
 0x19e   : > { %v4307_v3 = vpack.c.bf16 %v1319_v4, %v1310_v15 }
 0x19f   : > { %v1156_v21 = vpop.f32.mrf.mxu2 }
 0x1a0   : > { %v1157_v45 = vadd.f32 %v1156_v21, %v4263_v38 }
 0x1a1   : > { %v1210_v44 = vpop.f32.mrf.mxu3  ;;  %v1262_v53 = vpop.f32.mrf.mxu0 }
 0x1a2   : > { %v1211_v48 = vadd.f32 %v1210_v44, %v4261_v35  ;;  %v1335_v32 = vmax.f32 %v1157_v45, 0.0  ;;  %v4311_v37 = vpop.f32.mrf.mxu1  ;;  %v1263_v4 = vadd.f32 %v4285_v14, %v1262_v53 }
 0x1a4   : > { %v1336_v17 = vmax.f32 %v1211_v48, 0.0  ;;  %2192 = vmatmul.bf16.gmra.mxu2 %v3908_v34  ;;  %2295 = vmatmul.bf16.vlgmr.msrb.gmra.mxu0 %v4009_v7  ;;  %v4318_v50 = vpack.c.bf16 %v1335_v32, %v1326_v42  ;;  %v3522_v34 = vld [vmem:[%s4715_s3 + $0x1e8] sm:$0xff]  ;;  %v1328_v7 = vmax.f32 %v1263_v4, 0.0 }
 0x1a5   : > { %2349 = vmatmul.bf16.vlgmr.msrb.gmra.mxu1 %v4031_v40  ;;  %v3530_v40 = vld [vmem:[%s4715_s3 + $0x228] sm:$0xff]  ;;  %2505 = vmatpush.bf16.msra.mxu0 %v3522_v34 }
 0x1a6   : > { %2246 = vmatmul.bf16.gmra.mxu3 %v4042_v61  ;;  %v4322_v55 = vpack.c.bf16 %v1336_v17, %v1327_v36  ;;  %2559 = vmatpush.bf16.msra.mxu1 %v3530_v40 }
 0x1a7   : > { %v1159_v15 = vpop.f32.mrf.mxu2 }
 0x1a8   : > { %v1160_v45 = vadd.f32 %v1159_v15, %v4263_v38  ;;  %v3505_v15 = vld [vmem:[%s4715_s3 + $0x160] sm:$0xff] }
 0x1a9   : > { %v1213_v33 = vpop.f32.mrf.mxu3  ;;  %v1264_v8 = vpop.f32.mrf.mxu0  ;;  %2398 = vmatpush.bf16.msra.mxu2 %v3505_v15 }
 0x1aa   : > { %v1265_v43 = vadd.f32 %v4285_v14, %v1264_v8  ;;  %v4326_v21 = vpop.f32.mrf.mxu1  ;;  %v1214_v17 = vadd.f32 %v1213_v33, %v4261_v35  ;;  %v1344_v4 = vmax.f32 %v1160_v45, 0.0  ;;  %v3513_v33 = vld [vmem:[%s4715_s3 + $0x1a0] sm:$0xff] }
 0x1ab   : > { %2452 = vmatpush.bf16.msra.mxu3 %v3513_v33 }
 0x1ac   : > { %v1337_v61 = vmax.f32 %v1265_v43, 0.0  ;;  %v1345_v42 = vmax.f32 %v1214_v17, 0.0 }
 0x1ae   : > { %v4336_v44 = vpack.c.bf16 %v1337_v61, %v1328_v7 }
 0x1af   : > { %v1161_v36 = vpop.f32.mrf.mxu2 }
 0x1b0   : > { %v1162_v48 = vadd.f32 %v1161_v36, %v4263_v38 }
 0x1b1   : > { %v1215_v53 = vpop.f32.mrf.mxu3  ;;  %v1267_v11 = vpop.f32.mrf.mxu0 }
 0x1b2   : > { %v1216_v32 = vadd.f32 %v1215_v53, %v4261_v35  ;;  %v1353_v8 = vmax.f32 %v1162_v48, 0.0  ;;  %v4340_v43 = vpop.f32.mrf.mxu1  ;;  %v1268_v40 = vadd.f32 %v4285_v14, %v1267_v11 }
 0x1b4   : > { %v1354_v28 = vmax.f32 %v1216_v32, 0.0  ;;  %2197 = vmatmul.bf16.gmra.mxu2 %v3931_v18  ;;  %2300 = vmatmul.bf16.gmra.mxu0 %v4046_v62  ;;  %v4350_v34 = vpack.c.bf16 %v1353_v8, %v1344_v4  ;;  %v1346_v36 = vmax.f32 %v1268_v40, 0.0 }
 0x1b5   : > { %2354 = vmatmul.bf16.gmra.mxu1 %v4060_v27  ;;  %v3529_v27 = vld [vmem:[%s4715_s3 + $0x220] sm:$0xff] }
 0x1b6   : > { %2251 = vmatmul.bf16.gmra.mxu3 %v4071_v57  ;;  %v4354_v7 = vpack.c.bf16 %v1354_v28, %v1345_v42  ;;  %v3521_v57 = vld [vmem:[%s4715_s3 + $0x1e0] sm:$0xff]  ;;  %2560 = vmatpush.bf16.msra.mxu1 %v3529_v27 }
 0x1b7   : > { %v1164_v61 = vpop.f32.mrf.mxu2  ;;  %2506 = vmatpush.bf16.msra.mxu0 %v3521_v57 }
 0x1b8   : > { %4726 = vst [vmem:[#allocation15_spill] sm:$0xff] %v4354_v7  ;;  %v1165_v53 = vadd.f32 %v1164_v61, %v4263_v38  ;;  %v3504_v61 = vld [vmem:[%s4715_s3 + $0x158] sm:$0xff] }
 0x1b9   : > { %v1218_v18 = vpop.f32.mrf.mxu3  ;;  %v1269_v17 = vpop.f32.mrf.mxu0  ;;  %2399 = vmatpush.bf16.msra.mxu2 %v3504_v61 }
 0x1ba   : > { %v1270_v62 = vadd.f32 %v4285_v14, %v1269_v17  ;;  %v4358_v45 = vpop.f32.mrf.mxu1  ;;  %v1219_v28 = vadd.f32 %v1218_v18, %v4261_v35  ;;  %v1362_v40 = vmax.f32 %v1165_v53, 0.0 }
 0x1bc   : > { %v1355_v48 = vmax.f32 %v1270_v62, 0.0  ;;  %v1363_v8 = vmax.f32 %v1219_v28, 0.0 }
 0x1be   : > { %v4368_v42 = vpack.c.bf16 %v1355_v48, %v1346_v36  ;;  %v3512_v36 = vld [vmem:[%s4715_s3 + $0x198] sm:$0xff] }
 0x1bf   : > { %v1166_v32 = vpop.f32.mrf.mxu2  ;;  %2453 = vmatpush.bf16.msra.mxu3 %v3512_v36 }
 0x1c0   : > { %v1167_v11 = vadd.f32 %v1166_v32, %v4263_v38 }
 0x1c1   : > { %v1220_v4 = vpop.f32.mrf.mxu3  ;;  %v1272_v33 = vpop.f32.mrf.mxu0 }
 0x1c2   : > { %v1221_v15 = vadd.f32 %v1220_v4, %v4261_v35  ;;  %v1371_v17 = vmax.f32 %v1167_v11, 0.0  ;;  %v4372_v62 = vpop.f32.mrf.mxu1 }
 0x1c4   : > { %v1372_v7 = vmax.f32 %v1221_v15, 0.0  ;;  %2202 = vmatmul.bf16.gmra.mxu2 %v3960_v2  ;;  %2305 = vmatmul.bf16.gmra.mxu0 %v4078_v59  ;;  %v4379_v18 = vpack.c.bf16 %v1371_v17, %v1362_v40  ;;  %v1273_v59 = vadd.f32 %v4285_v14, %v1272_v33 }
 0x1c5   : > { %2359 = vmatmul.bf16.gmra.mxu1 %v4092_v25  ;;  %v3520_v25 = vld [vmem:[%s4715_s3 + $0x1d8] sm:$0xff] }
 0x1c6   : > { %2256 = vmatmul.bf16.gmra.mxu3 %v4100_v49  ;;  %v4386_v48 = vpack.c.bf16 %v1372_v7, %v1363_v8  ;;  %v1364_v49 = vmax.f32 %v1273_v59, 0.0  ;;  %v3528_v7 = vld [vmem:[%s4715_s3 + $0x218] sm:$0xff]  ;;  %2507 = vmatpush.bf16.msra.mxu0 %v3520_v25 }
 0x1c7   : > { %v1169_v2 = vpop.f32.mrf.mxu2  ;;  %2561 = vmatpush.bf16.msra.mxu1 %v3528_v7 }
 0x1c8   : > { %4727 = vst [vmem:[#allocation16_spill] sm:$0xff] %v4386_v48  ;;  %v1170_v4 = vadd.f32 %v1169_v2, %v4263_v38 }
 0x1c9   : > { %v1223_v57 = vpop.f32.mrf.mxu3  ;;  %v1274_v27 = vpop.f32.mrf.mxu0 }
 0x1ca   : > { %v1275_v28 = vadd.f32 %v4285_v14, %v1274_v27  ;;  %v4390_v53 = vpop.f32.mrf.mxu1  ;;  %v1224_v11 = vadd.f32 %v1223_v57, %v4261_v35  ;;  %v1380_v59 = vmax.f32 %v1170_v4, 0.0  ;;  %v3503_v57 = vld [vmem:[%s4715_s3 + $0x150] sm:$0xff] }
 0x1cb   : > { %2400 = vmatpush.bf16.msra.mxu2 %v3503_v57 }
 0x1cc   : > { %v1373_v32 = vmax.f32 %v1275_v28, 0.0  ;;  %v1381_v17 = vmax.f32 %v1224_v11, 0.0 }
 0x1ce   : > { %v4400_v8 = vpack.c.bf16 %v1373_v32, %v1364_v49  ;;  %v3511_v49 = vld [vmem:[%s4715_s3 + $0x190] sm:$0xff] }
 0x1cf   : > { %v1171_v15 = vpop.f32.mrf.mxu2  ;;  %2454 = vmatpush.bf16.msra.mxu3 %v3511_v49 }
 0x1d0   : > { %v1172_v33 = vadd.f32 %v1171_v15, %v4263_v38  ;;  %v3519_v15 = vld [vmem:[%s4715_s3 + $0x1d0] sm:$0xff] }
 0x1d1   : > { %v1225_v40 = vpop.f32.mrf.mxu3  ;;  %v1277_v36 = vpop.f32.mrf.mxu0  ;;  %2508 = vmatpush.bf16.msra.mxu0 %v3519_v15 }
 0x1d2   : > { %v1226_v61 = vadd.f32 %v1225_v40, %v4261_v35  ;;  %v1389_v27 = vmax.f32 %v1172_v33, 0.0  ;;  %v4404_v28 = vpop.f32.mrf.mxu1 }
 0x1d4   : > { %v1390_v48 = vmax.f32 %v1226_v61, 0.0  ;;  %2207 = vmatmul.bf16.gmra.mxu2 %v3998_v23  ;;  %2310 = vmatmul.bf16.gmra.mxu0 %v4110_v60  ;;  %v4408_v2 = vpack.c.bf16 %v1389_v27, %v1380_v59  ;;  %v1278_v23 = vadd.f32 %v4285_v14, %v1277_v36 }
 0x1d5   : > { %2364 = vmatmul.bf16.gmra.mxu1 %v4124_v19 }
 0x1d6   : > { %2261 = vmatmul.bf16.gmra.mxu3 %v4132_v58  ;;  %v4418_v32 = vpack.c.bf16 %v1390_v48, %v1381_v17  ;;  %v1382_v11 = vmax.f32 %v1278_v23, 0.0 }
 0x1d7   : > { %v1174_v25 = vpop.f32.mrf.mxu2 }
 0x1d8   : > { %v1175_v33 = vadd.f32 %v1174_v25, %v4263_v38  ;;  %v3527_v25 = vld [vmem:[%s4715_s3 + $0x210] sm:$0xff] }
 0x1d9   : > { %v1228_v60 = vpop.f32.mrf.mxu3  ;;  %v1279_v7 = vpop.f32.mrf.mxu0  ;;  %2562 = vmatpush.bf16.msra.mxu1 %v3527_v25 }
 0x1da   : > { %v1280_v58 = vadd.f32 %v4285_v14, %v1279_v7  ;;  %v4422_v19 = vpop.f32.mrf.mxu1  ;;  %v1229_v48 = vadd.f32 %v1228_v60, %v4261_v35  ;;  %v1398_v49 = vmax.f32 %v1175_v33, 0.0 }
 0x1dc   : > { %v1391_v4 = vmax.f32 %v1280_v58, 0.0  ;;  %v1399_v59 = vmax.f32 %v1229_v48, 0.0 }
 0x1de   : > { %v4429_v40 = vpack.c.bf16 %v1391_v4, %v1382_v11  ;;  %v3502_v11 = vld [vmem:[%s4715_s3 + $0x148] sm:$0xff] }
 0x1df   : > { %v1176_v17 = vpop.f32.mrf.mxu2  ;;  %2401 = vmatpush.bf16.msra.mxu2 %v3502_v11 }
 0x1e0   : > { %4728 = vst [vmem:[#allocation17_spill] sm:$0xff] %v4429_v40  ;;  %v1177_v61 = vadd.f32 %v1176_v17, %v4263_v38 }
 0x1e1   : > { %v1230_v36 = vpop.f32.mrf.mxu3  ;;  %v1282_v57 = vpop.f32.mrf.mxu0 }
 0x1e2   : > { %v1231_v27 = vadd.f32 %v1230_v36, %v4261_v35  ;;  %v1407_v23 = vmax.f32 %v1177_v61, 0.0  ;;  %v4433_v7 = vpop.f32.mrf.mxu1  ;;  %v1283_v48 = vadd.f32 %v4285_v14, %v1282_v57 }
 0x1e4   : > { %v1408_v58 = vmax.f32 %v1231_v27, 0.0  ;;  %2212 = vmatmul.bf16.gmra.mxu2 %v3898_v6  ;;  %2315 = vmatmul.bf16.gmra.mxu0 %v4142_v0  ;;  %v4440_v60 = vpack.c.bf16 %v1407_v23, %v1398_v49 }
 0x1e5   : > { %2369 = vmatmul.bf16.gmra.mxu1 %v4153_v31  ;;  %v3510_v31 = vld [vmem:[%s4715_s3 + $0x188] sm:$0xff] }
 0x1e6   : > { %2266 = vmatmul.bf16.gmra.mxu3 %v4164_v1  ;;  %v4447_v4 = vpack.c.bf16 %v1408_v58, %v1399_v59  ;;  %v1400_v1 = vmax.f32 %v1283_v48, 0.0 }
 0x1e7   : > { %v1179_v15 = vpop.f32.mrf.mxu2  ;;  %2455 = vmatpush.bf16.msra.mxu3 %v3510_v31 }
 0x1e8   : > { %4729 = vst [vmem:[#allocation18_spill] sm:$0xff] %v4447_v4  ;;  %v1180_v59 = vadd.f32 %v1179_v15, %v4263_v38  ;;  %v3526_v15 = vld [vmem:[%s4715_s3 + $0x208] sm:$0xff] }
 0x1e9   : > { %v1233_v6 = vpop.f32.mrf.mxu3  ;;  %v1284_v33 = vpop.f32.mrf.mxu0  ;;  %2563 = vmatpush.bf16.msra.mxu1 %v3526_v15 }
 0x1ea   : > { %v1285_v0 = vadd.f32 %v4285_v14, %v1284_v33  ;;  %v4451_v17 = vpop.f32.mrf.mxu1  ;;  %v1234_v36 = vadd.f32 %v1233_v6, %v4261_v35  ;;  %v1416_v33 = vmax.f32 %v1180_v59, 0.0  ;;  %v3518_v6 = vld [vmem:[%s4715_s3 + $0x1c8] sm:$0xff] }
 0x1eb   : > { %2509 = vmatpush.bf16.msra.mxu0 %v3518_v6 }
 0x1ec   : > { %v1409_v61 = vmax.f32 %v1285_v0, 0.0  ;;  %v1417_v58 = vmax.f32 %v1234_v36, 0.0 }
 0x1ee   : > { %v4458_v27 = vpack.c.bf16 %v1409_v61, %v1400_v1 }
 0x1ef   : > { %v1181_v57 = vpop.f32.mrf.mxu2 }
 0x1f0   : > { %v1182_v49 = vadd.f32 %v1181_v57, %v4263_v38 }
 0x1f1   : > { %v1235_v23 = vpop.f32.mrf.mxu3  ;;  %v1287_v11 = vpop.f32.mrf.mxu0 }
 0x1f2   : > { %v1236_v25 = vadd.f32 %v1235_v23, %v4261_v35  ;;  %v1425_v4 = vmax.f32 %v1182_v49, 0.0  ;;  %v4462_v40 = vpop.f32.mrf.mxu1  ;;  %v1288_v61 = vadd.f32 %v4285_v14, %v1287_v11 }
 0x1f4   : > { %v1426_v48 = vmax.f32 %v1236_v25, 0.0  ;;  %2217 = vmatmul.bf16.gmra.mxu2 %v3921_v56  ;;  %2320 = vmatmul.bf16.gmra.mxu0 %v4170_v9  ;;  %v4472_v0 = vpack.c.bf16 %v1425_v4, %v1416_v33  ;;  %v3501_v4 = vld [vmem:[%s4715_s3 + $0x140] sm:$0xff] }
 0x1f5   : > { %2374 = vmatmul.bf16.gmra.mxu1 %v4181_v46  ;;  %2402 = vmatpush.bf16.msra.mxu2 %v3501_v4  ;;  %v3509_v46 = vld [vmem:[%s4715_s3 + $0x180] sm:$0xff] }
 0x1f6   : > { %2271 = vmatmul.bf16.gmra.mxu3 %v4191_v12  ;;  %v4476_v31 = vpack.c.bf16 %v1426_v48, %v1417_v58  ;;  %v1418_v12 = vmax.f32 %v1288_v61, 0.0 }
 0x1f7   : > { %v1184_v1 = vpop.f32.mrf.mxu2  ;;  %2456 = vmatpush.bf16.msra.mxu3 %v3509_v46 }
 0x1f8   : > { %v1185_v23 = vadd.f32 %v1184_v1, %v4263_v38  ;;  %v3517_v1 = vld [vmem:[%s4715_s3 + $0x1c0] sm:$0xff] }
 0x1f9   : > { %v1238_v56 = vpop.f32.mrf.mxu3  ;;  %v1289_v36 = vpop.f32.mrf.mxu0  ;;  %2510 = vmatpush.bf16.msra.mxu0 %v3517_v1 }
 0x1fa   : > { %v1290_v9 = vadd.f32 %v4285_v14, %v1289_v36  ;;  %v4480_v59 = vpop.f32.mrf.mxu1  ;;  %v1239_v49 = vadd.f32 %v1238_v56, %v4261_v35  ;;  %v1434_v61 = vmax.f32 %v1185_v23, 0.0 }
 0x1fc   : > { %v1427_v57 = vmax.f32 %v1290_v9, 0.0  ;;  %v1435_v48 = vmax.f32 %v1239_v49, 0.0 }
 0x1fe   : > { %v4490_v58 = vpack.c.bf16 %v1427_v57, %v1418_v12  ;;  %v3525_v12 = vld [vmem:[%s4715_s3 + $0x200] sm:$0xff] }
 0x1ff   : > { %v1186_v25 = vpop.f32.mrf.mxu2  ;;  %2564 = vmatpush.bf16.msra.mxu1 %v3525_v12  ;;  %v4520_v12 = vld [vmem:[#allocation6] ss:$0 sm:$0xff] }
 0x200   : > { %v1187_v11 = vadd.f32 %v1186_v25, %v4263_v38 }
 0x201   : > { %v1240_v33 = vpop.f32.mrf.mxu3  ;;  %v1292_v15 = vpop.f32.mrf.mxu0 }
 0x202   : > { %v1241_v6 = vadd.f32 %v1240_v33, %v4261_v35  ;;  %v1443_v36 = vmax.f32 %v1187_v11, 0.0  ;;  %v4494_v9 = vpop.f32.mrf.mxu1 }
 0x204   : > { %v1444_v4 = vmax.f32 %v1241_v6, 0.0  ;;  %2222 = vmatmul.bf16.gmra.mxu2 %v3944_v39  ;;  %2325 = vmatmul.bf16.gmra.mxu0 %v4197_v22  ;;  %v4501_v56 = vpack.c.bf16 %v1443_v36, %v1434_v61  ;;  %v1293_v22 = vadd.f32 %v4285_v14, %v1292_v15 }
 0x205   : > { %2379 = vmatmul.bf16.gmra.mxu1 %v4211_v10 }
 0x206   : > { %2276 = vmatmul.bf16.gmra.mxu3 %v4218_v13  ;;  %v4508_v57 = vpack.c.bf16 %v1444_v4, %v1435_v48  ;;  %v1436_v13 = vmax.f32 %v1293_v22, 0.0 }
 0x207   : > { %v1189_v39 = vpop.f32.mrf.mxu2 }
 0x208   : > { %4730 = vst [vmem:[#allocation19_spill] sm:$0xff] %v4508_v57  ;;  %v1190_v33 = vadd.f32 %v1189_v39, %v4263_v38 }
 0x209   : > { %v1243_v46 = vpop.f32.mrf.mxu3  ;;  %v1294_v49 = vpop.f32.mrf.mxu0 }
 0x20a   : > { %v1295_v23 = vadd.f32 %v4285_v14, %v1294_v49  ;;  %v4512_v25 = vpop.f32.mrf.mxu1  ;;  %v1244_v10 = vadd.f32 %v1243_v46, %v4261_v35  ;;  %v1452_v49 = vmax.f32 %v1190_v33, 0.0 }
 0x20c   : > { %v1445_v11 = vmax.f32 %v1295_v23, 0.0  ;;  %v1453_v4 = vmax.f32 %v1244_v10, 0.0 }
 0x20e   : > { %v4516_v6 = vpack.c.bf16 %v1445_v11, %v1436_v13 }
 0x20f   : > { %v1191_v48 = vpop.f32.mrf.mxu2 }
 0x210   : > { %v1192_v61 = vadd.f32 %v1191_v48, %v4263_v38 }
 0x211   : > { %v1245_v36 = vpop.f32.mrf.mxu3  ;;  %v1297_v1 = vpop.f32.mrf.mxu0 }
 0x212   : > { %v1246_v15 = vadd.f32 %v1245_v36, %v4261_v35  ;;  %v1461_v57 = vmax.f32 %v1192_v61, 0.0  ;;  %v4522_v22 = vpop.f32.mrf.mxu1  ;;  %v2135_v35 = vadd.f32 %v4520_v12, %v4281_v51  ;;  %v1298_v13 = vadd.f32 %v4285_v14, %v1297_v1 }
 0x214   : > { %v1462_v23 = vmax.f32 %v1246_v15, 0.0  ;;  %2227 = vmatmul.bf16.gmra.mxu2 %v3976_v24  ;;  %2330 = vmatmul.bf16.gmra.mxu0 %v4227_v54  ;;  %v4526_v39 = vpack.c.bf16 %v1461_v57, %v1452_v49  ;;  %v1454_v48 = vmax.f32 %v1298_v13, 0.0 }
 0x215   : > { %2384 = vmatmul.bf16.gmra.mxu1 %v4241_v47  ;;  %v2137_v47 = vadd.f32 %v4520_v12, %v4297_v63 }
 0x216   : > { %2281 = vmatmul.bf16.gmra.mxu3 %v4248_v52  ;;  %v4530_v38 = vpack.c.bf16 %v1462_v23, %v1453_v4 }
 0x217   : > { %v2188_v46 = vpop.f32.mrf.mxu2 }
 0x218   : > { %v2189_v11 = vadd.f32 %v2188_v46, %v2135_v35 }
 0x219   : > { %v2242_v10 = vpop.f32.mrf.mxu3  ;;  %v1299_v33 = vpop.f32.mrf.mxu0 }
 0x21a   : > { %v2243_v24 = vadd.f32 %v2242_v10, %v2189_v11  ;;  %v1300_v54 = vadd.f32 %v4285_v14, %v1299_v33  ;;  %v4536_v57 = vpop.f32.mrf.mxu1  ;;  %v2140_v14 = vadd.f32 %v4520_v12, %v4311_v37 }
 0x21c   : > { %v1463_v52 = vmax.f32 %v1300_v54, 0.0 }
 0x21e   : > { %v4540_v61 = vpack.c.bf16 %v1463_v52, %v1454_v48 }
 0x21f   : > { %v2190_v36 = vpop.f32.mrf.mxu2 }
 0x220   : > { %v2191_v51 = vadd.f32 %v2190_v36, %v2137_v47 }
 0x221   : > { %v2244_v4 = vpop.f32.mrf.mxu3  ;;  %v2296_v15 = vpop.f32.mrf.mxu0 }
 0x222   : > { %v2245_v1 = vadd.f32 %v2244_v4, %v2191_v51  ;;  %v2297_v49 = vadd.f32 %v2296_v15, %v2243_v24  ;;  %v2350_v23 = vpop.f32.mrf.mxu1 }
 0x224   : > { %v4542_v35 = vadd.f32 %v2350_v23, %v2297_v49  ;;  %2335 = vmatmul.bf16.gmra.mxu0 %v4257_v20  ;;  %2403 = vmatmul.bf16.vlgmr.msra.gmra.mxu2 %v4033_v41  ;;  %v2142_v20 = vadd.f32 %v4520_v12, %v4326_v21  ;;  %v2145_v21 = vadd.f32 %v4520_v12, %v4340_v43 }
 0x225   : > { %2389 = vmatmul.bf16.gmra.mxu1 %v4275_v5 }
 0x226   : > { %2457 = vmatmul.bf16.vlgmr.msra.gmra.mxu3 %v4283_v30 }
 0x227   : > { %v2193_v63 = vpop.f32.mrf.mxu2 }
 0x228   : > { %v2194_v46 = vadd.f32 %v2193_v63, %v2140_v14 }
 0x229   : > { %v2247_v13 = vpop.f32.mrf.mxu3  ;;  %v2298_v11 = vpop.f32.mrf.mxu0 }
 0x22a   : > { %v2248_v10 = vadd.f32 %v2247_v13, %v2194_v46  ;;  %v2299_v33 = vadd.f32 %v2298_v11, %v2245_v1  ;;  %v2352_v24 = vpop.f32.mrf.mxu1 }
 0x22c   : > { %v4550_v54 = vadd.f32 %v2352_v24, %v2299_v33 }
 0x22f   : > { %v2195_v41 = vpop.f32.mrf.mxu2 }
 0x230   : > { %v2196_v48 = vadd.f32 %v2195_v41, %v2142_v20 }
 0x231   : > { %v2249_v5 = vpop.f32.mrf.mxu3  ;;  %v2301_v52 = vpop.f32.mrf.mxu0 }
 0x232   : > { %v2250_v30 = vadd.f32 %v2249_v5, %v2196_v48  ;;  %v2302_v47 = vadd.f32 %v2301_v52, %v2248_v10  ;;  %v2355_v36 = vpop.f32.mrf.mxu1 }
 0x234   : > { %v4554_v37 = vadd.f32 %v2355_v36, %v2302_v47  ;;  %2408 = vmatmul.bf16.gmra.mxu2 %v4062_v29  ;;  %2511 = vmatmul.bf16.vlgmr.msra.gmra.mxu0 %v4288_v16  ;;  %v2147_v29 = vadd.f32 %v4520_v12, %v4358_v45  ;;  %v2150_v45 = vadd.f32 %v4520_v12, %v4372_v62 }
 0x235   : > { %2565 = vmatmul.bf16.vlgmr.msra.gmra.mxu1 %v4307_v3 }
 0x236   : > { %2462 = vmatmul.bf16.gmra.mxu3 %v4318_v50 }
 0x237   : > { %v2198_v51 = vpop.f32.mrf.mxu2 }
 0x238   : > { %v2199_v4 = vadd.f32 %v2198_v51, %v2145_v21 }
 0x239   : > { %v2252_v15 = vpop.f32.mrf.mxu3  ;;  %v2303_v1 = vpop.f32.mrf.mxu0 }
 0x23a   : > { %v2253_v49 = vadd.f32 %v2252_v15, %v2199_v4  ;;  %v2304_v23 = vadd.f32 %v2303_v1, %v2250_v30  ;;  %v2357_v14 = vpop.f32.mrf.mxu1  ;;  %v4731_v4 = vld [vmem:[#allocation9_spill] sm:$0xff]  ;;  %v4732_v15 = vld [vmem:[#allocation15_spill] sm:$0xff] }
 0x23c   : > { %v4562_v63 = vadd.f32 %v2357_v14, %v2304_v23 }
 0x23f   : > { %v2200_v16 = vpop.f32.mrf.mxu2 }
 0x240   : > { %v2201_v46 = vadd.f32 %v2200_v16, %v2147_v29 }
 0x241   : > { %v2254_v50 = vpop.f32.mrf.mxu3  ;;  %v2306_v13 = vpop.f32.mrf.mxu0 }
 0x242   : > { %v2255_v3 = vadd.f32 %v2254_v50, %v2201_v46  ;;  %v2307_v11 = vadd.f32 %v2306_v13, %v2253_v49  ;;  %v2360_v10 = vpop.f32.mrf.mxu1  ;;  %v2157_v13 = vadd.f32 %v4520_v12, %v4422_v19  ;;  %v2160_v19 = vadd.f32 %v4520_v12, %v4433_v7 }
 0x244   : > { %v4566_v43 = vadd.f32 %v2360_v10, %v2307_v11  ;;  %2413 = vmatmul.bf16.gmra.mxu2 %v4094_v26  ;;  %2516 = vmatmul.bf16.gmra.mxu0 %v4322_v55  ;;  %v2152_v26 = vadd.f32 %v4520_v12, %v4390_v53  ;;  %v2155_v53 = vadd.f32 %v4520_v12, %v4404_v28 }
 0x245   : > { %2570 = vmatmul.bf16.gmra.mxu1 %v4336_v44 }
 0x246   : > { %2467 = vmatmul.bf16.gmra.mxu3 %v4350_v34 }
 0x247   : > { %v2203_v33 = vpop.f32.mrf.mxu2 }
 0x248   : > { %v2204_v24 = vadd.f32 %v2203_v33, %v2150_v45 }
 0x249   : > { %v2257_v20 = vpop.f32.mrf.mxu3  ;;  %v2308_v41 = vpop.f32.mrf.mxu0 }
 0x24a   : > { %v2258_v48 = vadd.f32 %v2257_v20, %v2204_v24  ;;  %v2309_v5 = vadd.f32 %v2308_v41, %v2255_v3  ;;  %v2362_v52 = vpop.f32.mrf.mxu1  ;;  %v4733_v24 = vld [vmem:[#allocation10_spill] sm:$0xff]  ;;  %v4734_v20 = vld [vmem:[#allocation16_spill] sm:$0xff] }
 0x24c   : > { %v4574_v30 = vadd.f32 %v2362_v52, %v2309_v5 }
 0x24f   : > { %v2205_v55 = vpop.f32.mrf.mxu2 }
 0x250   : > { %v2206_v47 = vadd.f32 %v2205_v55, %v2152_v26 }
 0x251   : > { %v2259_v34 = vpop.f32.mrf.mxu3  ;;  %v2311_v36 = vpop.f32.mrf.mxu0 }
 0x252   : > { %v2260_v44 = vadd.f32 %v2259_v34, %v2206_v47  ;;  %v2312_v21 = vadd.f32 %v2311_v36, %v2258_v48  ;;  %v2365_v51 = vpop.f32.mrf.mxu1  ;;  %v2162_v36 = vadd.f32 %v4520_v12, %v4451_v17  ;;  %v2165_v17 = vadd.f32 %v4520_v12, %v4462_v40 }
 0x254   : > { %v4578_v62 = vadd.f32 %v2365_v51, %v2312_v21  ;;  %2418 = vmatmul.bf16.gmra.mxu2 %v4731_v4  ;;  %2521 = vmatmul.bf16.gmra.mxu0 %v4732_v15 }
 0x255   : > { %2575 = vmatmul.bf16.gmra.mxu1 %v4368_v42 }
 0x256   : > { %2472 = vmatmul.bf16.gmra.mxu3 %v4379_v18 }
 0x257   : > { %v2208_v1 = vpop.f32.mrf.mxu2 }
 0x258   : > { %v2209_v49 = vadd.f32 %v2208_v1, %v2155_v53  ;;  %v4735_v53 = vld [vmem:[#allocation11_spill] sm:$0xff]  ;;  %v4736_v1 = vld [vmem:[#allocation17_spill] sm:$0xff] }
 0x259   : > { %v2262_v23 = vpop.f32.mrf.mxu3  ;;  %v2313_v14 = vpop.f32.mrf.mxu0 }
 0x25a   : > { %v2263_v29 = vadd.f32 %v2262_v23, %v2209_v49  ;;  %v2314_v16 = vadd.f32 %v2313_v14, %v2260_v44  ;;  %v2367_v46 = vpop.f32.mrf.mxu1 }
 0x25c   : > { %v4586_v50 = vadd.f32 %v2367_v46, %v2314_v16 }
 0x25f   : > { %v2210_v3 = vpop.f32.mrf.mxu2 }
 0x260   : > { %v2211_v11 = vadd.f32 %v2210_v3, %v2157_v13 }
 0x261   : > { %v2264_v18 = vpop.f32.mrf.mxu3  ;;  %v2316_v10 = vpop.f32.mrf.mxu0 }
 0x262   : > { %v2265_v42 = vadd.f32 %v2264_v18, %v2211_v11  ;;  %v2317_v45 = vadd.f32 %v2316_v10, %v2263_v29  ;;  %v2370_v33 = vpop.f32.mrf.mxu1  ;;  %v2167_v11 = vadd.f32 %v4520_v12, %v4480_v59  ;;  %v2170_v59 = vadd.f32 %v4520_v12, %v4494_v9 }
 0x264   : > { %v4590_v28 = vadd.f32 %v2370_v33, %v2317_v45  ;;  %2423 = vmatmul.bf16.gmra.mxu2 %v4733_v24  ;;  %2526 = vmatmul.bf16.gmra.mxu0 %v4734_v20  ;;  %v4737_v24 = vld [vmem:[#allocation12_spill] sm:$0xff]  ;;  %v4738_v20 = vld [vmem:[#allocation18_spill] sm:$0xff] }
 0x265   : > { %2580 = vmatmul.bf16.gmra.mxu1 %v4400_v8 }
 0x266   : > { %2477 = vmatmul.bf16.gmra.mxu3 %v4408_v2 }
 0x267   : > { %v2213_v41 = vpop.f32.mrf.mxu2 }
 0x268   : > { %v2214_v48 = vadd.f32 %v2213_v41, %v2160_v19 }
 0x269   : > { %v2267_v5 = vpop.f32.mrf.mxu3  ;;  %v2318_v52 = vpop.f32.mrf.mxu0 }
 0x26a   : > { %v2268_v26 = vadd.f32 %v2267_v5, %v2214_v48  ;;  %v2319_v55 = vadd.f32 %v2318_v52, %v2265_v42  ;;  %v2372_v47 = vpop.f32.mrf.mxu1 }
 0x26c   : > { %v4598_v34 = vadd.f32 %v2372_v47, %v2319_v55 }
 0x26f   : > { %v2215_v44 = vpop.f32.mrf.mxu2 }
 0x270   : > { %v2216_v21 = vadd.f32 %v2215_v44, %v2162_v36  ;;  %v2172_v36 = vadd.f32 %v4520_v12, %v4512_v25  ;;  %v2175_v25 = vadd.f32 %v4520_v12, %v4522_v22 }
 0x271   : > { %v2269_v2 = vpop.f32.mrf.mxu3  ;;  %v2321_v51 = vpop.f32.mrf.mxu0 }
 0x272   : > { %v2270_v8 = vadd.f32 %v2269_v2, %v2216_v21  ;;  %v2322_v4 = vadd.f32 %v2321_v51, %v2268_v26  ;;  %v2375_v15 = vpop.f32.mrf.mxu1 }
 0x274   : > { %v4602_v7 = vadd.f32 %v2375_v15, %v2322_v4  ;;  %2428 = vmatmul.bf16.gmra.mxu2 %v4735_v53  ;;  %2531 = vmatmul.bf16.gmra.mxu0 %v4418_v32  ;;  %v4739_v4 = vld [vmem:[#allocation13_spill] sm:$0xff] }
 0x275   : > { %2585 = vmatmul.bf16.gmra.mxu1 %v4736_v1 }
 0x276   : > { %2482 = vmatmul.bf16.gmra.mxu3 %v4440_v60 }
 0x277   : > { %v2218_v49 = vpop.f32.mrf.mxu2 }
 0x278   : > { %v2219_v23 = vadd.f32 %v2218_v49, %v2165_v17 }
 0x279   : > { %v2272_v14 = vpop.f32.mrf.mxu3  ;;  %v2323_v29 = vpop.f32.mrf.mxu0 }
 0x27a   : > { %v2273_v16 = vadd.f32 %v2272_v14, %v2219_v23  ;;  %v2324_v46 = vadd.f32 %v2323_v29, %v2270_v8  ;;  %v2377_v13 = vpop.f32.mrf.mxu1 }
 0x27c   : > { %v4610_v3 = vadd.f32 %v2377_v13, %v2324_v46 }
 0x27f   : > { %v2220_v32 = vpop.f32.mrf.mxu2 }
 0x280   : > { %v2221_v18 = vadd.f32 %v2220_v32, %v2167_v11 }
 0x281   : > { %v2274_v60 = vpop.f32.mrf.mxu3  ;;  %v2326_v10 = vpop.f32.mrf.mxu0 }
 0x282   : > { %v2275_v42 = vadd.f32 %v2274_v60, %v2221_v18  ;;  %v2327_v45 = vadd.f32 %v2326_v10, %v2273_v16  ;;  %v2380_v33 = vpop.f32.mrf.mxu1  ;;  %v2177_v16 = vadd.f32 %v4520_v12, %v4536_v57  ;;  %v4740_v18 = vld [vmem:[#allocation14_spill] sm:$0xff]  ;;  %v4741_v60 = vld [vmem:[#allocation19_spill] sm:$0xff] }
 0x284   : > { %v4614_v40 = vadd.f32 %v2380_v33, %v2327_v45  ;;  %2433 = vmatmul.bf16.gmra.mxu2 %v4737_v24  ;;  %2536 = vmatmul.bf16.gmra.mxu0 %v4738_v20 }
 0x285   : > { %2590 = vmatmul.bf16.gmra.mxu1 %v4458_v27 }
 0x286   : > { %2487 = vmatmul.bf16.gmra.mxu3 %v4472_v0 }
 0x287   : > { %v2223_v19 = vpop.f32.mrf.mxu2 }
 0x288   : > { %v2224_v41 = vadd.f32 %v2223_v19, %v2170_v59 }
 0x289   : > { %v2277_v48 = vpop.f32.mrf.mxu3  ;;  %v2328_v5 = vpop.f32.mrf.mxu0 }
 0x28a   : > { %v2278_v52 = vadd.f32 %v2277_v48, %v2224_v41  ;;  %v2329_v26 = vadd.f32 %v2328_v5, %v2275_v42  ;;  %v2382_v55 = vpop.f32.mrf.mxu1 }
 0x28c   : > { %v4622_v47 = vadd.f32 %v2382_v55, %v2329_v26 }
 0x28f   : > { %v2225_v44 = vpop.f32.mrf.mxu2 }
 0x290   : > { %v2226_v21 = vadd.f32 %v2225_v44, %v2172_v36 }
 0x291   : > { %v2279_v0 = vpop.f32.mrf.mxu3  ;;  %v2331_v2 = vpop.f32.mrf.mxu0 }
 0x292   : > { %v2280_v27 = vadd.f32 %v2279_v0, %v2226_v21  ;;  %v2332_v51 = vadd.f32 %v2331_v2, %v2278_v52  ;;  %v2385_v8 = vpop.f32.mrf.mxu1 }
 0x294   : > { %v4626_v9 = vadd.f32 %v2385_v8, %v2332_v51  ;;  %2438 = vmatmul.bf16.gmra.mxu2 %v4739_v4  ;;  %2541 = vmatmul.bf16.gmra.mxu0 %v4476_v31 }
 0x295   : > { %2595 = vmatmul.bf16.gmra.mxu1 %v4490_v58 }
 0x296   : > { %2492 = vmatmul.bf16.gmra.mxu3 %v4501_v56 }
 0x297   : > { %v2228_v15 = vpop.f32.mrf.mxu2 }
 0x298   : > { %v2229_v53 = vadd.f32 %v2228_v15, %v2175_v25 }
 0x299   : > { %v2282_v1 = vpop.f32.mrf.mxu3  ;;  %v2333_v17 = vpop.f32.mrf.mxu0 }
 0x29a   : > { %v2283_v49 = vadd.f32 %v2282_v1, %v2229_v53  ;;  %v2334_v23 = vadd.f32 %v2333_v17, %v2280_v27  ;;  %v2387_v14 = vpop.f32.mrf.mxu1 }
 0x29c   : > { %v4634_v29 = vadd.f32 %v2387_v14, %v2334_v23 }
 0x29f   : > { %v2230_v31 = vpop.f32.mrf.mxu2 }
 0x2a0   : > { %v2231_v46 = vadd.f32 %v2230_v31, %v2177_v16 }
 0x2a1   : > { %v2284_v56 = vpop.f32.mrf.mxu3  ;;  %v2336_v13 = vpop.f32.mrf.mxu0 }
 0x2a2   : > { %v2285_v58 = vadd.f32 %v2284_v56, %v2231_v46  ;;  %v2337_v11 = vadd.f32 %v2336_v13, %v2283_v49  ;;  %v2390_v32 = vpop.f32.mrf.mxu1 }
 0x2a4   : > { %v4638_v22 = vadd.f32 %v2390_v32, %v2337_v11  ;;  %2443 = vmatmul.bf16.gmra.mxu2 %v4740_v18  ;;  %2546 = vmatmul.bf16.gmra.mxu0 %v4741_v60 }
 0x2a5   : > { %2600 = vmatmul.bf16.gmra.mxu1 %v4516_v6 }
 0x2a6   : > { %2497 = vmatmul.bf16.gmra.mxu3 %v4526_v39 }
 0x2a7   : > { %v2404_v10 = vpop.f32.mrf.mxu2 }
 0x2a8   : > { %v2405_v33 = vadd.f32 %v2404_v10, %v4542_v35 }
 0x2a9   : > { %v2458_v42 = vpop.f32.mrf.mxu3  ;;  %v2338_v12 = vpop.f32.mrf.mxu0 }
 0x2aa   : > { %v2339_v57 = vadd.f32 %v2338_v12, %v2285_v58  ;;  %v2392_v45 = vpop.f32.mrf.mxu1  ;;  %v2459_v59 = vadd.f32 %v2458_v42, %v2405_v33 }
 0x2ac   : > { %v4645_v24 = vadd.f32 %v2392_v45, %v2339_v57 }
 0x2af   : > { %v2406_v20 = vpop.f32.mrf.mxu2 }
 0x2b0   : > { %v2407_v39 = vadd.f32 %v2406_v20, %v4550_v54 }
 0x2b1   : > { %v2460_v19 = vpop.f32.mrf.mxu3  ;;  %v2512_v41 = vpop.f32.mrf.mxu0 }
 0x2b2   : > { %v2513_v48 = vadd.f32 %v2512_v41, %v2459_v59  ;;  %v2566_v5 = vpop.f32.mrf.mxu1  ;;  %v2461_v26 = vadd.f32 %v2460_v19, %v2407_v39 }
 0x2b4   : > { %v2567_v52 = vadd.f32 %v2566_v5, %v2513_v48  ;;  %2551 = vmatmul.bf16.gmra.mxu0 %v4530_v38 }
 0x2b5   : > { %2605 = vmatmul.bf16.gmra.mxu1 %v4540_v61 }
 0x2b6   : > { %v2611_v6 = vmax.f32 %v2567_v52, 0.0 }
 0x2b7   : > { %v2409_v35 = vpop.f32.mrf.mxu2 }
 0x2b8   : > { %v2629_v55 = vpack.c.bf16 %v2611_v6, %v2611_v6  ;;  %v2410_v61 = vadd.f32 %v2409_v35, %v4554_v37 }
 0x2b9   : > { %v2463_v36 = vpop.f32.mrf.mxu3  ;;  %v2514_v54 = vpop.f32.mrf.mxu0 }
 0x2ba   : > { %2648 = vst.msk [vmem:[%s4655_s12] sm:$0xf] %vm2647_vm0, %v2629_v55  ;;  %v2515_v38 = vadd.f32 %v2514_v54, %v2461_v26  ;;  %v2568_v44 = vpop.f32.mrf.mxu1  ;;  %v2464_v27 = vadd.f32 %v2463_v36, %v2410_v61 }
 0x2bc   : > { %v2569_v21 = vadd.f32 %v2568_v44, %v2515_v38 }
 0x2be   : > { %v2612_v0 = vmax.f32 %v2569_v21, 0.0 }
 0x2bf   : > { %v2411_v2 = vpop.f32.mrf.mxu2 }
 0x2c0   : > { %v2630_v51 = vpack.c.bf16 %v2612_v0, %v2612_v0  ;;  %v2412_v53 = vadd.f32 %v2411_v2, %v4562_v63 }
 0x2c1   : > { %v2465_v8 = vpop.f32.mrf.mxu3  ;;  %v2517_v4 = vpop.f32.mrf.mxu0 }
 0x2c2   : > { %2649 = vst.msk [vmem:[%s4655_s12 + $0x4] sm:$0xf] %vm2647_vm0, %v2630_v51  ;;  %v2518_v25 = vadd.f32 %v2517_v4, %v2464_v27  ;;  %v2571_v15 = vpop.f32.mrf.mxu1  ;;  %v2466_v23 = vadd.f32 %v2465_v8, %v2412_v53 }
 0x2c4   : > { %v2572_v1 = vadd.f32 %v2571_v15, %v2518_v25 }
 0x2c6   : > { %v2613_v17 = vmax.f32 %v2572_v1, 0.0 }
 0x2c7   : > { %v2414_v49 = vpop.f32.mrf.mxu2 }
 0x2c8   : > { %v2631_v37 = vpack.c.bf16 %v2613_v17, %v2613_v17  ;;  %v2415_v56 = vadd.f32 %v2414_v49, %v4566_v43 }
 0x2c9   : > { %v2468_v14 = vpop.f32.mrf.mxu3  ;;  %v2519_v16 = vpop.f32.mrf.mxu0 }
 0x2ca   : > { %2650 = vst.msk [vmem:[%s4655_s12 + $0x8] sm:$0xf] %vm2647_vm0, %v2631_v37  ;;  %v2520_v31 = vadd.f32 %v2519_v16, %v2466_v23  ;;  %v2573_v46 = vpop.f32.mrf.mxu1  ;;  %v2469_v32 = vadd.f32 %v2468_v14, %v2415_v56 }
 0x2cc   : > { %v2574_v13 = vadd.f32 %v2573_v46, %v2520_v31 }
 0x2ce   : > { %v2614_v58 = vmax.f32 %v2574_v13, 0.0 }
 0x2cf   : > { %v2416_v11 = vpop.f32.mrf.mxu2 }
 0x2d0   : > { %v2632_v63 = vpack.c.bf16 %v2614_v58, %v2614_v58  ;;  %v2417_v12 = vadd.f32 %v2416_v11, %v4574_v30 }
 0x2d1   : > { %v2470_v18 = vpop.f32.mrf.mxu3  ;;  %v2522_v60 = vpop.f32.mrf.mxu0 }
 0x2d2   : > { %2651 = vst.msk [vmem:[%s4655_s12 + $0xc] sm:$0xf] %vm2647_vm0, %v2632_v63  ;;  %v2523_v10 = vadd.f32 %v2522_v60, %v2469_v32  ;;  %v2576_v42 = vpop.f32.mrf.mxu1  ;;  %v2471_v20 = vadd.f32 %v2470_v18, %v2417_v12 }
 0x2d4   : > { %v2577_v57 = vadd.f32 %v2576_v42, %v2523_v10 }
 0x2d6   : > { %v2615_v45 = vmax.f32 %v2577_v57, 0.0 }
 0x2d7   : > { %v2419_v33 = vpop.f32.mrf.mxu2 }
 0x2d8   : > { %v2633_v43 = vpack.c.bf16 %v2615_v45, %v2615_v45  ;;  %v2420_v5 = vadd.f32 %v2419_v33, %v4578_v62 }
 0x2d9   : > { %v2473_v59 = vpop.f32.mrf.mxu3  ;;  %v2524_v19 = vpop.f32.mrf.mxu0 }
 0x2da   : > { %2652 = vst.msk [vmem:[%s4655_s12 + $0x10] sm:$0xf] %vm2647_vm0, %v2633_v43  ;;  %v2525_v41 = vadd.f32 %v2524_v19, %v2471_v20  ;;  %v2578_v48 = vpop.f32.mrf.mxu1  ;;  %v2474_v35 = vadd.f32 %v2473_v59, %v2420_v5 }
 0x2dc   : > { %v2579_v39 = vadd.f32 %v2578_v48, %v2525_v41 }
 0x2de   : > { %v2616_v52 = vmax.f32 %v2579_v39, 0.0 }
 0x2df   : > { %v2421_v6 = vpop.f32.mrf.mxu2 }
 0x2e0   : > { %v2634_v30 = vpack.c.bf16 %v2616_v52, %v2616_v52  ;;  %v2422_v38 = vadd.f32 %v2421_v6, %v4586_v50 }
 0x2e1   : > { %v2475_v26 = vpop.f32.mrf.mxu3  ;;  %v2527_v55 = vpop.f32.mrf.mxu0 }
 0x2e2   : > { %2653 = vst.msk [vmem:[%s4655_s12 + $0x14] sm:$0xf] %vm2647_vm0, %v2634_v30  ;;  %v2528_v36 = vadd.f32 %v2527_v55, %v2474_v35  ;;  %v2581_v54 = vpop.f32.mrf.mxu1  ;;  %v2476_v0 = vadd.f32 %v2475_v26, %v2422_v38 }
 0x2e4   : > { %v2582_v44 = vadd.f32 %v2581_v54, %v2528_v36 }
 0x2e6   : > { %v2617_v61 = vmax.f32 %v2582_v44, 0.0 }
 0x2e7   : > { %v2424_v21 = vpop.f32.mrf.mxu2 }
 0x2e8   : > { %v2635_v62 = vpack.c.bf16 %v2617_v61, %v2617_v61  ;;  %v2425_v4 = vadd.f32 %v2424_v21, %v4590_v28 }
 0x2e9   : > { %v2478_v2 = vpop.f32.mrf.mxu3  ;;  %v2529_v27 = vpop.f32.mrf.mxu0 }
 0x2ea   : > { %2654 = vst.msk [vmem:[%s4655_s12 + $0x18] sm:$0xf] %vm2647_vm0, %v2635_v62  ;;  %v2530_v51 = vadd.f32 %v2529_v27, %v2476_v0  ;;  %v2583_v8 = vpop.f32.mrf.mxu1  ;;  %v2479_v1 = vadd.f32 %v2478_v2, %v2425_v4 }
 0x2ec   : > { %v2584_v25 = vadd.f32 %v2583_v8, %v2530_v51 }
 0x2ee   : > { %v2618_v15 = vmax.f32 %v2584_v25, 0.0 }
 0x2ef   : > { %v2426_v53 = vpop.f32.mrf.mxu2 }
 0x2f0   : > { %v2636_v50 = vpack.c.bf16 %v2618_v15, %v2618_v15  ;;  %v2427_v14 = vadd.f32 %v2426_v53, %v4598_v34 }
 0x2f1   : > { %v2480_v17 = vpop.f32.mrf.mxu3  ;;  %v2532_v49 = vpop.f32.mrf.mxu0 }
 0x2f2   : > { %2655 = vst.msk [vmem:[%s4655_s12 + $0x1c] sm:$0xf] %vm2647_vm0, %v2636_v50  ;;  %v2533_v23 = vadd.f32 %v2532_v49, %v2479_v1  ;;  %v2586_v37 = vpop.f32.mrf.mxu1  ;;  %v2481_v56 = vadd.f32 %v2480_v17, %v2427_v14 }
 0x2f4   : > { %v2587_v16 = vadd.f32 %v2586_v37, %v2533_v23 }
 0x2f6   : > { %v2619_v31 = vmax.f32 %v2587_v16, 0.0 }
 0x2f7   : > { %v2429_v46 = vpop.f32.mrf.mxu2 }
 0x2f8   : > { %v2637_v28 = vpack.c.bf16 %v2619_v31, %v2619_v31  ;;  %v2430_v63 = vadd.f32 %v2429_v46, %v4602_v7 }
 0x2f9   : > { %v2483_v13 = vpop.f32.mrf.mxu3  ;;  %v2534_v58 = vpop.f32.mrf.mxu0 }
 0x2fa   : > { %2656 = vst.msk [vmem:[%s4655_s12 + $0x20] sm:$0xf] %vm2647_vm0, %v2637_v28  ;;  %v2535_v11 = vadd.f32 %v2534_v58, %v2481_v56  ;;  %v2588_v32 = vpop.f32.mrf.mxu1  ;;  %v2484_v42 = vadd.f32 %v2483_v13, %v2430_v63 }
 0x2fc   : > { %v2589_v18 = vadd.f32 %v2588_v32, %v2535_v11 }
 0x2fe   : > { %v2620_v60 = vmax.f32 %v2589_v18, 0.0 }
 0x2ff   : > { %v2431_v10 = vpop.f32.mrf.mxu2 }
 0x300   : > { %v2638_v34 = vpack.c.bf16 %v2620_v60, %v2620_v60  ;;  %v2432_v20 = vadd.f32 %v2431_v10, %v4610_v3 }
 0x301   : > { %v2485_v12 = vpop.f32.mrf.mxu3  ;;  %v2537_v57 = vpop.f32.mrf.mxu0 }
 0x302   : > { %2657 = vst.msk [vmem:[%s4655_s12 + $0x24] sm:$0xf] %vm2647_vm0, %v2638_v34  ;;  %v2538_v45 = vadd.f32 %v2537_v57, %v2484_v42  ;;  %v2591_v33 = vpop.f32.mrf.mxu1  ;;  %v2486_v41 = vadd.f32 %v2485_v12, %v2432_v20 }
 0x304   : > { %v2592_v43 = vadd.f32 %v2591_v33, %v2538_v45 }
 0x306   : > { %v2621_v59 = vmax.f32 %v2592_v43, 0.0 }
 0x307   : > { %v2434_v19 = vpop.f32.mrf.mxu2 }
 0x308   : > { %v2639_v7 = vpack.c.bf16 %v2621_v59, %v2621_v59  ;;  %v2435_v6 = vadd.f32 %v2434_v19, %v4614_v40 }
 0x309   : > { %v2488_v48 = vpop.f32.mrf.mxu3  ;;  %v2539_v5 = vpop.f32.mrf.mxu0 }
 0x30a   : > { %2658 = vst.msk [vmem:[%s4655_s12 + $0x28] sm:$0xf] %vm2647_vm0, %v2639_v7  ;;  %v2540_v39 = vadd.f32 %v2539_v5, %v2486_v41  ;;  %v2593_v52 = vpop.f32.mrf.mxu1  ;;  %v2489_v55 = vadd.f32 %v2488_v48, %v2435_v6 }
 0x30c   : > { %v2594_v35 = vadd.f32 %v2593_v52, %v2540_v39 }
 0x30e   : > { %v2622_v30 = vmax.f32 %v2594_v35, 0.0 }
 0x30f   : > { %v2436_v26 = vpop.f32.mrf.mxu2 }
 0x310   : > { %v2640_v3 = vpack.c.bf16 %v2622_v30, %v2622_v30  ;;  %v2437_v61 = vadd.f32 %v2436_v26, %v4622_v47 }
 0x311   : > { %v2490_v36 = vpop.f32.mrf.mxu3  ;;  %v2542_v54 = vpop.f32.mrf.mxu0 }
 0x312   : > { %2659 = vst.msk [vmem:[%s4655_s12 + $0x2c] sm:$0xf] %vm2647_vm0, %v2640_v3  ;;  %v2543_v38 = vadd.f32 %v2542_v54, %v2489_v55  ;;  %v2596_v44 = vpop.f32.mrf.mxu1  ;;  %v2491_v2 = vadd.f32 %v2490_v36, %v2437_v61 }
 0x314   : > { %v2597_v21 = vadd.f32 %v2596_v44, %v2543_v38 }
 0x316   : > { %v2623_v0 = vmax.f32 %v2597_v21, 0.0 }
 0x317   : > { %v2439_v62 = vpop.f32.mrf.mxu2 }
 0x318   : > { %v2641_v40 = vpack.c.bf16 %v2623_v0, %v2623_v0  ;;  %v2440_v25 = vadd.f32 %v2439_v62, %v4626_v9 }
 0x319   : > { %v2493_v27 = vpop.f32.mrf.mxu3  ;;  %v2544_v51 = vpop.f32.mrf.mxu0 }
 0x31a   : > { %2660 = vst.msk [vmem:[%s4655_s12 + $0x30] sm:$0xf] %vm2647_vm0, %v2641_v40  ;;  %v2545_v8 = vadd.f32 %v2544_v51, %v2491_v2  ;;  %v2598_v4 = vpop.f32.mrf.mxu1  ;;  %v2494_v50 = vadd.f32 %v2493_v27, %v2440_v25 }
 0x31c   : > { %v2599_v15 = vadd.f32 %v2598_v4, %v2545_v8 }
 0x31e   : > { %v2624_v53 = vmax.f32 %v2599_v15, 0.0 }
 0x31f   : > { %v2441_v1 = vpop.f32.mrf.mxu2 }
 0x320   : > { %v2642_v47 = vpack.c.bf16 %v2624_v53, %v2624_v53  ;;  %v2442_v14 = vadd.f32 %v2441_v1, %v4634_v29 }
 0x321   : > { %v2547_v17 = vpop.f32.mrf.mxu0  ;;  %v2495_v37 = vpop.f32.mrf.mxu3 }
 0x322   : > { %2661 = vst.msk [vmem:[%s4655_s12 + $0x34] sm:$0xf] %vm2647_vm0, %v2642_v47  ;;  %v2548_v49 = vadd.f32 %v2547_v17, %v2494_v50  ;;  %v2601_v23 = vpop.f32.mrf.mxu1  ;;  %v2496_v56 = vadd.f32 %v2495_v37, %v2442_v14 }
 0x324   : > { %v2602_v16 = vadd.f32 %v2601_v23, %v2548_v49 }
 0x326   : > { %v2625_v31 = vmax.f32 %v2602_v16, 0.0 }
 0x327   : > { %v2444_v46 = vpop.f32.mrf.mxu2 }
 0x328   : > { %v2643_v9 = vpack.c.bf16 %v2625_v31, %v2625_v31  ;;  %v2445_v11 = vadd.f32 %v2444_v46, %v4638_v22 }
 0x329   : > { %v2549_v28 = vpop.f32.mrf.mxu0  ;;  %v2498_v63 = vpop.f32.mrf.mxu3 }
 0x32a   : > { %2662 = vst.msk [vmem:[%s4655_s12 + $0x38] sm:$0xf] %vm2647_vm0, %v2643_v9  ;;  %v2550_v13 = vadd.f32 %v2549_v28, %v2496_v56  ;;  %v2603_v58 = vpop.f32.mrf.mxu1  ;;  %v2499_v60 = vadd.f32 %v2498_v63, %v2445_v11 }
 0x32c   : > { %v2604_v32 = vadd.f32 %v2603_v58, %v2550_v13 }
 0x32e   : > { %v2626_v18 = vmax.f32 %v2604_v32, 0.0 }
 0x32f   : > { %v2446_v29 = vpop.f32.mrf.mxu2 }
 0x330   : > { %v2644_v10 = vpack.c.bf16 %v2626_v18, %v2626_v18  ;;  %v2447_v57 = vadd.f32 %v2446_v29, %v4645_v24 }
 0x331   : > { %v2552_v42 = vpop.f32.mrf.mxu0  ;;  %v2500_v20 = vpop.f32.mrf.mxu3 }
 0x332   : > { %2663 = vst.msk [vmem:[%s4655_s12 + $0x3c] sm:$0xf] %vm2647_vm0, %v2644_v10  ;;  %v2553_v34 = vadd.f32 %v2552_v42, %v2499_v60  ;;  %v2606_v12 = vpop.f32.mrf.mxu1  ;;  %v2501_v43 = vadd.f32 %v2500_v20, %v2447_v57 }
 0x334   : > { %v2607_v45 = vadd.f32 %v2606_v12, %v2553_v34 }
 0x336   : > { %v2627_v33 = vmax.f32 %v2607_v45, 0.0 }
 0x338   : > { %v2645_v22 = vpack.c.bf16 %v2627_v33, %v2627_v33 }
 0x339   : > { %v2554_v59 = vpop.f32.mrf.mxu0 }
 0x33a   : > { %2664 = vst.msk [vmem:[%s4655_s12 + $0x40] sm:$0xf] %vm2647_vm0, %v2645_v22  ;;  %v2555_v19 = vadd.f32 %v2554_v59, %v2501_v43  ;;  %v2608_v41 = vpop.f32.mrf.mxu1 }
 0x33c   : > { %v2609_v7 = vadd.f32 %v2608_v41, %v2555_v19 }
 0x33e   : > { %v2628_v48 = vmax.f32 %v2609_v7, 0.0 }
 0x340   : > { %v2646_v5 = vpack.c.bf16 %v2628_v48, %v2628_v48 }
 0x342   : > { %2665 = vst.msk [vmem:[%s4655_s12 + $0x44] sm:$0xf] %vm2647_vm0, %v2646_v5 }
 0x343 PF: > { %s17_s18 = sadd.s32 1, %s3701_s18  }
 0x344   : > { %p14_p7 = scmp.ge.s32.totalorder %s17_s18, 4  }
 0x346   :  { %16 = sbr.rel (!%p14_p7) target bundleno = 2 (0x2), region = 83 }
 0x34b   :  { %2688 = vsyncpa [#allocation3], 1 }
 0x34c   :  { %2690 = vsyncpa [#allocation3 + $0x1], 1 }
 0x34d   :  { %2691 = vsyncpa [#allocation5], 1 }

// kernel: classifier_c_forward.3
= control target key start
LH: loop header
LB: loop body
LE: loop exit
PB: predicated region body
PF: predicated region fallthrough
CT: control target
= control target key end

     0   :  { %10 = vsyncpa [#allocation3], 0  ;;  %s9056_s0 = inlined_call_operand.vmem [shape: bf16[2,9216], index: 0, kind: input, shape index: {}]   ;;  %s9057_s1 = inlined_call_operand.hbm [shape: bf16[9216,128], index: 1, kind: input, shape index: {}]   ;;  %s9058_s2 = inlined_call_operand.hbm [shape: f32[1,128], index: 2, kind: input, shape index: {}]   ;;  %s9059_s3 = inlined_call_operand.hbm [shape: bf16[128,128], index: 3, kind: input, shape index: {}]   ;;  %s9060_s4 = inlined_call_operand.hbm [shape: f32[1,128], index: 4, kind: input, shape index: {}]   ;;  %s9061_s5 = inlined_call_operand.hbm [shape: f32[2,128], index: 5, kind: output, shape index: {}]  }
   0x1   :  { %11 = vsyncpa [#allocation6], 0 }
   0x2   :  { %12 = vsyncpa [#allocation9], 0  ;;  %s34_s20 = sshll.u32 %s9058_s2, 4  ;;  %s35_s20 = int_to_ptr.hbm [resolvable:$true] %s34_s20 }
   0x3   :  { %13 = vsyncpa [#allocation4], 0  ;;  %s8959_s21 = smov [#allocation5]   ;;  %s20_s25 = sshll.u32 %s9057_s1, 4  ;;  %s21_s25 = int_to_ptr.hbm [resolvable:$true] %s20_s25 }
   0x4   :  { %s36_s22 = sshll.u32 %s8959_s21, 4  ;;  %s8960_s26 = smov [#allocation2]   ;;  %s37_s22 = int_to_ptr.vmem [resolvable:$true] %s36_s22 }
   0x5   :  { %39 = dma.hbm_to_vmem [thread:$0]  %s35_s20, 16, %s37_s22, [#allocation6]  }
   0x6   :  { %s22_s27 = sshll.u32 %s8960_s26, 4  ;;  %s8961_s28 = smov 64   ;;  %s23_s27 = int_to_ptr.vmem [resolvable:$true] %s22_s27 }
   0x7   :  { %s8962_s29 = smov 4   ;;  %s44_s2 = sshll.u32 %s9059_s3, 4  ;;  %s45_s2 = int_to_ptr.hbm [resolvable:$true] %s44_s2 }
   0x8   :  { %28 = dma.hbm_to_vmem [thread:$0]  %s21_s25, 73728, %s23_s27, [#allocation3], %s8961_s28, %s8961_s28, %s8962_s29  }
   0x9   :  { %s8963_s7 = smov [#allocation7]   ;;  %s58_s1 = sshll.u32 %s9060_s4, 4  ;;  %s59_s1 = int_to_ptr.hbm [resolvable:$true] %s58_s1 }
   0xa   :  { %s46_s8 = sshll.u32 %s8963_s7, 4  ;;  %s8964_s11 = smov [#allocation8]   ;;  %s47_s8 = int_to_ptr.vmem [resolvable:$true] %s46_s8 }
   0xb   :  { %52 = dma.hbm_to_vmem [thread:$0]  %s45_s2, 1024, %s47_s8, [#allocation6], %s8961_s28, %s8961_s28, %s8962_s29  }
   0xc   :  { %s60_s12 = sshll.u32 %s8964_s11, 4  ;;  %s61_s12 = int_to_ptr.vmem [resolvable:$true] %s60_s12 }
   0xd   :  { %63 = dma.hbm_to_vmem [thread:$0]  %s59_s1, 16, %s61_s12, [#allocation9]  }
   0xe   :  { %8951 = dma.done.wait [#allocation3], 73728  }
   0xf   :  { %8952 = vsyncadd [#allocation3], 4294893568 }
  0x10   :  { %8953 = dma.done.wait [#allocation6], 1040  }
  0x11   :  { %8954 = vsyncadd [#allocation6], 4294966256 }
  0x12   :  { %8955 = dma.done.wait [#allocation9], 16  }
  0x13   :  { %8956 = vsyncadd [#allocation9], 4294967280  ;;  %v8245_v0 = vld [vmem:[#allocation2 + $0x38] sm:$0xff]  ;;  %v8244_v4 = vld [vmem:[#allocation2 + $0x30] sm:$0xff]  ;;  %s5890_s2 = sshll.u32 %s9061_s5, 4  ;;  %s5891_s2 = int_to_ptr.hbm [resolvable:$true] %s5890_s2 }
  0x14   :  { %v8253_v1 = vld [vmem:[#allocation2 + $0x78] sm:$0xff]  ;;  %4863 = vmatpush.bf16.msra.mxu0 %v8245_v0  ;;  %v8252_v5 = vld [vmem:[#allocation2 + $0x70] sm:$0xff]  ;;  %v8243_v8 = vld [vmem:[#allocation2 + $0x28] sm:$0xff] }
  0x15   :  { %v8261_v2 = vld [vmem:[#allocation2 + $0xb8] sm:$0xff]  ;;  %4876 = vmatpush.bf16.msra.mxu1 %v8253_v1  ;;  %v8260_v6 = vld [vmem:[#allocation2 + $0xb0] sm:$0xff]  ;;  %v8251_v9 = vld [vmem:[#allocation2 + $0x68] sm:$0xff] }
  0x16   :  { %v8269_v3 = vld [vmem:[#allocation2 + $0xf8] sm:$0xff]  ;;  %4889 = vmatpush.bf16.msra.mxu2 %v8261_v2  ;;  %v8268_v7 = vld [vmem:[#allocation2 + $0xf0] sm:$0xff]  ;;  %v8259_v10 = vld [vmem:[#allocation2 + $0xa8] sm:$0xff] }
  0x17   :  { %4902 = vmatpush.bf16.msra.mxu3 %v8269_v3  ;;  %v8267_v11 = vld [vmem:[#allocation2 + $0xe8] sm:$0xff]  ;;  %v8242_v12 = vld [vmem:[#allocation2 + $0x20] sm:$0xff]  ;;  %v8241_v16 = vld [vmem:[#allocation2 + $0x18] sm:$0xff] }
  0x18   :  { %4864 = vmatpush.bf16.msra.mxu0 %v8244_v4  ;;  %v8250_v13 = vld [vmem:[#allocation2 + $0x60] sm:$0xff]  ;;  %v8249_v17 = vld [vmem:[#allocation2 + $0x58] sm:$0xff]  ;;  %v8240_v20 = vld [vmem:[#allocation2 + $0x10] sm:$0xff] }
  0x19   :  { %4877 = vmatpush.bf16.msra.mxu1 %v8252_v5  ;;  %v8258_v14 = vld [vmem:[#allocation2 + $0xa0] sm:$0xff]  ;;  %v8257_v18 = vld [vmem:[#allocation2 + $0x98] sm:$0xff]  ;;  %v8248_v21 = vld [vmem:[#allocation2 + $0x50] sm:$0xff] }
  0x1a   :  { %4890 = vmatpush.bf16.msra.mxu2 %v8260_v6  ;;  %v8266_v15 = vld [vmem:[#allocation2 + $0xe0] sm:$0xff]  ;;  %v8265_v19 = vld [vmem:[#allocation2 + $0xd8] sm:$0xff]  ;;  %v8256_v23 = vld [vmem:[#allocation2 + $0x90] sm:$0xff] }
  0x1b   :  { %4903 = vmatpush.bf16.msra.mxu3 %v8268_v7  ;;  %v80_v22 = vld [vmem:[%s9056_s0] sm:$0xff]  ;;  %v8264_v24 = vld [vmem:[#allocation2 + $0xd0] sm:$0xff]  ;;  %v8239_v25 = vld [vmem:[#allocation2 + $0x8] sm:$0xff] }
  0x1c   :  { %4865 = vmatpush.bf16.msra.mxu0 %v8243_v8  ;;  %1246 = vst [vmem:[#allocation1] ss:$9 sm:$0xff] %v80_v22  ;;  %v8247_v26 = vld [vmem:[#allocation2 + $0x48] sm:$0xff]  ;;  %v8238_v29 = vld [vmem:[#allocation2] sm:$0xff]  ;;  %v8277_v33 = vld [vmem:[#allocation2 + $0x138] sm:$0xff] }
  0x1d   :  { %4878 = vmatpush.bf16.msra.mxu1 %v8251_v9  ;;  %v8255_v27 = vld [vmem:[#allocation2 + $0x88] sm:$0xff]  ;;  %v8246_v30 = vld [vmem:[#allocation2 + $0x40] sm:$0xff]  ;;  %v8285_v34 = vld [vmem:[#allocation2 + $0x178] sm:$0xff] }
  0x1e   :  { %4891 = vmatpush.bf16.msra.mxu2 %v8259_v10  ;;  %v8263_v28 = vld [vmem:[#allocation2 + $0xc8] sm:$0xff]  ;;  %v8254_v31 = vld [vmem:[#allocation2 + $0x80] sm:$0xff]  ;;  %v8293_v35 = vld [vmem:[#allocation2 + $0x1b8] sm:$0xff] }
  0x1f   :  { %4904 = vmatpush.bf16.msra.mxu3 %v8267_v11  ;;  %v8262_v32 = vld [vmem:[#allocation2 + $0xc0] sm:$0xff]  ;;  %v8301_v36 = vld [vmem:[#allocation2 + $0x1f8] sm:$0xff]  ;;  %v8276_v37 = vld [vmem:[#allocation2 + $0x130] sm:$0xff] }
  0x20   :  { %4866 = vmatpush.bf16.msra.mxu0 %v8242_v12  ;;  %v8284_v40 = vld [vmem:[#allocation2 + $0x170] sm:$0xff]  ;;  %v8275_v45 = vld [vmem:[#allocation2 + $0x128] sm:$0xff]  ;;  %v8274_v49 = vld [vmem:[#allocation2 + $0x120] sm:$0xff] }
  0x21   :  { %4879 = vmatpush.bf16.msra.mxu1 %v8250_v13  ;;  %v8292_v43 = vld [vmem:[#allocation2 + $0x1b0] sm:$0xff]  ;;  %v8283_v46 = vld [vmem:[#allocation2 + $0x168] sm:$0xff]  ;;  %v8282_v50 = vld [vmem:[#allocation2 + $0x160] sm:$0xff] }
  0x22   :  { %4892 = vmatpush.bf16.msra.mxu2 %v8258_v14  ;;  %v8300_v44 = vld [vmem:[#allocation2 + $0x1f0] sm:$0xff]  ;;  %v8291_v47 = vld [vmem:[#allocation2 + $0x1a8] sm:$0xff]  ;;  %v8290_v51 = vld [vmem:[#allocation2 + $0x1a0] sm:$0xff] }
  0x23   :  { %4905 = vmatpush.bf16.msra.mxu3 %v8266_v15  ;;  %v1249_v38 = vld [vmem:[#allocation1 + $0x12] sm:$0xff]  ;;  %v1247_v39 = vld [vmem:[#allocation1] sm:$0xff]  ;;  %v1248_v42 = vld [vmem:[#allocation1 + $0x9] sm:$0xff] }
  0x24   :  { %4867 = vmatpush.bf16.msra.mxu0 %v8241_v16  ;;  %v1250_v41 = vld [vmem:[#allocation1 + $0x1b] sm:$0xff]  ;;  %v8299_v48 = vld [vmem:[#allocation2 + $0x1e8] sm:$0xff]  ;;  %v8298_v52 = vld [vmem:[#allocation2 + $0x1e0] sm:$0xff] }
  0x25   :  { %4880 = vmatpush.bf16.msra.mxu1 %v8249_v17  ;;  %v8273_v53 = vld [vmem:[#allocation2 + $0x118] sm:$0xff]  ;;  %v8272_v57 = vld [vmem:[#allocation2 + $0x110] sm:$0xff]  ;;  %v8271_v61 = vld [vmem:[#allocation2 + $0x108] sm:$0xff] }
  0x26   :  { %4893 = vmatpush.bf16.msra.mxu2 %v8257_v18  ;;  %v8281_v54 = vld [vmem:[#allocation2 + $0x158] sm:$0xff]  ;;  %v8280_v58 = vld [vmem:[#allocation2 + $0x150] sm:$0xff]  ;;  %v8279_v62 = vld [vmem:[#allocation2 + $0x148] sm:$0xff] }
  0x27   :  { %4906 = vmatpush.bf16.msra.mxu3 %v8265_v19  ;;  %v8289_v55 = vld [vmem:[#allocation2 + $0x198] sm:$0xff]  ;;  %v8288_v59 = vld [vmem:[#allocation2 + $0x190] sm:$0xff]  ;;  %v8287_v63 = vld [vmem:[#allocation2 + $0x188] sm:$0xff] }
  0x28   :  { %4868 = vmatpush.bf16.msra.mxu0 %v8240_v20  ;;  %v8297_v56 = vld [vmem:[#allocation2 + $0x1d8] sm:$0xff]  ;;  %v8296_v60 = vld [vmem:[#allocation2 + $0x1d0] sm:$0xff]  ;;  %v8295_v0 = vld [vmem:[#allocation2 + $0x1c8] sm:$0xff] }
  0x29   :  { %4881 = vmatpush.bf16.msra.mxu1 %v8248_v21  ;;  %v1253_v1 = vld [vmem:[#allocation1 + $0x36] sm:$0xff]  ;;  %v1251_v2 = vld [vmem:[#allocation1 + $0x24] sm:$0xff]  ;;  %v1252_v4 = vld [vmem:[#allocation1 + $0x2d] sm:$0xff] }
  0x2a   :  { %4894 = vmatpush.bf16.msra.mxu2 %v8256_v23  ;;  %v1254_v3 = vld [vmem:[#allocation1 + $0x3f] sm:$0xff]  ;;  %v81_v5 = vld [vmem:[%s9056_s0 + $0x8] sm:$0xff]  ;;  %v8307_v18 = vld [vmem:[#allocation2 + $0x228] sm:$0xff] }
  0x2b   :  { %4907 = vmatpush.bf16.msra.mxu3 %v8264_v24  ;;  %1256 = vst [vmem:[#allocation1] ss:$9 sm:$0xff] %v81_v5  ;;  %v8270_v6 = vld [vmem:[#allocation2 + $0x100] sm:$0xff]  ;;  %v8309_v10 = vld [vmem:[#allocation2 + $0x238] sm:$0xff]  ;;  %v8308_v14 = vld [vmem:[#allocation2 + $0x230] sm:$0xff] }
  0x2c   :  { %4869 = vmatpush.bf16.msra.mxu0 %v8239_v25  ;;  %v8278_v7 = vld [vmem:[#allocation2 + $0x140] sm:$0xff]  ;;  %v8317_v11 = vld [vmem:[#allocation2 + $0x278] sm:$0xff]  ;;  %v8316_v15 = vld [vmem:[#allocation2 + $0x270] sm:$0xff] }
  0x2d   :  { %4882 = vmatpush.bf16.msra.mxu1 %v8247_v26  ;;  %v8286_v8 = vld [vmem:[#allocation2 + $0x180] sm:$0xff]  ;;  %v8325_v12 = vld [vmem:[#allocation2 + $0x2b8] sm:$0xff]  ;;  %v8324_v16 = vld [vmem:[#allocation2 + $0x2b0] sm:$0xff] }
  0x2e   :  { %4895 = vmatpush.bf16.msra.mxu2 %v8255_v27  ;;  %v8294_v9 = vld [vmem:[#allocation2 + $0x1c0] sm:$0xff]  ;;  %v8333_v13 = vld [vmem:[#allocation2 + $0x2f8] sm:$0xff]  ;;  %v8332_v17 = vld [vmem:[#allocation2 + $0x2f0] sm:$0xff] }
  0x2f   :  { %4908 = vmatpush.bf16.msra.mxu3 %v8263_v28  ;;  %v8315_v19 = vld [vmem:[#allocation2 + $0x268] sm:$0xff]  ;;  %v8306_v22 = vld [vmem:[#allocation2 + $0x220] sm:$0xff]  ;;  %v8305_v26 = vld [vmem:[#allocation2 + $0x218] sm:$0xff] }
  0x30   :  { %4870 = vmatpush.bf16.msra.mxu0 %v8238_v29  ;;  %v8323_v20 = vld [vmem:[#allocation2 + $0x2a8] sm:$0xff]  ;;  %v8314_v23 = vld [vmem:[#allocation2 + $0x260] sm:$0xff]  ;;  %v8313_v27 = vld [vmem:[#allocation2 + $0x258] sm:$0xff] }
  0x31   :  { %4883 = vmatpush.bf16.msra.mxu1 %v8246_v30  ;;  %v8331_v21 = vld [vmem:[#allocation2 + $0x2e8] sm:$0xff]  ;;  %v8322_v24 = vld [vmem:[#allocation2 + $0x2a0] sm:$0xff]  ;;  %v8321_v28 = vld [vmem:[#allocation2 + $0x298] sm:$0xff] }
  0x32   :  { %4896 = vmatpush.bf16.msra.mxu2 %v8254_v31  ;;  %v8330_v25 = vld [vmem:[#allocation2 + $0x2e0] sm:$0xff]  ;;  %v8329_v29 = vld [vmem:[#allocation2 + $0x2d8] sm:$0xff]  ;;  %v8304_v30 = vld [vmem:[#allocation2 + $0x210] sm:$0xff] }
  0x33   :  { %4909 = vmatpush.bf16.msra.mxu3 %v8262_v32  ;;  %4871 = vmatmul.bf16.vlgmr.msra.gmra.mxu0 %v1247_v39  ;;  %v8312_v31 = vld [vmem:[#allocation2 + $0x250] sm:$0xff]  ;;  %v8310_v39 = vld [vmem:[#allocation2 + $0x240] sm:$0xff] }
  0x34   :  { %4915 = vmatpush.bf16.msrb.mxu0 %v8277_v33  ;;  %4884 = vmatmul.bf16.vlgmr.msra.gmra.mxu1 %v1248_v42  ;;  %v8320_v32 = vld [vmem:[#allocation2 + $0x290] sm:$0xff]  ;;  %v8341_v42 = vld [vmem:[#allocation2 + $0x338] sm:$0xff] }
  0x35   :  { %4928 = vmatpush.bf16.msrb.mxu1 %v8285_v34  ;;  %4897 = vmatmul.bf16.vlgmr.msra.gmra.mxu2 %v1249_v38  ;;  %v8328_v33 = vld [vmem:[#allocation2 + $0x2d0] sm:$0xff]  ;;  %v8303_v34 = vld [vmem:[#allocation2 + $0x208] sm:$0xff]  ;;  %v8302_v38 = vld [vmem:[#allocation2 + $0x200] sm:$0xff] }
  0x36   :  { %4941 = vmatpush.bf16.msrb.mxu2 %v8293_v35  ;;  %4910 = vmatmul.bf16.vlgmr.msra.gmra.mxu3 %v1250_v41  ;;  %v8311_v35 = vld [vmem:[#allocation2 + $0x248] sm:$0xff]  ;;  %v8326_v41 = vld [vmem:[#allocation2 + $0x2c0] sm:$0xff]  ;;  %v8360_v5 = vld [vmem:[#allocation2 + $0x3d0] sm:$0xff] }
  0x37   :  { %4954 = vmatpush.bf16.msrb.mxu3 %v8301_v36  ;;  %v8319_v36 = vld [vmem:[#allocation2 + $0x288] sm:$0xff] }
  0x38   :  { %4916 = vmatpush.bf16.msrb.mxu0 %v8276_v37  ;;  %v8327_v37 = vld [vmem:[#allocation2 + $0x2c8] sm:$0xff] }
  0x39   :  { %4929 = vmatpush.bf16.msrb.mxu1 %v8284_v40  ;;  %v8318_v40 = vld [vmem:[#allocation2 + $0x280] sm:$0xff] }
  0x3a   :  { %4942 = vmatpush.bf16.msrb.mxu2 %v8292_v43  ;;  %v8349_v43 = vld [vmem:[#allocation2 + $0x378] sm:$0xff] }
  0x3b   :  { %4955 = vmatpush.bf16.msrb.mxu3 %v8300_v44  ;;  %v8357_v44 = vld [vmem:[#allocation2 + $0x3b8] sm:$0xff] }
  0x3c   :  { %4917 = vmatpush.bf16.msrb.mxu0 %v8275_v45  ;;  %v8365_v45 = vld [vmem:[#allocation2 + $0x3f8] sm:$0xff] }
  0x3d   :  { %4930 = vmatpush.bf16.msrb.mxu1 %v8283_v46  ;;  %v1257_v46 = vld [vmem:[#allocation1] sm:$0xff] }
  0x3e   :  { %4943 = vmatpush.bf16.msrb.mxu2 %v8291_v47  ;;  %v1259_v47 = vld [vmem:[#allocation1 + $0x12] sm:$0xff] }
  0x3f   :  { %4956 = vmatpush.bf16.msrb.mxu3 %v8299_v48  ;;  %v1258_v48 = vld [vmem:[#allocation1 + $0x9] sm:$0xff] }
  0x40   :  { %4918 = vmatpush.bf16.msrb.mxu0 %v8274_v49  ;;  %v1260_v49 = vld [vmem:[#allocation1 + $0x1b] sm:$0xff] }
  0x41   :  { %4931 = vmatpush.bf16.msrb.mxu1 %v8282_v50  ;;  %v8340_v50 = vld [vmem:[#allocation2 + $0x330] sm:$0xff] }
  0x42   :  { %4944 = vmatpush.bf16.msrb.mxu2 %v8290_v51  ;;  %v8348_v51 = vld [vmem:[#allocation2 + $0x370] sm:$0xff] }
  0x43   :  { %4957 = vmatpush.bf16.msrb.mxu3 %v8298_v52  ;;  %v8356_v52 = vld [vmem:[#allocation2 + $0x3b0] sm:$0xff] }
  0x44   :  { %4919 = vmatpush.bf16.msrb.mxu0 %v8273_v53  ;;  %v8364_v53 = vld [vmem:[#allocation2 + $0x3f0] sm:$0xff] }
  0x45   :  { %4932 = vmatpush.bf16.msrb.mxu1 %v8281_v54  ;;  %v8339_v54 = vld [vmem:[#allocation2 + $0x328] sm:$0xff] }
  0x46   :  { %4945 = vmatpush.bf16.msrb.mxu2 %v8289_v55  ;;  %v8347_v55 = vld [vmem:[#allocation2 + $0x368] sm:$0xff] }
  0x47   :  { %4958 = vmatpush.bf16.msrb.mxu3 %v8297_v56  ;;  %v8355_v56 = vld [vmem:[#allocation2 + $0x3a8] sm:$0xff] }
  0x48   :  { %4920 = vmatpush.bf16.msrb.mxu0 %v8272_v57  ;;  %v8363_v57 = vld [vmem:[#allocation2 + $0x3e8] sm:$0xff] }
  0x49   :  { %4933 = vmatpush.bf16.msrb.mxu1 %v8280_v58  ;;  %v8338_v58 = vld [vmem:[#allocation2 + $0x320] sm:$0xff] }
  0x4a   :  { %4946 = vmatpush.bf16.msrb.mxu2 %v8288_v59  ;;  %v8346_v59 = vld [vmem:[#allocation2 + $0x360] sm:$0xff] }
  0x4b   :  { %4959 = vmatpush.bf16.msrb.mxu3 %v8296_v60  ;;  %v8354_v60 = vld [vmem:[#allocation2 + $0x3a0] sm:$0xff] }
  0x4c   :  { %4921 = vmatpush.bf16.msrb.mxu0 %v8271_v61  ;;  %v8362_v61 = vld [vmem:[#allocation2 + $0x3e0] sm:$0xff] }
  0x4d   :  { %4934 = vmatpush.bf16.msrb.mxu1 %v8279_v62  ;;  %v8337_v62 = vld [vmem:[#allocation2 + $0x318] sm:$0xff] }
  0x4e   :  { %4947 = vmatpush.bf16.msrb.mxu2 %v8287_v63  ;;  %v8345_v63 = vld [vmem:[#allocation2 + $0x358] sm:$0xff] }
  0x4f   :  { %4960 = vmatpush.bf16.msrb.mxu3 %v8295_v0  ;;  %v8353_v0 = vld [vmem:[#allocation2 + $0x398] sm:$0xff] }
  0x50   :  { %4922 = vmatpush.bf16.msrb.mxu0 %v8270_v6  ;;  %v8335_v6 = vld [vmem:[#allocation2 + $0x308] sm:$0xff] }
  0x51   :  { %4935 = vmatpush.bf16.msrb.mxu1 %v8278_v7  ;;  %v8343_v7 = vld [vmem:[#allocation2 + $0x348] sm:$0xff] }
  0x52   :  { %4948 = vmatpush.bf16.msrb.mxu2 %v8286_v8  ;;  %v8351_v8 = vld [vmem:[#allocation2 + $0x388] sm:$0xff] }
  0x53   :  { %4961 = vmatpush.bf16.msrb.mxu3 %v8294_v9  ;;  %4923 = vmatmul.bf16.vlgmr.msrb.gmra.mxu0 %v1251_v2  ;;  %v8336_v2 = vld [vmem:[#allocation2 + $0x310] sm:$0xff]  ;;  %v8359_v9 = vld [vmem:[#allocation2 + $0x3c8] sm:$0xff] }
  0x54   :  { %4967 = vmatpush.bf16.msra.mxu0 %v8309_v10  ;;  %4936 = vmatmul.bf16.vlgmr.msrb.gmra.mxu1 %v1252_v4  ;;  %v8352_v4 = vld [vmem:[#allocation2 + $0x390] sm:$0xff]  ;;  %v1261_v10 = vld [vmem:[#allocation1 + $0x24] sm:$0xff] }
  0x55   :  { %4980 = vmatpush.bf16.msra.mxu1 %v8317_v11  ;;  %4949 = vmatmul.bf16.vlgmr.msrb.gmra.mxu2 %v1253_v1  ;;  %v8361_v1 = vld [vmem:[#allocation2 + $0x3d8] sm:$0xff]  ;;  %v1263_v11 = vld [vmem:[#allocation1 + $0x36] sm:$0xff] }
  0x56   :  { %4993 = vmatpush.bf16.msra.mxu2 %v8325_v12  ;;  %4962 = vmatmul.bf16.vlgmr.msrb.gmra.mxu3 %v1254_v3  ;;  %v8344_v3 = vld [vmem:[#allocation2 + $0x350] sm:$0xff]  ;;  %v1262_v12 = vld [vmem:[#allocation1 + $0x2d] sm:$0xff] }
  0x57   :  { %5006 = vmatpush.bf16.msra.mxu3 %v8333_v13  ;;  %v1264_v13 = vld [vmem:[#allocation1 + $0x3f] sm:$0xff] }
  0x58   :  { %4968 = vmatpush.bf16.msra.mxu0 %v8308_v14  ;;  %v82_v14 = vld [vmem:[%s9056_s0 + $0x10] sm:$0xff] }
  0x59   :  { %4981 = vmatpush.bf16.msra.mxu1 %v8316_v15  ;;  %1266 = vst [vmem:[#allocation1] ss:$9 sm:$0xff] %v82_v14  ;;  %v8334_v15 = vld [vmem:[#allocation2 + $0x300] sm:$0xff]  ;;  %v8417_v14 = vld [vmem:[#allocation2 + $0x598] sm:$0xff] }
  0x5a   :  { %4994 = vmatpush.bf16.msra.mxu2 %v8324_v16  ;;  %v8342_v16 = vld [vmem:[#allocation2 + $0x340] sm:$0xff] }
  0x5b   :  { %5007 = vmatpush.bf16.msra.mxu3 %v8332_v17  ;;  %v8350_v17 = vld [vmem:[#allocation2 + $0x380] sm:$0xff] }
  0x5c   :  { %4969 = vmatpush.bf16.msra.mxu0 %v8307_v18  ;;  %v8358_v18 = vld [vmem:[#allocation2 + $0x3c0] sm:$0xff] }
  0x5d   :  { %4982 = vmatpush.bf16.msra.mxu1 %v8315_v19  ;;  %v8373_v19 = vld [vmem:[#allocation2 + $0x438] sm:$0xff] }
  0x5e   :  { %4995 = vmatpush.bf16.msra.mxu2 %v8323_v20  ;;  %v8381_v20 = vld [vmem:[#allocation2 + $0x478] sm:$0xff] }
  0x5f   :  { %5008 = vmatpush.bf16.msra.mxu3 %v8331_v21  ;;  %v8389_v21 = vld [vmem:[#allocation2 + $0x4b8] sm:$0xff] }
  0x60   :  { %4970 = vmatpush.bf16.msra.mxu0 %v8306_v22  ;;  %v8397_v22 = vld [vmem:[#allocation2 + $0x4f8] sm:$0xff] }
  0x61   :  { %4983 = vmatpush.bf16.msra.mxu1 %v8314_v23  ;;  %v8372_v23 = vld [vmem:[#allocation2 + $0x430] sm:$0xff] }
  0x62   :  { %4996 = vmatpush.bf16.msra.mxu2 %v8322_v24  ;;  %v8380_v24 = vld [vmem:[#allocation2 + $0x470] sm:$0xff] }
  0x63   :  { %5009 = vmatpush.bf16.msra.mxu3 %v8330_v25  ;;  %v8388_v25 = vld [vmem:[#allocation2 + $0x4b0] sm:$0xff] }
  0x64   :  { %4971 = vmatpush.bf16.msra.mxu0 %v8305_v26  ;;  %v8396_v26 = vld [vmem:[#allocation2 + $0x4f0] sm:$0xff] }
  0x65   :  { %4984 = vmatpush.bf16.msra.mxu1 %v8313_v27  ;;  %v8371_v27 = vld [vmem:[#allocation2 + $0x428] sm:$0xff] }
  0x66   :  { %4997 = vmatpush.bf16.msra.mxu2 %v8321_v28  ;;  %v8379_v28 = vld [vmem:[#allocation2 + $0x468] sm:$0xff] }
  0x67   :  { %5010 = vmatpush.bf16.msra.mxu3 %v8329_v29  ;;  %v8387_v29 = vld [vmem:[#allocation2 + $0x4a8] sm:$0xff] }
  0x68   :  { %4972 = vmatpush.bf16.msra.mxu0 %v8304_v30  ;;  %v8395_v30 = vld [vmem:[#allocation2 + $0x4e8] sm:$0xff] }
  0x69   :  { %4985 = vmatpush.bf16.msra.mxu1 %v8312_v31  ;;  %v8370_v31 = vld [vmem:[#allocation2 + $0x420] sm:$0xff] }
  0x6a   :  { %4998 = vmatpush.bf16.msra.mxu2 %v8320_v32  ;;  %v8378_v32 = vld [vmem:[#allocation2 + $0x460] sm:$0xff] }
  0x6b   :  { %5011 = vmatpush.bf16.msra.mxu3 %v8328_v33  ;;  %v8386_v33 = vld [vmem:[#allocation2 + $0x4a0] sm:$0xff] }
  0x6c   :  { %4973 = vmatpush.bf16.msra.mxu0 %v8303_v34  ;;  %v8394_v34 = vld [vmem:[#allocation2 + $0x4e0] sm:$0xff] }
  0x6d   :  { %4986 = vmatpush.bf16.msra.mxu1 %v8311_v35  ;;  %v8369_v35 = vld [vmem:[#allocation2 + $0x418] sm:$0xff] }
  0x6e   :  { %4999 = vmatpush.bf16.msra.mxu2 %v8319_v36  ;;  %v8377_v36 = vld [vmem:[#allocation2 + $0x458] sm:$0xff] }
  0x6f   :  { %5012 = vmatpush.bf16.msra.mxu3 %v8327_v37  ;;  %v8385_v37 = vld [vmem:[#allocation2 + $0x498] sm:$0xff] }
  0x70   :  { %4974 = vmatpush.bf16.msra.mxu0 %v8302_v38  ;;  %v8393_v38 = vld [vmem:[#allocation2 + $0x4d8] sm:$0xff] }
  0x71   :  { %4987 = vmatpush.bf16.msra.mxu1 %v8310_v39  ;;  %v8368_v39 = vld [vmem:[#allocation2 + $0x410] sm:$0xff] }
  0x72   :  { %5000 = vmatpush.bf16.msra.mxu2 %v8318_v40  ;;  %v8376_v40 = vld [vmem:[#allocation2 + $0x450] sm:$0xff] }
  0x73   :  { %5013 = vmatpush.bf16.msra.mxu3 %v8326_v41  ;;  %4975 = vmatmul.bf16.vlgmr.msra.gmra.mxu0 %v1257_v46  ;;  %v8384_v41 = vld [vmem:[#allocation2 + $0x490] sm:$0xff]  ;;  %v8391_v46 = vld [vmem:[#allocation2 + $0x4c8] sm:$0xff] }
  0x74   :  { %5019 = vmatpush.bf16.msrb.mxu0 %v8341_v42  ;;  %4988 = vmatmul.bf16.vlgmr.msra.gmra.mxu1 %v1258_v48  ;;  %v8392_v42 = vld [vmem:[#allocation2 + $0x4d0] sm:$0xff]  ;;  %v8374_v48 = vld [vmem:[#allocation2 + $0x440] sm:$0xff] }
  0x75   :  { %5032 = vmatpush.bf16.msrb.mxu1 %v8349_v43  ;;  %5001 = vmatmul.bf16.vlgmr.msra.gmra.mxu2 %v1259_v47  ;;  %v8367_v43 = vld [vmem:[#allocation2 + $0x408] sm:$0xff]  ;;  %v8366_v47 = vld [vmem:[#allocation2 + $0x400] sm:$0xff] }
  0x76   :  { %5045 = vmatpush.bf16.msrb.mxu2 %v8357_v44  ;;  %5014 = vmatmul.bf16.vlgmr.msra.gmra.mxu3 %v1260_v49  ;;  %v8375_v44 = vld [vmem:[#allocation2 + $0x448] sm:$0xff]  ;;  %v8382_v49 = vld [vmem:[#allocation2 + $0x480] sm:$0xff] }
  0x77   :  { %5058 = vmatpush.bf16.msrb.mxu3 %v8365_v45  ;;  %v8383_v45 = vld [vmem:[#allocation2 + $0x488] sm:$0xff] }
  0x78   :  { %5020 = vmatpush.bf16.msrb.mxu0 %v8340_v50  ;;  %v8390_v50 = vld [vmem:[#allocation2 + $0x4c0] sm:$0xff] }
  0x79   :  { %5033 = vmatpush.bf16.msrb.mxu1 %v8348_v51  ;;  %v8405_v51 = vld [vmem:[#allocation2 + $0x538] sm:$0xff] }
  0x7a   :  { %5046 = vmatpush.bf16.msrb.mxu2 %v8356_v52  ;;  %v8413_v52 = vld [vmem:[#allocation2 + $0x578] sm:$0xff] }
  0x7b   :  { %5059 = vmatpush.bf16.msrb.mxu3 %v8364_v53  ;;  %v8421_v53 = vld [vmem:[#allocation2 + $0x5b8] sm:$0xff] }
  0x7c   :  { %5021 = vmatpush.bf16.msrb.mxu0 %v8339_v54  ;;  %v8429_v54 = vld [vmem:[#allocation2 + $0x5f8] sm:$0xff] }
  0x7d   :  { %5034 = vmatpush.bf16.msrb.mxu1 %v8347_v55  ;;  %v1267_v55 = vld [vmem:[#allocation1] sm:$0xff] }
  0x7e   :  { %5047 = vmatpush.bf16.msrb.mxu2 %v8355_v56  ;;  %v1269_v56 = vld [vmem:[#allocation1 + $0x12] sm:$0xff] }
  0x7f   :  { %5060 = vmatpush.bf16.msrb.mxu3 %v8363_v57  ;;  %v1268_v57 = vld [vmem:[#allocation1 + $0x9] sm:$0xff] }
  0x80   :  { %5022 = vmatpush.bf16.msrb.mxu0 %v8338_v58  ;;  %v1270_v58 = vld [vmem:[#allocation1 + $0x1b] sm:$0xff] }
  0x81   :  { %5035 = vmatpush.bf16.msrb.mxu1 %v8346_v59  ;;  %v8404_v59 = vld [vmem:[#allocation2 + $0x530] sm:$0xff] }
  0x82   :  { %5048 = vmatpush.bf16.msrb.mxu2 %v8354_v60  ;;  %v8412_v60 = vld [vmem:[#allocation2 + $0x570] sm:$0xff] }
  0x83   :  { %5061 = vmatpush.bf16.msrb.mxu3 %v8362_v61  ;;  %v8420_v61 = vld [vmem:[#allocation2 + $0x5b0] sm:$0xff] }
  0x84   :  { %5023 = vmatpush.bf16.msrb.mxu0 %v8337_v62  ;;  %v8428_v62 = vld [vmem:[#allocation2 + $0x5f0] sm:$0xff] }
  0x85   :  { %5036 = vmatpush.bf16.msrb.mxu1 %v8345_v63  ;;  %v8403_v63 = vld [vmem:[#allocation2 + $0x528] sm:$0xff] }
  0x86   :  { %5049 = vmatpush.bf16.msrb.mxu2 %v8353_v0  ;;  %v8411_v0 = vld [vmem:[#allocation2 + $0x568] sm:$0xff] }
  0x87   :  { %5062 = vmatpush.bf16.msrb.mxu3 %v8361_v1  ;;  %v8829_v1 = vld [vmem:[#allocation5] ss:$0 sm:$0xff] }
  0x88   :  { %5024 = vmatpush.bf16.msrb.mxu0 %v8336_v2  ;;  %v8419_v2 = vld [vmem:[#allocation2 + $0x5a8] sm:$0xff] }
  0x89   :  { %5037 = vmatpush.bf16.msrb.mxu1 %v8344_v3  ;;  %v8427_v3 = vld [vmem:[#allocation2 + $0x5e8] sm:$0xff] }
  0x8a   :  { %5050 = vmatpush.bf16.msrb.mxu2 %v8352_v4 }
  0x8b   :  { %5063 = vmatpush.bf16.msrb.mxu3 %v8360_v5  ;;  %v8402_v5 = vld [vmem:[#allocation2 + $0x520] sm:$0xff] }
  0x8c   :  { %5025 = vmatpush.bf16.msrb.mxu0 %v8335_v6  ;;  %v8410_v6 = vld [vmem:[#allocation2 + $0x560] sm:$0xff] }
  0x8d   :  { %5038 = vmatpush.bf16.msrb.mxu1 %v8343_v7 }
  0x8e   :  { %5051 = vmatpush.bf16.msrb.mxu2 %v8351_v8 }
  0x8f   :  { %5064 = vmatpush.bf16.msrb.mxu3 %v8359_v9  ;;  %v8418_v9 = vld [vmem:[#allocation2 + $0x5a0] sm:$0xff] }
  0x90   :  { %5026 = vmatpush.bf16.msrb.mxu0 %v8334_v15  ;;  %v8425_v15 = vld [vmem:[#allocation2 + $0x5d8] sm:$0xff] }
  0x91   :  { %5039 = vmatpush.bf16.msrb.mxu1 %v8342_v16 }
  0x92   :  { %5052 = vmatpush.bf16.msrb.mxu2 %v8350_v17 }
  0x93   :  { %5065 = vmatpush.bf16.msrb.mxu3 %v8358_v18  ;;  %5027 = vmatmul.bf16.vlgmr.msrb.gmra.mxu0 %v1261_v10  ;;  %v8426_v10 = vld [vmem:[#allocation2 + $0x5e0] sm:$0xff] }
  0x94   :  { %5071 = vmatpush.bf16.msra.mxu0 %v8373_v19  ;;  %5040 = vmatmul.bf16.vlgmr.msrb.gmra.mxu1 %v1262_v12  ;;  %v8401_v12 = vld [vmem:[#allocation2 + $0x518] sm:$0xff] }
  0x95   :  { %5084 = vmatpush.bf16.msra.mxu1 %v8381_v20  ;;  %5053 = vmatmul.bf16.vlgmr.msrb.gmra.mxu2 %v1263_v11  ;;  %v8400_v20 = vld [vmem:[#allocation2 + $0x510] sm:$0xff] }
  0x96   :  { %5097 = vmatpush.bf16.msra.mxu2 %v8389_v21  ;;  %5066 = vmatmul.bf16.vlgmr.msrb.gmra.mxu3 %v1264_v13  ;;  %v8409_v13 = vld [vmem:[#allocation2 + $0x558] sm:$0xff]  ;;  %v8408_v21 = vld [vmem:[#allocation2 + $0x550] sm:$0xff] }
  0x97   :  { %5110 = vmatpush.bf16.msra.mxu3 %v8397_v22 }
  0x98   :  { %5072 = vmatpush.bf16.msra.mxu0 %v8372_v23 }
  0x99   :  { %5085 = vmatpush.bf16.msra.mxu1 %v8380_v24  ;;  %v8416_v24 = vld [vmem:[#allocation2 + $0x590] sm:$0xff] }
  0x9a   :  { %5098 = vmatpush.bf16.msra.mxu2 %v8388_v25  ;;  %v8424_v25 = vld [vmem:[#allocation2 + $0x5d0] sm:$0xff] }
  0x9b   :  { %5111 = vmatpush.bf16.msra.mxu3 %v8396_v26  ;;  %v8399_v26 = vld [vmem:[#allocation2 + $0x508] sm:$0xff] }
  0x9c   :  { %5073 = vmatpush.bf16.msra.mxu0 %v8371_v27  ;;  %v8407_v27 = vld [vmem:[#allocation2 + $0x548] sm:$0xff] }
  0x9d   :  { %5086 = vmatpush.bf16.msra.mxu1 %v8379_v28  ;;  %v8415_v28 = vld [vmem:[#allocation2 + $0x588] sm:$0xff] }
  0x9e   :  { %5099 = vmatpush.bf16.msra.mxu2 %v8387_v29  ;;  %v8423_v29 = vld [vmem:[#allocation2 + $0x5c8] sm:$0xff] }
  0x9f   :  { %5112 = vmatpush.bf16.msra.mxu3 %v8395_v30  ;;  %v1271_v30 = vld [vmem:[#allocation1 + $0x24] sm:$0xff] }
  0xa0   :  { %5074 = vmatpush.bf16.msra.mxu0 %v8370_v31  ;;  %v1273_v31 = vld [vmem:[#allocation1 + $0x36] sm:$0xff] }
  0xa1   :  { %5087 = vmatpush.bf16.msra.mxu1 %v8378_v32 }
  0xa2   :  { %5100 = vmatpush.bf16.msra.mxu2 %v8386_v33  ;;  %v1272_v33 = vld [vmem:[#allocation1 + $0x2d] sm:$0xff] }
  0xa3   :  { %5113 = vmatpush.bf16.msra.mxu3 %v8394_v34  ;;  %v1274_v34 = vld [vmem:[#allocation1 + $0x3f] sm:$0xff] }
  0xa4   :  { %5075 = vmatpush.bf16.msra.mxu0 %v8369_v35 }
  0xa5   :  { %5088 = vmatpush.bf16.msra.mxu1 %v8377_v36  ;;  %v83_v36 = vld [vmem:[%s9056_s0 + $0x18] sm:$0xff] }
  0xa6   :  { %5101 = vmatpush.bf16.msra.mxu2 %v8385_v37  ;;  %1276 = vst [vmem:[#allocation1] ss:$9 sm:$0xff] %v83_v36  ;;  %v8398_v37 = vld [vmem:[#allocation2 + $0x500] sm:$0xff]  ;;  %v8491_v36 = vld [vmem:[#allocation2 + $0x7e8] sm:$0xff] }
  0xa7   :  { %5114 = vmatpush.bf16.msra.mxu3 %v8393_v38  ;;  %v8406_v38 = vld [vmem:[#allocation2 + $0x540] sm:$0xff] }
  0xa8   :  { %5076 = vmatpush.bf16.msra.mxu0 %v8368_v39  ;;  %v8414_v39 = vld [vmem:[#allocation2 + $0x580] sm:$0xff] }
  0xa9   :  { %5089 = vmatpush.bf16.msra.mxu1 %v8376_v40  ;;  %v8422_v40 = vld [vmem:[#allocation2 + $0x5c0] sm:$0xff] }
  0xaa   :  { %5102 = vmatpush.bf16.msra.mxu2 %v8384_v41  ;;  %v8437_v41 = vld [vmem:[#allocation2 + $0x638] sm:$0xff] }
  0xab   :  { %5115 = vmatpush.bf16.msra.mxu3 %v8392_v42  ;;  %v8445_v42 = vld [vmem:[#allocation2 + $0x678] sm:$0xff] }
  0xac   :  { %5077 = vmatpush.bf16.msra.mxu0 %v8367_v43  ;;  %v8453_v43 = vld [vmem:[#allocation2 + $0x6b8] sm:$0xff] }
  0xad   :  { %5090 = vmatpush.bf16.msra.mxu1 %v8375_v44  ;;  %v8461_v44 = vld [vmem:[#allocation2 + $0x6f8] sm:$0xff] }
  0xae   :  { %5103 = vmatpush.bf16.msra.mxu2 %v8383_v45  ;;  %v8436_v45 = vld [vmem:[#allocation2 + $0x630] sm:$0xff] }
  0xaf   :  { %5116 = vmatpush.bf16.msra.mxu3 %v8391_v46  ;;  %v8444_v46 = vld [vmem:[#allocation2 + $0x670] sm:$0xff] }
  0xb0   :  { %5078 = vmatpush.bf16.msra.mxu0 %v8366_v47  ;;  %v4872_v4 = vpop.f32.mrf.mxu0  ;;  %v8452_v47 = vld [vmem:[#allocation2 + $0x6b0] sm:$0xff] }
  0xb1   :  { %5091 = vmatpush.bf16.msra.mxu1 %v8374_v48  ;;  %v4873_v7 = vadd.f32 %v8829_v1, %v4872_v4  ;;  %v4885_v8 = vpop.f32.mrf.mxu1  ;;  %v8460_v48 = vld [vmem:[#allocation2 + $0x6f0] sm:$0xff] }
  0xb2   :  { %5104 = vmatpush.bf16.msra.mxu2 %v8382_v49  ;;  %v8435_v49 = vld [vmem:[#allocation2 + $0x628] sm:$0xff] }
  0xb3   :  { %5117 = vmatpush.bf16.msra.mxu3 %v8390_v50  ;;  %5079 = vmatmul.bf16.vlgmr.msra.gmra.mxu0 %v1267_v55  ;;  %v4886_v11 = vadd.f32 %v4885_v8, %v4873_v7  ;;  %v8443_v50 = vld [vmem:[#allocation2 + $0x668] sm:$0xff]  ;;  %v8442_v55 = vld [vmem:[#allocation2 + $0x660] sm:$0xff] }
  0xb4   :  { %5123 = vmatpush.bf16.msrb.mxu0 %v8405_v51  ;;  %5092 = vmatmul.bf16.vlgmr.msra.gmra.mxu1 %v1268_v57  ;;  %v8451_v51 = vld [vmem:[#allocation2 + $0x6a8] sm:$0xff] }
  0xb5   :  { %5136 = vmatpush.bf16.msrb.mxu1 %v8413_v52  ;;  %5105 = vmatmul.bf16.vlgmr.msra.gmra.mxu2 %v1269_v56  ;;  %v8459_v52 = vld [vmem:[#allocation2 + $0x6e8] sm:$0xff] }
  0xb6   :  { %5149 = vmatpush.bf16.msrb.mxu2 %v8421_v53  ;;  %5118 = vmatmul.bf16.vlgmr.msra.gmra.mxu3 %v1270_v58  ;;  %v8450_v58 = vld [vmem:[#allocation2 + $0x6a0] sm:$0xff] }
  0xb7   :  { %5162 = vmatpush.bf16.msrb.mxu3 %v8429_v54  ;;  %v8434_v54 = vld [vmem:[#allocation2 + $0x620] sm:$0xff] }
  0xb8   :  { %5124 = vmatpush.bf16.msrb.mxu0 %v8404_v59  ;;  %v4898_v16 = vpop.f32.mrf.mxu2  ;;  %v4874_v19 = vpop.f32.mrf.mxu0  ;;  %v8458_v59 = vld [vmem:[#allocation2 + $0x6e0] sm:$0xff] }
  0xb9   :  { %5137 = vmatpush.bf16.msrb.mxu1 %v8412_v60  ;;  %v4899_v17 = vadd.f32 %v4898_v16, %v4886_v11  ;;  %v4911_v18 = vpop.f32.mrf.mxu3  ;;  %v4887_v23 = vpop.f32.mrf.mxu1  ;;  %v8431_v11 = vld [vmem:[#allocation2 + $0x608] sm:$0xff]  ;;  %v8446_v19 = vld [vmem:[#allocation2 + $0x680] sm:$0xff] }
  0xba   :  { %5150 = vmatpush.bf16.msrb.mxu2 %v8420_v61  ;;  %v8433_v61 = vld [vmem:[#allocation2 + $0x618] sm:$0xff] }
  0xbb   :  { %5163 = vmatpush.bf16.msrb.mxu3 %v8428_v62  ;;  %v9017_v22 = vadd.f32 %v4911_v18, %v4899_v17  ;;  %v8441_v62 = vld [vmem:[#allocation2 + $0x658] sm:$0xff]  ;;  %v8430_v17 = vld [vmem:[#allocation2 + $0x600] sm:$0xff] }
  0xbc   :  { %5125 = vmatpush.bf16.msrb.mxu0 %v8403_v63  ;;  %v8449_v63 = vld [vmem:[#allocation2 + $0x698] sm:$0xff]  ;;  %v8438_v18 = vld [vmem:[#allocation2 + $0x640] sm:$0xff] }
  0xbd   :  { %5138 = vmatpush.bf16.msrb.mxu1 %v8411_v0  ;;  %v8457_v0 = vld [vmem:[#allocation2 + $0x6d8] sm:$0xff] }
  0xbe   :  { %5151 = vmatpush.bf16.msrb.mxu2 %v8419_v2  ;;  %v8485_v23 = vld [vmem:[#allocation2 + $0x7b8] sm:$0xff] }
  0xbf   :  { %5164 = vmatpush.bf16.msrb.mxu3 %v8427_v3 }
  0xc0   :  { %5126 = vmatpush.bf16.msrb.mxu0 %v8402_v5  ;;  %v4900_v32 = vpop.f32.mrf.mxu2  ;;  %v8432_v5 = vld [vmem:[#allocation2 + $0x610] sm:$0xff] }
  0xc1   :  { %5139 = vmatpush.bf16.msrb.mxu1 %v8410_v6  ;;  %v4913_v35 = vpop.f32.mrf.mxu3  ;;  %v8440_v6 = vld [vmem:[#allocation2 + $0x650] sm:$0xff] }
  0xc2   :  { %5152 = vmatpush.bf16.msrb.mxu2 %v8418_v9  ;;  %v8448_v9 = vld [vmem:[#allocation2 + $0x690] sm:$0xff]  ;;  %v8483_v35 = vld [vmem:[#allocation2 + $0x7a8] sm:$0xff] }
  0xc3   :  { %5165 = vmatpush.bf16.msrb.mxu3 %v8426_v10  ;;  %v8456_v10 = vld [vmem:[#allocation2 + $0x6d0] sm:$0xff] }
  0xc4   :  { %5127 = vmatpush.bf16.msrb.mxu0 %v8401_v12  ;;  %v8439_v12 = vld [vmem:[#allocation2 + $0x648] sm:$0xff]  ;;  %v8492_v32 = vld [vmem:[#allocation2 + $0x7f0] sm:$0xff] }
  0xc5   :  { %5140 = vmatpush.bf16.msrb.mxu1 %v8409_v13  ;;  %v8447_v13 = vld [vmem:[#allocation2 + $0x688] sm:$0xff] }
  0xc6   :  { %5153 = vmatpush.bf16.msrb.mxu2 %v8417_v14  ;;  %v8455_v14 = vld [vmem:[#allocation2 + $0x6c8] sm:$0xff] }
  0xc7   :  { %5166 = vmatpush.bf16.msrb.mxu3 %v8425_v15 }
  0xc8   :  { %5128 = vmatpush.bf16.msrb.mxu0 %v8400_v20  ;;  %v8454_v20 = vld [vmem:[#allocation2 + $0x6c0] sm:$0xff] }
  0xc9   :  { %5141 = vmatpush.bf16.msrb.mxu1 %v8408_v21  ;;  %v8469_v21 = vld [vmem:[#allocation2 + $0x738] sm:$0xff] }
  0xca   :  { %5154 = vmatpush.bf16.msrb.mxu2 %v8416_v24  ;;  %v8493_v24 = vld [vmem:[#allocation2 + $0x7f8] sm:$0xff] }
  0xcb   :  { %5167 = vmatpush.bf16.msrb.mxu3 %v8424_v25  ;;  %v1277_v25 = vld [vmem:[#allocation1] sm:$0xff] }
  0xcc   :  { %5129 = vmatpush.bf16.msrb.mxu0 %v8399_v26  ;;  %v1279_v26 = vld [vmem:[#allocation1 + $0x12] sm:$0xff] }
  0xcd   :  { %5142 = vmatpush.bf16.msrb.mxu1 %v8407_v27  ;;  %v1278_v27 = vld [vmem:[#allocation1 + $0x9] sm:$0xff] }
  0xce   :  { %5155 = vmatpush.bf16.msrb.mxu2 %v8415_v28  ;;  %v1280_v28 = vld [vmem:[#allocation1 + $0x1b] sm:$0xff] }
  0xcf   :  { %5168 = vmatpush.bf16.msrb.mxu3 %v8423_v29  ;;  %v8468_v29 = vld [vmem:[#allocation2 + $0x730] sm:$0xff] }
  0xd0   :  { %5130 = vmatpush.bf16.msrb.mxu0 %v8398_v37  ;;  %v4924_v53 = vpop.f32.mrf.mxu0 }
  0xd1   :  { %5143 = vmatpush.bf16.msrb.mxu1 %v8406_v38  ;;  %v4925_v56 = vadd.f32 %v4924_v53, %v9017_v22  ;;  %v4937_v57 = vpop.f32.mrf.mxu1  ;;  %v8477_v22 = vld [vmem:[#allocation2 + $0x778] sm:$0xff] }
  0xd2   :  { %5156 = vmatpush.bf16.msrb.mxu2 %v8414_v39  ;;  %v8466_v39 = vld [vmem:[#allocation2 + $0x720] sm:$0xff] }
  0xd3   :  { %5169 = vmatpush.bf16.msrb.mxu3 %v8422_v40  ;;  %5131 = vmatmul.bf16.vlgmr.msrb.gmra.mxu0 %v1271_v30  ;;  %v4938_v60 = vadd.f32 %v4937_v57, %v4925_v56  ;;  %v8476_v30 = vld [vmem:[#allocation2 + $0x770] sm:$0xff]  ;;  %v8474_v40 = vld [vmem:[#allocation2 + $0x760] sm:$0xff] }
  0xd4   :  { %5175 = vmatpush.bf16.msra.mxu0 %v8437_v41  ;;  %5144 = vmatmul.bf16.vlgmr.msrb.gmra.mxu1 %v1272_v33  ;;  %v8467_v33 = vld [vmem:[#allocation2 + $0x728] sm:$0xff]  ;;  %v8480_v57 = vld [vmem:[#allocation2 + $0x790] sm:$0xff] }
  0xd5   :  { %5188 = vmatpush.bf16.msra.mxu1 %v8445_v42  ;;  %5157 = vmatmul.bf16.vlgmr.msrb.gmra.mxu2 %v1273_v31  ;;  %v8484_v31 = vld [vmem:[#allocation2 + $0x7b0] sm:$0xff]  ;;  %v8482_v42 = vld [vmem:[#allocation2 + $0x7a0] sm:$0xff] }
  0xd6   :  { %5201 = vmatpush.bf16.msra.mxu2 %v8453_v43  ;;  %5170 = vmatmul.bf16.vlgmr.msrb.gmra.mxu3 %v1274_v34  ;;  %v8475_v34 = vld [vmem:[#allocation2 + $0x768] sm:$0xff]  ;;  %v8490_v43 = vld [vmem:[#allocation2 + $0x7e0] sm:$0xff] }
  0xd7   :  { %5214 = vmatpush.bf16.msra.mxu3 %v8461_v44 }
  0xd8   :  { %5176 = vmatpush.bf16.msra.mxu0 %v8436_v45  ;;  %v4950_v1 = vpop.f32.mrf.mxu2  ;;  %v4926_v4 = vpop.f32.mrf.mxu0  ;;  %v8465_v45 = vld [vmem:[#allocation2 + $0x718] sm:$0xff] }
  0xd9   :  { %5189 = vmatpush.bf16.msra.mxu1 %v8444_v46  ;;  %v4951_v2 = vadd.f32 %v4950_v1, %v4938_v60  ;;  %v4963_v3 = vpop.f32.mrf.mxu3  ;;  %v4939_v8 = vpop.f32.mrf.mxu1  ;;  %v8473_v46 = vld [vmem:[#allocation2 + $0x758] sm:$0xff]  ;;  %v8471_v60 = vld [vmem:[#allocation2 + $0x748] sm:$0xff] }
  0xda   :  { %5202 = vmatpush.bf16.msra.mxu2 %v8452_v47  ;;  %v8481_v47 = vld [vmem:[#allocation2 + $0x798] sm:$0xff]  ;;  %v8478_v8 = vld [vmem:[#allocation2 + $0x780] sm:$0xff] }
  0xdb   :  { %5215 = vmatpush.bf16.msra.mxu3 %v8460_v48  ;;  %v4964_v7 = vadd.f32 %v4963_v3, %v4951_v2  ;;  %v8489_v48 = vld [vmem:[#allocation2 + $0x7d8] sm:$0xff]  ;;  %v1282_v2 = vld [vmem:[#allocation1 + $0x2d] sm:$0xff] }
  0xdc   :  { %5177 = vmatpush.bf16.msra.mxu0 %v8435_v49  ;;  %v1284_v3 = vld [vmem:[#allocation1 + $0x3f] sm:$0xff] }
  0xdd   :  { %5190 = vmatpush.bf16.msra.mxu1 %v8443_v50 }
  0xde   :  { %5203 = vmatpush.bf16.msra.mxu2 %v8451_v51 }
  0xdf   :  { %5216 = vmatpush.bf16.msra.mxu3 %v8459_v52 }
  0xe0   :  { %5178 = vmatpush.bf16.msra.mxu0 %v8434_v54  ;;  %v4952_v15 = vpop.f32.mrf.mxu2  ;;  %v8464_v54 = vld [vmem:[#allocation2 + $0x710] sm:$0xff] }
  0xe1   :  { %5191 = vmatpush.bf16.msra.mxu1 %v8442_v55  ;;  %v4965_v16 = vpop.f32.mrf.mxu3  ;;  %v8472_v55 = vld [vmem:[#allocation2 + $0x750] sm:$0xff] }
  0xe2   :  { %5204 = vmatpush.bf16.msra.mxu2 %v8450_v58  ;;  %v8488_v58 = vld [vmem:[#allocation2 + $0x7d0] sm:$0xff] }
  0xe3   :  { %5217 = vmatpush.bf16.msra.mxu3 %v8458_v59  ;;  %v8463_v59 = vld [vmem:[#allocation2 + $0x708] sm:$0xff]  ;;  %v8508_v15 = vld [vmem:[#allocation2 + $0x870] sm:$0xff] }
  0xe4   :  { %5179 = vmatpush.bf16.msra.mxu0 %v8433_v61  ;;  %v8479_v61 = vld [vmem:[#allocation2 + $0x788] sm:$0xff]  ;;  %v8516_v16 = vld [vmem:[#allocation2 + $0x8b0] sm:$0xff] }
  0xe5   :  { %5192 = vmatpush.bf16.msra.mxu1 %v8441_v62  ;;  %v8487_v62 = vld [vmem:[#allocation2 + $0x7c8] sm:$0xff] }
  0xe6   :  { %5205 = vmatpush.bf16.msra.mxu2 %v8449_v63  ;;  %v1281_v63 = vld [vmem:[#allocation1 + $0x24] sm:$0xff] }
  0xe7   :  { %5218 = vmatpush.bf16.msra.mxu3 %v8457_v0  ;;  %v1283_v0 = vld [vmem:[#allocation1 + $0x36] sm:$0xff] }
  0xe8   :  { %5180 = vmatpush.bf16.msra.mxu0 %v8432_v5  ;;  %v84_v5 = vld [vmem:[%s9056_s0 + $0x20] sm:$0xff] }
  0xe9   :  { %5193 = vmatpush.bf16.msra.mxu1 %v8440_v6  ;;  %1286 = vst [vmem:[#allocation1] ss:$9 sm:$0xff] %v84_v5  ;;  %v8462_v6 = vld [vmem:[#allocation2 + $0x700] sm:$0xff]  ;;  %v8555_v5 = vld [vmem:[#allocation2 + $0x9e8] sm:$0xff] }
  0xea   :  { %5206 = vmatpush.bf16.msra.mxu2 %v8448_v9  ;;  %v8486_v9 = vld [vmem:[#allocation2 + $0x7c0] sm:$0xff] }
  0xeb   :  { %5219 = vmatpush.bf16.msra.mxu3 %v8456_v10  ;;  %v8501_v10 = vld [vmem:[#allocation2 + $0x838] sm:$0xff] }
  0xec   :  { %5181 = vmatpush.bf16.msra.mxu0 %v8431_v11  ;;  %v8509_v11 = vld [vmem:[#allocation2 + $0x878] sm:$0xff] }
  0xed   :  { %5194 = vmatpush.bf16.msra.mxu1 %v8439_v12  ;;  %v8517_v12 = vld [vmem:[#allocation2 + $0x8b8] sm:$0xff] }
  0xee   :  { %5207 = vmatpush.bf16.msra.mxu2 %v8447_v13  ;;  %v8525_v13 = vld [vmem:[#allocation2 + $0x8f8] sm:$0xff] }
  0xef   :  { %5220 = vmatpush.bf16.msra.mxu3 %v8455_v14  ;;  %v8500_v14 = vld [vmem:[#allocation2 + $0x830] sm:$0xff] }
  0xf0   :  { %5182 = vmatpush.bf16.msra.mxu0 %v8430_v17  ;;  %v4976_v37 = vpop.f32.mrf.mxu0  ;;  %v8524_v17 = vld [vmem:[#allocation2 + $0x8f0] sm:$0xff] }
  0xf1   :  { %5195 = vmatpush.bf16.msra.mxu1 %v8438_v18  ;;  %v4977_v38 = vadd.f32 %v4976_v37, %v4964_v7  ;;  %v4989_v41 = vpop.f32.mrf.mxu1  ;;  %v8470_v7 = vld [vmem:[#allocation2 + $0x740] sm:$0xff]  ;;  %v8499_v18 = vld [vmem:[#allocation2 + $0x828] sm:$0xff] }
  0xf2   :  { %5208 = vmatpush.bf16.msra.mxu2 %v8446_v19  ;;  %v8507_v19 = vld [vmem:[#allocation2 + $0x868] sm:$0xff] }
  0xf3   :  { %5221 = vmatpush.bf16.msra.mxu3 %v8454_v20  ;;  %5183 = vmatmul.bf16.vlgmr.msra.gmra.mxu0 %v1277_v25  ;;  %v4990_v44 = vadd.f32 %v4989_v41, %v4977_v38  ;;  %v8515_v20 = vld [vmem:[#allocation2 + $0x8a8] sm:$0xff]  ;;  %v8506_v25 = vld [vmem:[#allocation2 + $0x860] sm:$0xff] }
  0xf4   :  { %5227 = vmatpush.bf16.msrb.mxu0 %v8469_v21  ;;  %5196 = vmatmul.bf16.vlgmr.msra.gmra.mxu1 %v1278_v27  ;;  %v8523_v21 = vld [vmem:[#allocation2 + $0x8e8] sm:$0xff]  ;;  %v8514_v27 = vld [vmem:[#allocation2 + $0x8a0] sm:$0xff] }
  0xf5   :  { %5240 = vmatpush.bf16.msrb.mxu1 %v8477_v22  ;;  %5209 = vmatmul.bf16.vlgmr.msra.gmra.mxu2 %v1279_v26 }
  0xf6   :  { %5253 = vmatpush.bf16.msrb.mxu2 %v8485_v23  ;;  %5222 = vmatmul.bf16.vlgmr.msra.gmra.mxu3 %v1280_v28  ;;  %v8522_v28 = vld [vmem:[#allocation2 + $0x8e0] sm:$0xff] }
  0xf7   :  { %5266 = vmatpush.bf16.msrb.mxu3 %v8493_v24  ;;  %v8498_v24 = vld [vmem:[#allocation2 + $0x820] sm:$0xff] }
  0xf8   :  { %5228 = vmatpush.bf16.msrb.mxu0 %v8468_v29  ;;  %v5002_v49 = vpop.f32.mrf.mxu2  ;;  %v4978_v52 = vpop.f32.mrf.mxu0 }
  0xf9   :  { %5241 = vmatpush.bf16.msrb.mxu1 %v8476_v30  ;;  %v5003_v50 = vadd.f32 %v5002_v49, %v4990_v44  ;;  %v5015_v51 = vpop.f32.mrf.mxu3  ;;  %v4991_v56 = vpop.f32.mrf.mxu1  ;;  %v8497_v30 = vld [vmem:[#allocation2 + $0x818] sm:$0xff]  ;;  %v8495_v44 = vld [vmem:[#allocation2 + $0x808] sm:$0xff]  ;;  %v8510_v52 = vld [vmem:[#allocation2 + $0x880] sm:$0xff] }
  0xfa   :  { %5254 = vmatpush.bf16.msrb.mxu2 %v8484_v31  ;;  %v8505_v31 = vld [vmem:[#allocation2 + $0x858] sm:$0xff] }
  0xfb   :  { %5267 = vmatpush.bf16.msrb.mxu3 %v8492_v32  ;;  %v9023_v53 = vadd.f32 %v5015_v51, %v5003_v50  ;;  %v8513_v32 = vld [vmem:[#allocation2 + $0x898] sm:$0xff]  ;;  %v8494_v50 = vld [vmem:[#allocation2 + $0x800] sm:$0xff] }
  0xfc   :  { %5229 = vmatpush.bf16.msrb.mxu0 %v8467_v33  ;;  %v8521_v33 = vld [vmem:[#allocation2 + $0x8d8] sm:$0xff]  ;;  %v8502_v51 = vld [vmem:[#allocation2 + $0x840] sm:$0xff] }
  0xfd   :  { %5242 = vmatpush.bf16.msrb.mxu1 %v8475_v34  ;;  %v8549_v56 = vld [vmem:[#allocation2 + $0x9b8] sm:$0xff] }
  0xfe   :  { %5255 = vmatpush.bf16.msrb.mxu2 %v8483_v35 }
  0xff   :  { %5268 = vmatpush.bf16.msrb.mxu3 %v8491_v36 }
 0x100   :  { %5230 = vmatpush.bf16.msrb.mxu0 %v8466_v39  ;;  %v5004_v1 = vpop.f32.mrf.mxu2  ;;  %v8496_v39 = vld [vmem:[#allocation2 + $0x810] sm:$0xff] }
 0x101   :  { %5243 = vmatpush.bf16.msrb.mxu1 %v8474_v40  ;;  %v5017_v4 = vpop.f32.mrf.mxu3  ;;  %v8504_v40 = vld [vmem:[#allocation2 + $0x850] sm:$0xff] }
 0x102   :  { %5256 = vmatpush.bf16.msrb.mxu2 %v8482_v42  ;;  %v8512_v42 = vld [vmem:[#allocation2 + $0x890] sm:$0xff]  ;;  %v8547_v4 = vld [vmem:[#allocation2 + $0x9a8] sm:$0xff] }
 0x103   :  { %5269 = vmatpush.bf16.msrb.mxu3 %v8490_v43  ;;  %v8520_v43 = vld [vmem:[#allocation2 + $0x8d0] sm:$0xff] }
 0x104   :  { %5231 = vmatpush.bf16.msrb.mxu0 %v8465_v45  ;;  %v8503_v45 = vld [vmem:[#allocation2 + $0x848] sm:$0xff]  ;;  %v8556_v1 = vld [vmem:[#allocation2 + $0x9f0] sm:$0xff] }
 0x105   :  { %5244 = vmatpush.bf16.msrb.mxu1 %v8473_v46  ;;  %v8511_v46 = vld [vmem:[#allocation2 + $0x888] sm:$0xff] }
 0x106   :  { %5257 = vmatpush.bf16.msrb.mxu2 %v8481_v47  ;;  %v8519_v47 = vld [vmem:[#allocation2 + $0x8c8] sm:$0xff] }
 0x107   :  { %5270 = vmatpush.bf16.msrb.mxu3 %v8489_v48 }
 0x108   :  { %5232 = vmatpush.bf16.msrb.mxu0 %v8464_v54  ;;  %v8533_v54 = vld [vmem:[#allocation2 + $0x938] sm:$0xff] }
 0x109   :  { %5245 = vmatpush.bf16.msrb.mxu1 %v8472_v55  ;;  %v8541_v55 = vld [vmem:[#allocation2 + $0x978] sm:$0xff] }
 0x10a   :  { %5258 = vmatpush.bf16.msrb.mxu2 %v8480_v57  ;;  %v8557_v57 = vld [vmem:[#allocation2 + $0x9f8] sm:$0xff] }
 0x10b   :  { %5271 = vmatpush.bf16.msrb.mxu3 %v8488_v58  ;;  %v1287_v58 = vld [vmem:[#allocation1] sm:$0xff] }
 0x10c   :  { %5233 = vmatpush.bf16.msrb.mxu0 %v8463_v59  ;;  %v1289_v59 = vld [vmem:[#allocation1 + $0x12] sm:$0xff] }
 0x10d   :  { %5246 = vmatpush.bf16.msrb.mxu1 %v8471_v60  ;;  %v1288_v60 = vld [vmem:[#allocation1 + $0x9] sm:$0xff] }
 0x10e   :  { %5259 = vmatpush.bf16.msrb.mxu2 %v8479_v61  ;;  %v1290_v61 = vld [vmem:[#allocation1 + $0x1b] sm:$0xff] }
 0x10f   :  { %5272 = vmatpush.bf16.msrb.mxu3 %v8487_v62  ;;  %v8532_v62 = vld [vmem:[#allocation2 + $0x930] sm:$0xff] }
 0x110   :  { %5234 = vmatpush.bf16.msrb.mxu0 %v8462_v6  ;;  %v5028_v22 = vpop.f32.mrf.mxu0 }
 0x111   :  { %5247 = vmatpush.bf16.msrb.mxu1 %v8470_v7  ;;  %v5029_v23 = vadd.f32 %v5028_v22, %v9023_v53  ;;  %v5041_v26 = vpop.f32.mrf.mxu1  ;;  %v8518_v53 = vld [vmem:[#allocation2 + $0x8c0] sm:$0xff] }
 0x112   :  { %5260 = vmatpush.bf16.msrb.mxu2 %v8478_v8  ;;  %v8530_v8 = vld [vmem:[#allocation2 + $0x920] sm:$0xff] }
 0x113   :  { %5273 = vmatpush.bf16.msrb.mxu3 %v8486_v9  ;;  %5235 = vmatmul.bf16.vlgmr.msrb.gmra.mxu0 %v1281_v63  ;;  %v5042_v29 = vadd.f32 %v5041_v26, %v5029_v23  ;;  %v8540_v63 = vld [vmem:[#allocation2 + $0x970] sm:$0xff]  ;;  %v8538_v9 = vld [vmem:[#allocation2 + $0x960] sm:$0xff] }
 0x114   :  { %5279 = vmatpush.bf16.msra.mxu0 %v8501_v10  ;;  %5248 = vmatmul.bf16.vlgmr.msrb.gmra.mxu1 %v1282_v2  ;;  %v8531_v2 = vld [vmem:[#allocation2 + $0x928] sm:$0xff]  ;;  %v8528_v23 = vld [vmem:[#allocation2 + $0x910] sm:$0xff] }
 0x115   :  { %5292 = vmatpush.bf16.msra.mxu1 %v8509_v11  ;;  %5261 = vmatmul.bf16.vlgmr.msrb.gmra.mxu2 %v1283_v0  ;;  %v8548_v0 = vld [vmem:[#allocation2 + $0x9b0] sm:$0xff]  ;;  %v8546_v11 = vld [vmem:[#allocation2 + $0x9a0] sm:$0xff] }
 0x116   :  { %5305 = vmatpush.bf16.msra.mxu2 %v8517_v12  ;;  %5274 = vmatmul.bf16.vlgmr.msrb.gmra.mxu3 %v1284_v3  ;;  %v8539_v3 = vld [vmem:[#allocation2 + $0x968] sm:$0xff]  ;;  %v8554_v12 = vld [vmem:[#allocation2 + $0x9e0] sm:$0xff]  ;;  %v8544_v26 = vld [vmem:[#allocation2 + $0x990] sm:$0xff] }
 0x117   :  { %5318 = vmatpush.bf16.msra.mxu3 %v8525_v13 }
 0x118   :  { %5280 = vmatpush.bf16.msra.mxu0 %v8500_v14  ;;  %v5054_v34 = vpop.f32.mrf.mxu2  ;;  %v5030_v37 = vpop.f32.mrf.mxu0  ;;  %v8529_v14 = vld [vmem:[#allocation2 + $0x918] sm:$0xff] }
 0x119   :  { %5293 = vmatpush.bf16.msra.mxu1 %v8508_v15  ;;  %v5055_v35 = vadd.f32 %v5054_v34, %v5042_v29  ;;  %v5067_v36 = vpop.f32.mrf.mxu3  ;;  %v5043_v41 = vpop.f32.mrf.mxu1  ;;  %v8537_v15 = vld [vmem:[#allocation2 + $0x958] sm:$0xff]  ;;  %v8535_v29 = vld [vmem:[#allocation2 + $0x948] sm:$0xff] }
 0x11a   :  { %5306 = vmatpush.bf16.msra.mxu2 %v8516_v16  ;;  %v8545_v16 = vld [vmem:[#allocation2 + $0x998] sm:$0xff]  ;;  %v8542_v41 = vld [vmem:[#allocation2 + $0x980] sm:$0xff] }
 0x11b   :  { %5319 = vmatpush.bf16.msra.mxu3 %v8524_v17  ;;  %v5068_v38 = vadd.f32 %v5067_v36, %v5055_v35  ;;  %v8553_v17 = vld [vmem:[#allocation2 + $0x9d8] sm:$0xff]  ;;  %v1292_v35 = vld [vmem:[#allocation1 + $0x2d] sm:$0xff] }
 0x11c   :  { %5281 = vmatpush.bf16.msra.mxu0 %v8499_v18  ;;  %v1294_v36 = vld [vmem:[#allocation1 + $0x3f] sm:$0xff] }
 0x11d   :  { %5294 = vmatpush.bf16.msra.mxu1 %v8507_v19 }
 0x11e   :  { %5307 = vmatpush.bf16.msra.mxu2 %v8515_v20 }
 0x11f   :  { %5320 = vmatpush.bf16.msra.mxu3 %v8523_v21 }
 0x120   :  { %5282 = vmatpush.bf16.msra.mxu0 %v8498_v24  ;;  %v5056_v48 = vpop.f32.mrf.mxu2  ;;  %v8536_v24 = vld [vmem:[#allocation2 + $0x950] sm:$0xff] }
 0x121   :  { %5295 = vmatpush.bf16.msra.mxu1 %v8506_v25  ;;  %v5069_v49 = vpop.f32.mrf.mxu3  ;;  %v8572_v48 = vld [vmem:[#allocation2 + $0xa70] sm:$0xff] }
 0x122   :  { %5308 = vmatpush.bf16.msra.mxu2 %v8514_v27  ;;  %v8552_v27 = vld [vmem:[#allocation2 + $0x9d0] sm:$0xff] }
 0x123   :  { %5321 = vmatpush.bf16.msra.mxu3 %v8522_v28  ;;  %v8527_v28 = vld [vmem:[#allocation2 + $0x908] sm:$0xff]  ;;  %v8580_v49 = vld [vmem:[#allocation2 + $0xab0] sm:$0xff] }
 0x124   :  { %5283 = vmatpush.bf16.msra.mxu0 %v8497_v30  ;;  %v8543_v30 = vld [vmem:[#allocation2 + $0x988] sm:$0xff] }
 0x125   :  { %5296 = vmatpush.bf16.msra.mxu1 %v8505_v31  ;;  %v8551_v31 = vld [vmem:[#allocation2 + $0x9c8] sm:$0xff] }
 0x126   :  { %5309 = vmatpush.bf16.msra.mxu2 %v8513_v32  ;;  %v1291_v32 = vld [vmem:[#allocation1 + $0x24] sm:$0xff] }
 0x127   :  { %5322 = vmatpush.bf16.msra.mxu3 %v8521_v33  ;;  %v1293_v33 = vld [vmem:[#allocation1 + $0x36] sm:$0xff] }
 0x128   :  { %5284 = vmatpush.bf16.msra.mxu0 %v8496_v39  ;;  %v8526_v39 = vld [vmem:[#allocation2 + $0x900] sm:$0xff] }
 0x129   :  { %5297 = vmatpush.bf16.msra.mxu1 %v8504_v40  ;;  %v8534_v40 = vld [vmem:[#allocation2 + $0x940] sm:$0xff] }
 0x12a   :  { %5310 = vmatpush.bf16.msra.mxu2 %v8512_v42  ;;  %v8550_v42 = vld [vmem:[#allocation2 + $0x9c0] sm:$0xff] }
 0x12b   :  { %5323 = vmatpush.bf16.msra.mxu3 %v8520_v43  ;;  %v8565_v43 = vld [vmem:[#allocation2 + $0xa38] sm:$0xff] }
 0x12c   :  { %5285 = vmatpush.bf16.msra.mxu0 %v8495_v44  ;;  %v8573_v44 = vld [vmem:[#allocation2 + $0xa78] sm:$0xff] }
 0x12d   :  { %5298 = vmatpush.bf16.msra.mxu1 %v8503_v45  ;;  %v8581_v45 = vld [vmem:[#allocation2 + $0xab8] sm:$0xff] }
 0x12e   :  { %5311 = vmatpush.bf16.msra.mxu2 %v8511_v46  ;;  %v8589_v46 = vld [vmem:[#allocation2 + $0xaf8] sm:$0xff] }
 0x12f   :  { %5324 = vmatpush.bf16.msra.mxu3 %v8519_v47  ;;  %v8564_v47 = vld [vmem:[#allocation2 + $0xa30] sm:$0xff] }
 0x130   :  { %5286 = vmatpush.bf16.msra.mxu0 %v8494_v50  ;;  %v5080_v6 = vpop.f32.mrf.mxu0  ;;  %v8588_v50 = vld [vmem:[#allocation2 + $0xaf0] sm:$0xff] }
 0x131   :  { %5299 = vmatpush.bf16.msra.mxu1 %v8502_v51  ;;  %v5081_v7 = vadd.f32 %v5080_v6, %v5068_v38  ;;  %v5093_v10 = vpop.f32.mrf.mxu1  ;;  %v85_v38 = vld [vmem:[%s9056_s0 + $0x28] sm:$0xff]  ;;  %v8563_v51 = vld [vmem:[#allocation2 + $0xa28] sm:$0xff] }
 0x132   :  { %5312 = vmatpush.bf16.msra.mxu2 %v8510_v52  ;;  %1296 = vst [vmem:[#allocation1] ss:$9 sm:$0xff] %v85_v38  ;;  %v8571_v52 = vld [vmem:[#allocation2 + $0xa68] sm:$0xff] }
 0x133   :  { %5325 = vmatpush.bf16.msra.mxu3 %v8518_v53  ;;  %5287 = vmatmul.bf16.vlgmr.msra.gmra.mxu0 %v1287_v58  ;;  %v5094_v13 = vadd.f32 %v5093_v10, %v5081_v7  ;;  %v8579_v53 = vld [vmem:[#allocation2 + $0xaa8] sm:$0xff]  ;;  %v8570_v58 = vld [vmem:[#allocation2 + $0xa60] sm:$0xff] }
 0x134   :  { %5331 = vmatpush.bf16.msrb.mxu0 %v8533_v54  ;;  %5300 = vmatmul.bf16.vlgmr.msra.gmra.mxu1 %v1288_v60  ;;  %v8587_v54 = vld [vmem:[#allocation2 + $0xae8] sm:$0xff]  ;;  %v8578_v60 = vld [vmem:[#allocation2 + $0xaa0] sm:$0xff] }
 0x135   :  { %5344 = vmatpush.bf16.msrb.mxu1 %v8541_v55  ;;  %5313 = vmatmul.bf16.vlgmr.msra.gmra.mxu2 %v1289_v59  ;;  %v8619_v38 = vld [vmem:[#allocation2 + $0xbe8] sm:$0xff] }
 0x136   :  { %5357 = vmatpush.bf16.msrb.mxu2 %v8549_v56  ;;  %5326 = vmatmul.bf16.vlgmr.msra.gmra.mxu3 %v1290_v61  ;;  %v8586_v61 = vld [vmem:[#allocation2 + $0xae0] sm:$0xff] }
 0x137   :  { %5370 = vmatpush.bf16.msrb.mxu3 %v8557_v57  ;;  %v8562_v57 = vld [vmem:[#allocation2 + $0xa20] sm:$0xff] }
 0x138   :  { %5332 = vmatpush.bf16.msrb.mxu0 %v8532_v62  ;;  %v5106_v18 = vpop.f32.mrf.mxu2  ;;  %v5082_v21 = vpop.f32.mrf.mxu0 }
 0x139   :  { %5345 = vmatpush.bf16.msrb.mxu1 %v8540_v63  ;;  %v5107_v19 = vadd.f32 %v5106_v18, %v5094_v13  ;;  %v5119_v20 = vpop.f32.mrf.mxu3  ;;  %v5095_v25 = vpop.f32.mrf.mxu1  ;;  %v8561_v63 = vld [vmem:[#allocation2 + $0xa18] sm:$0xff]  ;;  %v8559_v13 = vld [vmem:[#allocation2 + $0xa08] sm:$0xff]  ;;  %v8574_v21 = vld [vmem:[#allocation2 + $0xa80] sm:$0xff] }
 0x13a   :  { %5358 = vmatpush.bf16.msrb.mxu2 %v8548_v0  ;;  %v8569_v0 = vld [vmem:[#allocation2 + $0xa58] sm:$0xff] }
 0x13b   :  { %5371 = vmatpush.bf16.msrb.mxu3 %v8556_v1  ;;  %v9029_v22 = vadd.f32 %v5119_v20, %v5107_v19  ;;  %v8577_v1 = vld [vmem:[#allocation2 + $0xa98] sm:$0xff]  ;;  %v8558_v19 = vld [vmem:[#allocation2 + $0xa00] sm:$0xff] }
 0x13c   :  { %5333 = vmatpush.bf16.msrb.mxu0 %v8531_v2  ;;  %v8585_v2 = vld [vmem:[#allocation2 + $0xad8] sm:$0xff]  ;;  %v8566_v20 = vld [vmem:[#allocation2 + $0xa40] sm:$0xff] }
 0x13d   :  { %5346 = vmatpush.bf16.msrb.mxu1 %v8539_v3  ;;  %v8613_v25 = vld [vmem:[#allocation2 + $0xbb8] sm:$0xff] }
 0x13e   :  { %5359 = vmatpush.bf16.msrb.mxu2 %v8547_v4 }
 0x13f   :  { %5372 = vmatpush.bf16.msrb.mxu3 %v8555_v5 }
 0x140   :  { %5334 = vmatpush.bf16.msrb.mxu0 %v8530_v8  ;;  %v5108_v34 = vpop.f32.mrf.mxu2  ;;  %v8560_v8 = vld [vmem:[#allocation2 + $0xa10] sm:$0xff] }
 0x141   :  { %5347 = vmatpush.bf16.msrb.mxu1 %v8538_v9  ;;  %v5121_v37 = vpop.f32.mrf.mxu3  ;;  %v8568_v9 = vld [vmem:[#allocation2 + $0xa50] sm:$0xff] }
 0x142   :  { %5360 = vmatpush.bf16.msrb.mxu2 %v8546_v11  ;;  %v8576_v11 = vld [vmem:[#allocation2 + $0xa90] sm:$0xff]  ;;  %v8611_v37 = vld [vmem:[#allocation2 + $0xba8] sm:$0xff] }
 0x143   :  { %5373 = vmatpush.bf16.msrb.mxu3 %v8554_v12  ;;  %v8584_v12 = vld [vmem:[#allocation2 + $0xad0] sm:$0xff] }
 0x144   :  { %5335 = vmatpush.bf16.msrb.mxu0 %v8529_v14  ;;  %v8567_v14 = vld [vmem:[#allocation2 + $0xa48] sm:$0xff]  ;;  %v8620_v34 = vld [vmem:[#allocation2 + $0xbf0] sm:$0xff] }
 0x145   :  { %5348 = vmatpush.bf16.msrb.mxu1 %v8537_v15  ;;  %v8575_v15 = vld [vmem:[#allocation2 + $0xa88] sm:$0xff] }
 0x146   :  { %5361 = vmatpush.bf16.msrb.mxu2 %v8545_v16  ;;  %v8583_v16 = vld [vmem:[#allocation2 + $0xac8] sm:$0xff] }
 0x147   :  { %5374 = vmatpush.bf16.msrb.mxu3 %v8553_v17 }
 0x148   :  { %5336 = vmatpush.bf16.msrb.mxu0 %v8528_v23  ;;  %v8597_v23 = vld [vmem:[#allocation2 + $0xb38] sm:$0xff] }
 0x149   :  { %5349 = vmatpush.bf16.msrb.mxu1 %v8536_v24  ;;  %v8605_v24 = vld [vmem:[#allocation2 + $0xb78] sm:$0xff] }
 0x14a   :  { %5362 = vmatpush.bf16.msrb.mxu2 %v8544_v26  ;;  %v8621_v26 = vld [vmem:[#allocation2 + $0xbf8] sm:$0xff] }
 0x14b   :  { %5375 = vmatpush.bf16.msrb.mxu3 %v8552_v27  ;;  %v1297_v27 = vld [vmem:[#allocation1] sm:$0xff] }
 0x14c   :  { %5337 = vmatpush.bf16.msrb.mxu0 %v8527_v28  ;;  %v1299_v28 = vld [vmem:[#allocation1 + $0x12] sm:$0xff] }
 0x14d   :  { %5350 = vmatpush.bf16.msrb.mxu1 %v8535_v29  ;;  %v1298_v29 = vld [vmem:[#allocation1 + $0x9] sm:$0xff] }
 0x14e   :  { %5363 = vmatpush.bf16.msrb.mxu2 %v8543_v30  ;;  %v1300_v30 = vld [vmem:[#allocation1 + $0x1b] sm:$0xff] }
 0x14f   :  { %5376 = vmatpush.bf16.msrb.mxu3 %v8551_v31  ;;  %v8596_v31 = vld [vmem:[#allocation2 + $0xb30] sm:$0xff] }
 0x150   :  { %5338 = vmatpush.bf16.msrb.mxu0 %v8526_v39  ;;  %v5132_v55 = vpop.f32.mrf.mxu0 }
 0x151   :  { %5351 = vmatpush.bf16.msrb.mxu1 %v8534_v40  ;;  %v5133_v56 = vadd.f32 %v5132_v55, %v9029_v22  ;;  %v5145_v59 = vpop.f32.mrf.mxu1  ;;  %v8582_v22 = vld [vmem:[#allocation2 + $0xac0] sm:$0xff] }
 0x152   :  { %5364 = vmatpush.bf16.msrb.mxu2 %v8542_v41  ;;  %v8594_v41 = vld [vmem:[#allocation2 + $0xb20] sm:$0xff] }
 0x153   :  { %5377 = vmatpush.bf16.msrb.mxu3 %v8550_v42  ;;  %5339 = vmatmul.bf16.vlgmr.msrb.gmra.mxu0 %v1291_v32  ;;  %v5146_v62 = vadd.f32 %v5145_v59, %v5133_v56  ;;  %v8604_v32 = vld [vmem:[#allocation2 + $0xb70] sm:$0xff]  ;;  %v8602_v42 = vld [vmem:[#allocation2 + $0xb60] sm:$0xff] }
 0x154   :  { %5383 = vmatpush.bf16.msra.mxu0 %v8565_v43  ;;  %5352 = vmatmul.bf16.vlgmr.msrb.gmra.mxu1 %v1292_v35  ;;  %v8595_v35 = vld [vmem:[#allocation2 + $0xb28] sm:$0xff]  ;;  %v8592_v56 = vld [vmem:[#allocation2 + $0xb10] sm:$0xff] }
 0x155   :  { %5396 = vmatpush.bf16.msra.mxu1 %v8573_v44  ;;  %5365 = vmatmul.bf16.vlgmr.msrb.gmra.mxu2 %v1293_v33  ;;  %v8612_v33 = vld [vmem:[#allocation2 + $0xbb0] sm:$0xff]  ;;  %v8610_v44 = vld [vmem:[#allocation2 + $0xba0] sm:$0xff] }
 0x156   :  { %5409 = vmatpush.bf16.msra.mxu2 %v8581_v45  ;;  %5378 = vmatmul.bf16.vlgmr.msrb.gmra.mxu3 %v1294_v36  ;;  %v8603_v36 = vld [vmem:[#allocation2 + $0xb68] sm:$0xff]  ;;  %v8618_v45 = vld [vmem:[#allocation2 + $0xbe0] sm:$0xff]  ;;  %v8608_v59 = vld [vmem:[#allocation2 + $0xb90] sm:$0xff] }
 0x157   :  { %5422 = vmatpush.bf16.msra.mxu3 %v8589_v46 }
 0x158   :  { %5384 = vmatpush.bf16.msra.mxu0 %v8564_v47  ;;  %v5158_v3 = vpop.f32.mrf.mxu2  ;;  %v5134_v6 = vpop.f32.mrf.mxu0  ;;  %v8593_v47 = vld [vmem:[#allocation2 + $0xb18] sm:$0xff] }
 0x159   :  { %5397 = vmatpush.bf16.msra.mxu1 %v8572_v48  ;;  %v5159_v4 = vadd.f32 %v5158_v3, %v5146_v62  ;;  %v5171_v5 = vpop.f32.mrf.mxu3  ;;  %v5147_v10 = vpop.f32.mrf.mxu1  ;;  %v8601_v48 = vld [vmem:[#allocation2 + $0xb58] sm:$0xff]  ;;  %v8599_v62 = vld [vmem:[#allocation2 + $0xb48] sm:$0xff] }
 0x15a   :  { %5410 = vmatpush.bf16.msra.mxu2 %v8580_v49  ;;  %v8609_v49 = vld [vmem:[#allocation2 + $0xb98] sm:$0xff]  ;;  %v8606_v10 = vld [vmem:[#allocation2 + $0xb80] sm:$0xff] }
 0x15b   :  { %5423 = vmatpush.bf16.msra.mxu3 %v8588_v50  ;;  %v5172_v7 = vadd.f32 %v5171_v5, %v5159_v4  ;;  %v8617_v50 = vld [vmem:[#allocation2 + $0xbd8] sm:$0xff]  ;;  %v1302_v4 = vld [vmem:[#allocation1 + $0x2d] sm:$0xff] }
 0x15c   :  { %5385 = vmatpush.bf16.msra.mxu0 %v8563_v51  ;;  %v1304_v5 = vld [vmem:[#allocation1 + $0x3f] sm:$0xff] }
 0x15d   :  { %5398 = vmatpush.bf16.msra.mxu1 %v8571_v52 }
 0x15e   :  { %5411 = vmatpush.bf16.msra.mxu2 %v8579_v53 }
 0x15f   :  { %5424 = vmatpush.bf16.msra.mxu3 %v8587_v54 }
 0x160   :  { %5386 = vmatpush.bf16.msra.mxu0 %v8562_v57  ;;  %v5160_v17 = vpop.f32.mrf.mxu2  ;;  %v8600_v57 = vld [vmem:[#allocation2 + $0xb50] sm:$0xff] }
 0x161   :  { %5399 = vmatpush.bf16.msra.mxu1 %v8570_v58  ;;  %v5173_v18 = vpop.f32.mrf.mxu3  ;;  %v8636_v17 = vld [vmem:[#allocation2 + $0xc70] sm:$0xff] }
 0x162   :  { %5412 = vmatpush.bf16.msra.mxu2 %v8578_v60  ;;  %v8616_v60 = vld [vmem:[#allocation2 + $0xbd0] sm:$0xff] }
 0x163   :  { %5425 = vmatpush.bf16.msra.mxu3 %v8586_v61  ;;  %v8591_v61 = vld [vmem:[#allocation2 + $0xb08] sm:$0xff]  ;;  %v8644_v18 = vld [vmem:[#allocation2 + $0xcb0] sm:$0xff] }
 0x164   :  { %5387 = vmatpush.bf16.msra.mxu0 %v8561_v63  ;;  %v8607_v63 = vld [vmem:[#allocation2 + $0xb88] sm:$0xff] }
 0x165   :  { %5400 = vmatpush.bf16.msra.mxu1 %v8569_v0  ;;  %v8615_v0 = vld [vmem:[#allocation2 + $0xbc8] sm:$0xff] }
 0x166   :  { %5413 = vmatpush.bf16.msra.mxu2 %v8577_v1  ;;  %v1301_v1 = vld [vmem:[#allocation1 + $0x24] sm:$0xff] }
 0x167   :  { %5426 = vmatpush.bf16.msra.mxu3 %v8585_v2  ;;  %v1303_v2 = vld [vmem:[#allocation1 + $0x36] sm:$0xff] }
 0x168   :  { %5388 = vmatpush.bf16.msra.mxu0 %v8560_v8  ;;  %v8590_v8 = vld [vmem:[#allocation2 + $0xb00] sm:$0xff] }
 0x169   :  { %5401 = vmatpush.bf16.msra.mxu1 %v8568_v9  ;;  %v8598_v9 = vld [vmem:[#allocation2 + $0xb40] sm:$0xff] }
 0x16a   :  { %5414 = vmatpush.bf16.msra.mxu2 %v8576_v11  ;;  %v8614_v11 = vld [vmem:[#allocation2 + $0xbc0] sm:$0xff] }
 0x16b   :  { %5427 = vmatpush.bf16.msra.mxu3 %v8584_v12  ;;  %v8629_v12 = vld [vmem:[#allocation2 + $0xc38] sm:$0xff] }
 0x16c   :  { %5389 = vmatpush.bf16.msra.mxu0 %v8559_v13  ;;  %v8637_v13 = vld [vmem:[#allocation2 + $0xc78] sm:$0xff] }
 0x16d   :  { %5402 = vmatpush.bf16.msra.mxu1 %v8567_v14  ;;  %v8645_v14 = vld [vmem:[#allocation2 + $0xcb8] sm:$0xff] }
 0x16e   :  { %5415 = vmatpush.bf16.msra.mxu2 %v8575_v15  ;;  %v8653_v15 = vld [vmem:[#allocation2 + $0xcf8] sm:$0xff] }
 0x16f   :  { %5428 = vmatpush.bf16.msra.mxu3 %v8583_v16  ;;  %v8628_v16 = vld [vmem:[#allocation2 + $0xc30] sm:$0xff] }
 0x170   :  { %5390 = vmatpush.bf16.msra.mxu0 %v8558_v19  ;;  %v5184_v39 = vpop.f32.mrf.mxu0  ;;  %v8652_v19 = vld [vmem:[#allocation2 + $0xcf0] sm:$0xff] }
 0x171   :  { %5403 = vmatpush.bf16.msra.mxu1 %v8566_v20  ;;  %v5185_v40 = vadd.f32 %v5184_v39, %v5172_v7  ;;  %v5197_v43 = vpop.f32.mrf.mxu1  ;;  %v86_v7 = vld [vmem:[%s9056_s0 + $0x30] sm:$0xff] }
 0x172   :  { %5416 = vmatpush.bf16.msra.mxu2 %v8574_v21  ;;  %1306 = vst [vmem:[#allocation1] ss:$9 sm:$0xff] %v86_v7  ;;  %v8627_v20 = vld [vmem:[#allocation2 + $0xc28] sm:$0xff] }
 0x173   :  { %5429 = vmatpush.bf16.msra.mxu3 %v8582_v22  ;;  %5391 = vmatmul.bf16.vlgmr.msra.gmra.mxu0 %v1297_v27  ;;  %v5198_v46 = vadd.f32 %v5197_v43, %v5185_v40  ;;  %v8635_v21 = vld [vmem:[#allocation2 + $0xc68] sm:$0xff]  ;;  %v8634_v27 = vld [vmem:[#allocation2 + $0xc60] sm:$0xff] }
 0x174   :  { %5435 = vmatpush.bf16.msrb.mxu0 %v8597_v23  ;;  %5404 = vmatmul.bf16.vlgmr.msra.gmra.mxu1 %v1298_v29  ;;  %v8643_v22 = vld [vmem:[#allocation2 + $0xca8] sm:$0xff]  ;;  %v8642_v29 = vld [vmem:[#allocation2 + $0xca0] sm:$0xff] }
 0x175   :  { %5448 = vmatpush.bf16.msrb.mxu1 %v8605_v24  ;;  %5417 = vmatmul.bf16.vlgmr.msra.gmra.mxu2 %v1299_v28  ;;  %v8651_v23 = vld [vmem:[#allocation2 + $0xce8] sm:$0xff] }
 0x176   :  { %5461 = vmatpush.bf16.msrb.mxu2 %v8613_v25  ;;  %5430 = vmatmul.bf16.vlgmr.msra.gmra.mxu3 %v1300_v30  ;;  %v8650_v30 = vld [vmem:[#allocation2 + $0xce0] sm:$0xff]  ;;  %v8683_v7 = vld [vmem:[#allocation2 + $0xde8] sm:$0xff] }
 0x177   :  { %5474 = vmatpush.bf16.msrb.mxu3 %v8621_v26  ;;  %v8626_v26 = vld [vmem:[#allocation2 + $0xc20] sm:$0xff] }
 0x178   :  { %5436 = vmatpush.bf16.msrb.mxu0 %v8596_v31  ;;  %v5210_v51 = vpop.f32.mrf.mxu2  ;;  %v5186_v54 = vpop.f32.mrf.mxu0 }
 0x179   :  { %5449 = vmatpush.bf16.msrb.mxu1 %v8604_v32  ;;  %v5211_v52 = vadd.f32 %v5210_v51, %v5198_v46  ;;  %v5223_v53 = vpop.f32.mrf.mxu3  ;;  %v5199_v58 = vpop.f32.mrf.mxu1  ;;  %v8625_v32 = vld [vmem:[#allocation2 + $0xc18] sm:$0xff]  ;;  %v8623_v46 = vld [vmem:[#allocation2 + $0xc08] sm:$0xff]  ;;  %v8638_v54 = vld [vmem:[#allocation2 + $0xc80] sm:$0xff] }
 0x17a   :  { %5462 = vmatpush.bf16.msrb.mxu2 %v8612_v33  ;;  %v8633_v33 = vld [vmem:[#allocation2 + $0xc58] sm:$0xff] }
 0x17b   :  { %5475 = vmatpush.bf16.msrb.mxu3 %v8620_v34  ;;  %v9035_v55 = vadd.f32 %v5223_v53, %v5211_v52  ;;  %v8641_v34 = vld [vmem:[#allocation2 + $0xc98] sm:$0xff]  ;;  %v8622_v52 = vld [vmem:[#allocation2 + $0xc00] sm:$0xff] }
 0x17c   :  { %5437 = vmatpush.bf16.msrb.mxu0 %v8595_v35  ;;  %v8649_v35 = vld [vmem:[#allocation2 + $0xcd8] sm:$0xff]  ;;  %v8630_v53 = vld [vmem:[#allocation2 + $0xc40] sm:$0xff] }
 0x17d   :  { %5450 = vmatpush.bf16.msrb.mxu1 %v8603_v36  ;;  %v8677_v58 = vld [vmem:[#allocation2 + $0xdb8] sm:$0xff] }
 0x17e   :  { %5463 = vmatpush.bf16.msrb.mxu2 %v8611_v37 }
 0x17f   :  { %5476 = vmatpush.bf16.msrb.mxu3 %v8619_v38 }
 0x180   :  { %5438 = vmatpush.bf16.msrb.mxu0 %v8594_v41  ;;  %v5212_v3 = vpop.f32.mrf.mxu2  ;;  %v8624_v41 = vld [vmem:[#allocation2 + $0xc10] sm:$0xff] }
 0x181   :  { %5451 = vmatpush.bf16.msrb.mxu1 %v8602_v42  ;;  %v5225_v6 = vpop.f32.mrf.mxu3  ;;  %v8632_v42 = vld [vmem:[#allocation2 + $0xc50] sm:$0xff] }
 0x182   :  { %5464 = vmatpush.bf16.msrb.mxu2 %v8610_v44  ;;  %v8640_v44 = vld [vmem:[#allocation2 + $0xc90] sm:$0xff]  ;;  %v8675_v6 = vld [vmem:[#allocation2 + $0xda8] sm:$0xff] }
 0x183   :  { %5477 = vmatpush.bf16.msrb.mxu3 %v8618_v45  ;;  %v8648_v45 = vld [vmem:[#allocation2 + $0xcd0] sm:$0xff] }
 0x184   :  { %5439 = vmatpush.bf16.msrb.mxu0 %v8593_v47  ;;  %v8631_v47 = vld [vmem:[#allocation2 + $0xc48] sm:$0xff]  ;;  %v8684_v3 = vld [vmem:[#allocation2 + $0xdf0] sm:$0xff] }
 0x185   :  { %5452 = vmatpush.bf16.msrb.mxu1 %v8601_v48  ;;  %v8639_v48 = vld [vmem:[#allocation2 + $0xc88] sm:$0xff] }
 0x186   :  { %5465 = vmatpush.bf16.msrb.mxu2 %v8609_v49  ;;  %v8647_v49 = vld [vmem:[#allocation2 + $0xcc8] sm:$0xff] }
 0x187   :  { %5478 = vmatpush.bf16.msrb.mxu3 %v8617_v50 }
 0x188   :  { %5440 = vmatpush.bf16.msrb.mxu0 %v8592_v56  ;;  %v8661_v56 = vld [vmem:[#allocation2 + $0xd38] sm:$0xff] }
 0x189   :  { %5453 = vmatpush.bf16.msrb.mxu1 %v8600_v57  ;;  %v8669_v57 = vld [vmem:[#allocation2 + $0xd78] sm:$0xff] }
 0x18a   :  { %5466 = vmatpush.bf16.msrb.mxu2 %v8608_v59  ;;  %v8685_v59 = vld [vmem:[#allocation2 + $0xdf8] sm:$0xff] }
 0x18b   :  { %5479 = vmatpush.bf16.msrb.mxu3 %v8616_v60  ;;  %v1307_v60 = vld [vmem:[#allocation1] sm:$0xff] }
 0x18c   :  { %5441 = vmatpush.bf16.msrb.mxu0 %v8591_v61  ;;  %v1309_v61 = vld [vmem:[#allocation1 + $0x12] sm:$0xff] }
 0x18d   :  { %5454 = vmatpush.bf16.msrb.mxu1 %v8599_v62  ;;  %v1308_v62 = vld [vmem:[#allocation1 + $0x9] sm:$0xff] }
 0x18e   :  { %5467 = vmatpush.bf16.msrb.mxu2 %v8607_v63  ;;  %v1310_v63 = vld [vmem:[#allocation1 + $0x1b] sm:$0xff] }
 0x18f   :  { %5480 = vmatpush.bf16.msrb.mxu3 %v8615_v0  ;;  %v8660_v0 = vld [vmem:[#allocation2 + $0xd30] sm:$0xff] }
 0x190   :  { %5442 = vmatpush.bf16.msrb.mxu0 %v8590_v8  ;;  %v5236_v24 = vpop.f32.mrf.mxu0 }
 0x191   :  { %5455 = vmatpush.bf16.msrb.mxu1 %v8598_v9  ;;  %v5237_v25 = vadd.f32 %v5236_v24, %v9035_v55  ;;  %v5249_v28 = vpop.f32.mrf.mxu1  ;;  %v8646_v55 = vld [vmem:[#allocation2 + $0xcc0] sm:$0xff] }
 0x192   :  { %5468 = vmatpush.bf16.msrb.mxu2 %v8606_v10  ;;  %v8658_v10 = vld [vmem:[#allocation2 + $0xd20] sm:$0xff] }
 0x193   :  { %5481 = vmatpush.bf16.msrb.mxu3 %v8614_v11  ;;  %5443 = vmatmul.bf16.vlgmr.msrb.gmra.mxu0 %v1301_v1  ;;  %v5250_v31 = vadd.f32 %v5249_v28, %v5237_v25  ;;  %v8668_v1 = vld [vmem:[#allocation2 + $0xd70] sm:$0xff]  ;;  %v8666_v11 = vld [vmem:[#allocation2 + $0xd60] sm:$0xff] }
 0x194   :  { %5487 = vmatpush.bf16.msra.mxu0 %v8629_v12  ;;  %5456 = vmatmul.bf16.vlgmr.msrb.gmra.mxu1 %v1302_v4  ;;  %v8659_v4 = vld [vmem:[#allocation2 + $0xd28] sm:$0xff]  ;;  %v8656_v25 = vld [vmem:[#allocation2 + $0xd10] sm:$0xff] }
 0x195   :  { %5500 = vmatpush.bf16.msra.mxu1 %v8637_v13  ;;  %5469 = vmatmul.bf16.vlgmr.msrb.gmra.mxu2 %v1303_v2  ;;  %v8676_v2 = vld [vmem:[#allocation2 + $0xdb0] sm:$0xff]  ;;  %v8674_v13 = vld [vmem:[#allocation2 + $0xda0] sm:$0xff] }
 0x196   :  { %5513 = vmatpush.bf16.msra.mxu2 %v8645_v14  ;;  %5482 = vmatmul.bf16.vlgmr.msrb.gmra.mxu3 %v1304_v5  ;;  %v8667_v5 = vld [vmem:[#allocation2 + $0xd68] sm:$0xff]  ;;  %v8682_v14 = vld [vmem:[#allocation2 + $0xde0] sm:$0xff]  ;;  %v8672_v28 = vld [vmem:[#allocation2 + $0xd90] sm:$0xff] }
 0x197   :  { %5526 = vmatpush.bf16.msra.mxu3 %v8653_v15 }
 0x198   :  { %5488 = vmatpush.bf16.msra.mxu0 %v8628_v16  ;;  %v5262_v36 = vpop.f32.mrf.mxu2  ;;  %v5238_v39 = vpop.f32.mrf.mxu0  ;;  %v8657_v16 = vld [vmem:[#allocation2 + $0xd18] sm:$0xff] }
 0x199   :  { %5501 = vmatpush.bf16.msra.mxu1 %v8636_v17  ;;  %v5263_v37 = vadd.f32 %v5262_v36, %v5250_v31  ;;  %v5275_v38 = vpop.f32.mrf.mxu3  ;;  %v5251_v43 = vpop.f32.mrf.mxu1  ;;  %v8665_v17 = vld [vmem:[#allocation2 + $0xd58] sm:$0xff]  ;;  %v8663_v31 = vld [vmem:[#allocation2 + $0xd48] sm:$0xff] }
 0x19a   :  { %5514 = vmatpush.bf16.msra.mxu2 %v8644_v18  ;;  %v8673_v18 = vld [vmem:[#allocation2 + $0xd98] sm:$0xff]  ;;  %v8670_v43 = vld [vmem:[#allocation2 + $0xd80] sm:$0xff] }
 0x19b   :  { %5527 = vmatpush.bf16.msra.mxu3 %v8652_v19  ;;  %v5276_v40 = vadd.f32 %v5275_v38, %v5263_v37  ;;  %v8681_v19 = vld [vmem:[#allocation2 + $0xdd8] sm:$0xff]  ;;  %v1312_v37 = vld [vmem:[#allocation1 + $0x2d] sm:$0xff] }
 0x19c   :  { %5489 = vmatpush.bf16.msra.mxu0 %v8627_v20  ;;  %v1314_v38 = vld [vmem:[#allocation1 + $0x3f] sm:$0xff] }
 0x19d   :  { %5502 = vmatpush.bf16.msra.mxu1 %v8635_v21 }
 0x19e   :  { %5515 = vmatpush.bf16.msra.mxu2 %v8643_v22 }
 0x19f   :  { %5528 = vmatpush.bf16.msra.mxu3 %v8651_v23 }
 0x1a0   :  { %5490 = vmatpush.bf16.msra.mxu0 %v8626_v26  ;;  %v5264_v50 = vpop.f32.mrf.mxu2  ;;  %v8664_v26 = vld [vmem:[#allocation2 + $0xd50] sm:$0xff] }
 0x1a1   :  { %5503 = vmatpush.bf16.msra.mxu1 %v8634_v27  ;;  %v5277_v51 = vpop.f32.mrf.mxu3  ;;  %v8700_v50 = vld [vmem:[#allocation2 + $0xe70] sm:$0xff] }
 0x1a2   :  { %5516 = vmatpush.bf16.msra.mxu2 %v8642_v29  ;;  %v8680_v29 = vld [vmem:[#allocation2 + $0xdd0] sm:$0xff] }
 0x1a3   :  { %5529 = vmatpush.bf16.msra.mxu3 %v8650_v30  ;;  %v8655_v30 = vld [vmem:[#allocation2 + $0xd08] sm:$0xff]  ;;  %v8708_v51 = vld [vmem:[#allocation2 + $0xeb0] sm:$0xff] }
 0x1a4   :  { %5491 = vmatpush.bf16.msra.mxu0 %v8625_v32  ;;  %v8671_v32 = vld [vmem:[#allocation2 + $0xd88] sm:$0xff] }
 0x1a5   :  { %5504 = vmatpush.bf16.msra.mxu1 %v8633_v33  ;;  %v8679_v33 = vld [vmem:[#allocation2 + $0xdc8] sm:$0xff] }
 0x1a6   :  { %5517 = vmatpush.bf16.msra.mxu2 %v8641_v34  ;;  %v1311_v34 = vld [vmem:[#allocation1 + $0x24] sm:$0xff] }
 0x1a7   :  { %5530 = vmatpush.bf16.msra.mxu3 %v8649_v35  ;;  %v1313_v35 = vld [vmem:[#allocation1 + $0x36] sm:$0xff] }
 0x1a8   :  { %5492 = vmatpush.bf16.msra.mxu0 %v8624_v41  ;;  %v8654_v41 = vld [vmem:[#allocation2 + $0xd00] sm:$0xff] }
 0x1a9   :  { %5505 = vmatpush.bf16.msra.mxu1 %v8632_v42  ;;  %v8662_v42 = vld [vmem:[#allocation2 + $0xd40] sm:$0xff] }
 0x1aa   :  { %5518 = vmatpush.bf16.msra.mxu2 %v8640_v44  ;;  %v8678_v44 = vld [vmem:[#allocation2 + $0xdc0] sm:$0xff] }
 0x1ab   :  { %5531 = vmatpush.bf16.msra.mxu3 %v8648_v45  ;;  %v8693_v45 = vld [vmem:[#allocation2 + $0xe38] sm:$0xff] }
 0x1ac   :  { %5493 = vmatpush.bf16.msra.mxu0 %v8623_v46  ;;  %v8701_v46 = vld [vmem:[#allocation2 + $0xe78] sm:$0xff] }
 0x1ad   :  { %5506 = vmatpush.bf16.msra.mxu1 %v8631_v47  ;;  %v8709_v47 = vld [vmem:[#allocation2 + $0xeb8] sm:$0xff] }
 0x1ae   :  { %5519 = vmatpush.bf16.msra.mxu2 %v8639_v48  ;;  %v8717_v48 = vld [vmem:[#allocation2 + $0xef8] sm:$0xff] }
 0x1af   :  { %5532 = vmatpush.bf16.msra.mxu3 %v8647_v49  ;;  %v8692_v49 = vld [vmem:[#allocation2 + $0xe30] sm:$0xff] }
 0x1b0   :  { %5494 = vmatpush.bf16.msra.mxu0 %v8622_v52  ;;  %v5288_v8 = vpop.f32.mrf.mxu0  ;;  %v8716_v52 = vld [vmem:[#allocation2 + $0xef0] sm:$0xff] }
 0x1b1   :  { %5507 = vmatpush.bf16.msra.mxu1 %v8630_v53  ;;  %v5289_v9 = vadd.f32 %v5288_v8, %v5276_v40  ;;  %v5301_v12 = vpop.f32.mrf.mxu1  ;;  %v87_v40 = vld [vmem:[%s9056_s0 + $0x38] sm:$0xff]  ;;  %v8691_v53 = vld [vmem:[#allocation2 + $0xe28] sm:$0xff] }
 0x1b2   :  { %5520 = vmatpush.bf16.msra.mxu2 %v8638_v54  ;;  %1316 = vst [vmem:[#allocation1] ss:$9 sm:$0xff] %v87_v40  ;;  %v8699_v54 = vld [vmem:[#allocation2 + $0xe68] sm:$0xff] }
 0x1b3   :  { %5533 = vmatpush.bf16.msra.mxu3 %v8646_v55  ;;  %5495 = vmatmul.bf16.vlgmr.msra.gmra.mxu0 %v1307_v60  ;;  %v5302_v15 = vadd.f32 %v5301_v12, %v5289_v9  ;;  %v8707_v55 = vld [vmem:[#allocation2 + $0xea8] sm:$0xff]  ;;  %v8698_v60 = vld [vmem:[#allocation2 + $0xe60] sm:$0xff] }
 0x1b4   :  { %5539 = vmatpush.bf16.msrb.mxu0 %v8661_v56  ;;  %5508 = vmatmul.bf16.vlgmr.msra.gmra.mxu1 %v1308_v62  ;;  %v8715_v56 = vld [vmem:[#allocation2 + $0xee8] sm:$0xff]  ;;  %v8706_v62 = vld [vmem:[#allocation2 + $0xea0] sm:$0xff] }
 0x1b5   :  { %5552 = vmatpush.bf16.msrb.mxu1 %v8669_v57  ;;  %5521 = vmatmul.bf16.vlgmr.msra.gmra.mxu2 %v1309_v61  ;;  %v8747_v40 = vld [vmem:[#allocation2 + $0xfe8] sm:$0xff] }
 0x1b6   :  { %5565 = vmatpush.bf16.msrb.mxu2 %v8677_v58  ;;  %5534 = vmatmul.bf16.vlgmr.msra.gmra.mxu3 %v1310_v63  ;;  %v8714_v63 = vld [vmem:[#allocation2 + $0xee0] sm:$0xff] }
 0x1b7   :  { %5578 = vmatpush.bf16.msrb.mxu3 %v8685_v59  ;;  %v8690_v59 = vld [vmem:[#allocation2 + $0xe20] sm:$0xff] }
 0x1b8   :  { %5540 = vmatpush.bf16.msrb.mxu0 %v8660_v0  ;;  %v5314_v20 = vpop.f32.mrf.mxu2  ;;  %v5290_v23 = vpop.f32.mrf.mxu0 }
 0x1b9   :  { %5553 = vmatpush.bf16.msrb.mxu1 %v8668_v1  ;;  %v5315_v21 = vadd.f32 %v5314_v20, %v5302_v15  ;;  %v5327_v22 = vpop.f32.mrf.mxu3  ;;  %v5303_v27 = vpop.f32.mrf.mxu1  ;;  %v8689_v1 = vld [vmem:[#allocation2 + $0xe18] sm:$0xff]  ;;  %v8687_v15 = vld [vmem:[#allocation2 + $0xe08] sm:$0xff]  ;;  %v8702_v23 = vld [vmem:[#allocation2 + $0xe80] sm:$0xff] }
 0x1ba   :  { %5566 = vmatpush.bf16.msrb.mxu2 %v8676_v2  ;;  %v8697_v2 = vld [vmem:[#allocation2 + $0xe58] sm:$0xff] }
 0x1bb   :  { %5579 = vmatpush.bf16.msrb.mxu3 %v8684_v3  ;;  %v9041_v24 = vadd.f32 %v5327_v22, %v5315_v21  ;;  %v8705_v3 = vld [vmem:[#allocation2 + $0xe98] sm:$0xff]  ;;  %v8686_v21 = vld [vmem:[#allocation2 + $0xe00] sm:$0xff] }
 0x1bc   :  { %5541 = vmatpush.bf16.msrb.mxu0 %v8659_v4  ;;  %v8713_v4 = vld [vmem:[#allocation2 + $0xed8] sm:$0xff]  ;;  %v8694_v22 = vld [vmem:[#allocation2 + $0xe40] sm:$0xff] }
 0x1bd   :  { %5554 = vmatpush.bf16.msrb.mxu1 %v8667_v5  ;;  %v8741_v27 = vld [vmem:[#allocation2 + $0xfb8] sm:$0xff] }
 0x1be   :  { %5567 = vmatpush.bf16.msrb.mxu2 %v8675_v6 }
 0x1bf   :  { %5580 = vmatpush.bf16.msrb.mxu3 %v8683_v7 }
 0x1c0   :  { %5542 = vmatpush.bf16.msrb.mxu0 %v8658_v10  ;;  %v5316_v36 = vpop.f32.mrf.mxu2  ;;  %v8688_v10 = vld [vmem:[#allocation2 + $0xe10] sm:$0xff] }
 0x1c1   :  { %5555 = vmatpush.bf16.msrb.mxu1 %v8666_v11  ;;  %v5329_v39 = vpop.f32.mrf.mxu3  ;;  %v8696_v11 = vld [vmem:[#allocation2 + $0xe50] sm:$0xff] }
 0x1c2   :  { %5568 = vmatpush.bf16.msrb.mxu2 %v8674_v13  ;;  %v8704_v13 = vld [vmem:[#allocation2 + $0xe90] sm:$0xff]  ;;  %v8739_v39 = vld [vmem:[#allocation2 + $0xfa8] sm:$0xff] }
 0x1c3   :  { %5581 = vmatpush.bf16.msrb.mxu3 %v8682_v14  ;;  %v8712_v14 = vld [vmem:[#allocation2 + $0xed0] sm:$0xff] }
 0x1c4   :  { %5543 = vmatpush.bf16.msrb.mxu0 %v8657_v16  ;;  %v8695_v16 = vld [vmem:[#allocation2 + $0xe48] sm:$0xff]  ;;  %v8748_v36 = vld [vmem:[#allocation2 + $0xff0] sm:$0xff] }
 0x1c5   :  { %5556 = vmatpush.bf16.msrb.mxu1 %v8665_v17  ;;  %v8703_v17 = vld [vmem:[#allocation2 + $0xe88] sm:$0xff] }
 0x1c6   :  { %5569 = vmatpush.bf16.msrb.mxu2 %v8673_v18  ;;  %v8711_v18 = vld [vmem:[#allocation2 + $0xec8] sm:$0xff] }
 0x1c7   :  { %5582 = vmatpush.bf16.msrb.mxu3 %v8681_v19 }
 0x1c8   :  { %5544 = vmatpush.bf16.msrb.mxu0 %v8656_v25  ;;  %v8725_v25 = vld [vmem:[#allocation2 + $0xf38] sm:$0xff] }
 0x1c9   :  { %5557 = vmatpush.bf16.msrb.mxu1 %v8664_v26  ;;  %v8733_v26 = vld [vmem:[#allocation2 + $0xf78] sm:$0xff] }
 0x1ca   :  { %5570 = vmatpush.bf16.msrb.mxu2 %v8672_v28  ;;  %v8749_v28 = vld [vmem:[#allocation2 + $0xff8] sm:$0xff] }
 0x1cb   :  { %5583 = vmatpush.bf16.msrb.mxu3 %v8680_v29  ;;  %v1317_v29 = vld [vmem:[#allocation1] sm:$0xff] }
 0x1cc   :  { %5545 = vmatpush.bf16.msrb.mxu0 %v8655_v30  ;;  %v1319_v30 = vld [vmem:[#allocation1 + $0x12] sm:$0xff] }
 0x1cd   :  { %5558 = vmatpush.bf16.msrb.mxu1 %v8663_v31  ;;  %v1318_v31 = vld [vmem:[#allocation1 + $0x9] sm:$0xff] }
 0x1ce   :  { %5571 = vmatpush.bf16.msrb.mxu2 %v8671_v32  ;;  %v1320_v32 = vld [vmem:[#allocation1 + $0x1b] sm:$0xff] }
 0x1cf   :  { %5584 = vmatpush.bf16.msrb.mxu3 %v8679_v33  ;;  %v8724_v33 = vld [vmem:[#allocation2 + $0xf30] sm:$0xff] }
 0x1d0   :  { %5546 = vmatpush.bf16.msrb.mxu0 %v8654_v41  ;;  %v5340_v57 = vpop.f32.mrf.mxu0 }
 0x1d1   :  { %5559 = vmatpush.bf16.msrb.mxu1 %v8662_v42  ;;  %v5341_v58 = vadd.f32 %v5340_v57, %v9041_v24  ;;  %v5353_v61 = vpop.f32.mrf.mxu1  ;;  %v8710_v24 = vld [vmem:[#allocation2 + $0xec0] sm:$0xff] }
 0x1d2   :  { %5572 = vmatpush.bf16.msrb.mxu2 %v8670_v43  ;;  %v8722_v43 = vld [vmem:[#allocation2 + $0xf20] sm:$0xff] }
 0x1d3   :  { %5585 = vmatpush.bf16.msrb.mxu3 %v8678_v44  ;;  %5547 = vmatmul.bf16.vlgmr.msrb.gmra.mxu0 %v1311_v34  ;;  %v5354_v0 = vadd.f32 %v5353_v61, %v5341_v58  ;;  %v8732_v34 = vld [vmem:[#allocation2 + $0xf70] sm:$0xff]  ;;  %v8730_v44 = vld [vmem:[#allocation2 + $0xf60] sm:$0xff] }
 0x1d4   :  { %5591 = vmatpush.bf16.msra.mxu0 %v8693_v45  ;;  %5560 = vmatmul.bf16.vlgmr.msrb.gmra.mxu1 %v1312_v37  ;;  %v8723_v37 = vld [vmem:[#allocation2 + $0xf28] sm:$0xff]  ;;  %v8720_v58 = vld [vmem:[#allocation2 + $0xf10] sm:$0xff] }
 0x1d5   :  { %5604 = vmatpush.bf16.msra.mxu1 %v8701_v46  ;;  %5573 = vmatmul.bf16.vlgmr.msrb.gmra.mxu2 %v1313_v35  ;;  %v8740_v35 = vld [vmem:[#allocation2 + $0xfb0] sm:$0xff]  ;;  %v8738_v46 = vld [vmem:[#allocation2 + $0xfa0] sm:$0xff] }
 0x1d6   :  { %5617 = vmatpush.bf16.msra.mxu2 %v8709_v47  ;;  %5586 = vmatmul.bf16.vlgmr.msrb.gmra.mxu3 %v1314_v38  ;;  %v8731_v38 = vld [vmem:[#allocation2 + $0xf68] sm:$0xff]  ;;  %v8746_v47 = vld [vmem:[#allocation2 + $0xfe0] sm:$0xff]  ;;  %v8736_v61 = vld [vmem:[#allocation2 + $0xf90] sm:$0xff] }
 0x1d7   :  { %5630 = vmatpush.bf16.msra.mxu3 %v8717_v48 }
 0x1d8   :  { %5592 = vmatpush.bf16.msra.mxu0 %v8692_v49  ;;  %v5366_v5 = vpop.f32.mrf.mxu2  ;;  %v5342_v8 = vpop.f32.mrf.mxu0  ;;  %v8721_v49 = vld [vmem:[#allocation2 + $0xf18] sm:$0xff] }
 0x1d9   :  { %5605 = vmatpush.bf16.msra.mxu1 %v8700_v50  ;;  %v5367_v6 = vadd.f32 %v5366_v5, %v5354_v0  ;;  %v5379_v7 = vpop.f32.mrf.mxu3  ;;  %v5355_v12 = vpop.f32.mrf.mxu1  ;;  %v8729_v50 = vld [vmem:[#allocation2 + $0xf58] sm:$0xff]  ;;  %v8727_v0 = vld [vmem:[#allocation2 + $0xf48] sm:$0xff] }
 0x1da   :  { %5618 = vmatpush.bf16.msra.mxu2 %v8708_v51  ;;  %v8737_v51 = vld [vmem:[#allocation2 + $0xf98] sm:$0xff]  ;;  %v8734_v12 = vld [vmem:[#allocation2 + $0xf80] sm:$0xff] }
 0x1db   :  { %5631 = vmatpush.bf16.msra.mxu3 %v8716_v52  ;;  %v5380_v9 = vadd.f32 %v5379_v7, %v5367_v6  ;;  %v8745_v52 = vld [vmem:[#allocation2 + $0xfd8] sm:$0xff]  ;;  %v1322_v6 = vld [vmem:[#allocation1 + $0x2d] sm:$0xff] }
 0x1dc   :  { %5593 = vmatpush.bf16.msra.mxu0 %v8691_v53  ;;  %v1324_v7 = vld [vmem:[#allocation1 + $0x3f] sm:$0xff] }
 0x1dd   :  { %5606 = vmatpush.bf16.msra.mxu1 %v8699_v54 }
 0x1de   :  { %5619 = vmatpush.bf16.msra.mxu2 %v8707_v55 }
 0x1df   :  { %5632 = vmatpush.bf16.msra.mxu3 %v8715_v56 }
 0x1e0   :  { %5594 = vmatpush.bf16.msra.mxu0 %v8690_v59  ;;  %v5368_v19 = vpop.f32.mrf.mxu2  ;;  %v8728_v59 = vld [vmem:[#allocation2 + $0xf50] sm:$0xff] }
 0x1e1   :  { %5607 = vmatpush.bf16.msra.mxu1 %v8698_v60  ;;  %v5381_v20 = vpop.f32.mrf.mxu3  ;;  %v8764_v19 = vld [vmem:[#allocation2 + $0x1070] sm:$0xff] }
 0x1e2   :  { %5620 = vmatpush.bf16.msra.mxu2 %v8706_v62  ;;  %v8744_v62 = vld [vmem:[#allocation2 + $0xfd0] sm:$0xff] }
 0x1e3   :  { %5633 = vmatpush.bf16.msra.mxu3 %v8714_v63  ;;  %v8719_v63 = vld [vmem:[#allocation2 + $0xf08] sm:$0xff]  ;;  %v8772_v20 = vld [vmem:[#allocation2 + $0x10b0] sm:$0xff] }
 0x1e4   :  { %5595 = vmatpush.bf16.msra.mxu0 %v8689_v1  ;;  %v8735_v1 = vld [vmem:[#allocation2 + $0xf88] sm:$0xff] }
 0x1e5   :  { %5608 = vmatpush.bf16.msra.mxu1 %v8697_v2  ;;  %v8743_v2 = vld [vmem:[#allocation2 + $0xfc8] sm:$0xff] }
 0x1e6   :  { %5621 = vmatpush.bf16.msra.mxu2 %v8705_v3  ;;  %v1321_v3 = vld [vmem:[#allocation1 + $0x24] sm:$0xff] }
 0x1e7   :  { %5634 = vmatpush.bf16.msra.mxu3 %v8713_v4  ;;  %v1323_v4 = vld [vmem:[#allocation1 + $0x36] sm:$0xff] }
 0x1e8   :  { %5596 = vmatpush.bf16.msra.mxu0 %v8688_v10  ;;  %v8718_v10 = vld [vmem:[#allocation2 + $0xf00] sm:$0xff] }
 0x1e9   :  { %5609 = vmatpush.bf16.msra.mxu1 %v8696_v11  ;;  %v8726_v11 = vld [vmem:[#allocation2 + $0xf40] sm:$0xff] }
 0x1ea   :  { %5622 = vmatpush.bf16.msra.mxu2 %v8704_v13  ;;  %v8742_v13 = vld [vmem:[#allocation2 + $0xfc0] sm:$0xff] }
 0x1eb   :  { %5635 = vmatpush.bf16.msra.mxu3 %v8712_v14  ;;  %v8757_v14 = vld [vmem:[#allocation2 + $0x1038] sm:$0xff] }
 0x1ec   :  { %5597 = vmatpush.bf16.msra.mxu0 %v8687_v15  ;;  %v8765_v15 = vld [vmem:[#allocation2 + $0x1078] sm:$0xff] }
 0x1ed   :  { %5610 = vmatpush.bf16.msra.mxu1 %v8695_v16  ;;  %v8773_v16 = vld [vmem:[#allocation2 + $0x10b8] sm:$0xff] }
 0x1ee   :  { %5623 = vmatpush.bf16.msra.mxu2 %v8703_v17  ;;  %v8781_v17 = vld [vmem:[#allocation2 + $0x10f8] sm:$0xff] }
 0x1ef   :  { %5636 = vmatpush.bf16.msra.mxu3 %v8711_v18  ;;  %v8756_v18 = vld [vmem:[#allocation2 + $0x1030] sm:$0xff] }
 0x1f0   :  { %5598 = vmatpush.bf16.msra.mxu0 %v8686_v21  ;;  %v5392_v41 = vpop.f32.mrf.mxu0  ;;  %v8780_v21 = vld [vmem:[#allocation2 + $0x10f0] sm:$0xff] }
 0x1f1   :  { %5611 = vmatpush.bf16.msra.mxu1 %v8694_v22  ;;  %v5393_v42 = vadd.f32 %v5392_v41, %v5380_v9  ;;  %v5405_v45 = vpop.f32.mrf.mxu1  ;;  %v88_v9 = vld [vmem:[%s9056_s0 + $0x40] sm:$0xff]  ;;  %v8755_v22 = vld [vmem:[#allocation2 + $0x1028] sm:$0xff]  ;;  %s8965_s0 = smov [#allocation10]  }
 0x1f2   :  { %5624 = vmatpush.bf16.msra.mxu2 %v8702_v23  ;;  %1326 = vst [vmem:[#allocation1] ss:$9 sm:$0xff] %v88_v9  ;;  %v8763_v23 = vld [vmem:[#allocation2 + $0x1068] sm:$0xff]  ;;  %s5888_s29 = sshll.u32 %s8965_s0, 4  ;;  %s5889_s29 = int_to_ptr.vmem [resolvable:$true] %s5888_s29 }
 0x1f3   :  { %5637 = vmatpush.bf16.msra.mxu3 %v8710_v24  ;;  %5599 = vmatmul.bf16.vlgmr.msra.gmra.mxu0 %v1317_v29  ;;  %v5406_v48 = vadd.f32 %v5405_v45, %v5393_v42  ;;  %v8771_v24 = vld [vmem:[#allocation2 + $0x10a8] sm:$0xff]  ;;  %v8762_v29 = vld [vmem:[#allocation2 + $0x1060] sm:$0xff] }
 0x1f4   :  { %5643 = vmatpush.bf16.msrb.mxu0 %v8725_v25  ;;  %5612 = vmatmul.bf16.vlgmr.msra.gmra.mxu1 %v1318_v31  ;;  %v8779_v25 = vld [vmem:[#allocation2 + $0x10e8] sm:$0xff]  ;;  %v8770_v31 = vld [vmem:[#allocation2 + $0x10a0] sm:$0xff] }
 0x1f5   :  { %5656 = vmatpush.bf16.msrb.mxu1 %v8733_v26  ;;  %5625 = vmatmul.bf16.vlgmr.msra.gmra.mxu2 %v1319_v30  ;;  %v8811_v9 = vld [vmem:[#allocation2 + $0x11e8] sm:$0xff] }
 0x1f6   :  { %5669 = vmatpush.bf16.msrb.mxu2 %v8741_v27  ;;  %5638 = vmatmul.bf16.vlgmr.msra.gmra.mxu3 %v1320_v32  ;;  %v8778_v32 = vld [vmem:[#allocation2 + $0x10e0] sm:$0xff] }
 0x1f7   :  { %5682 = vmatpush.bf16.msrb.mxu3 %v8749_v28  ;;  %v8754_v28 = vld [vmem:[#allocation2 + $0x1020] sm:$0xff] }
 0x1f8   :  { %5644 = vmatpush.bf16.msrb.mxu0 %v8724_v33  ;;  %v5418_v53 = vpop.f32.mrf.mxu2  ;;  %v5394_v56 = vpop.f32.mrf.mxu0 }
 0x1f9   :  { %5657 = vmatpush.bf16.msrb.mxu1 %v8732_v34  ;;  %v5419_v54 = vadd.f32 %v5418_v53, %v5406_v48  ;;  %v5431_v55 = vpop.f32.mrf.mxu3  ;;  %v5407_v60 = vpop.f32.mrf.mxu1  ;;  %v8753_v34 = vld [vmem:[#allocation2 + $0x1018] sm:$0xff]  ;;  %v8751_v48 = vld [vmem:[#allocation2 + $0x1008] sm:$0xff]  ;;  %v8766_v56 = vld [vmem:[#allocation2 + $0x1080] sm:$0xff] }
 0x1fa   :  { %5670 = vmatpush.bf16.msrb.mxu2 %v8740_v35  ;;  %v8761_v35 = vld [vmem:[#allocation2 + $0x1058] sm:$0xff] }
 0x1fb   :  { %5683 = vmatpush.bf16.msrb.mxu3 %v8748_v36  ;;  %v9047_v57 = vadd.f32 %v5431_v55, %v5419_v54  ;;  %v8769_v36 = vld [vmem:[#allocation2 + $0x1098] sm:$0xff]  ;;  %v8750_v54 = vld [vmem:[#allocation2 + $0x1000] sm:$0xff] }
 0x1fc   :  { %5645 = vmatpush.bf16.msrb.mxu0 %v8723_v37  ;;  %v8777_v37 = vld [vmem:[#allocation2 + $0x10d8] sm:$0xff]  ;;  %v8758_v55 = vld [vmem:[#allocation2 + $0x1040] sm:$0xff] }
 0x1fd   :  { %5658 = vmatpush.bf16.msrb.mxu1 %v8731_v38  ;;  %v8805_v60 = vld [vmem:[#allocation2 + $0x11b8] sm:$0xff] }
 0x1fe   :  { %5671 = vmatpush.bf16.msrb.mxu2 %v8739_v39 }
 0x1ff   :  { %5684 = vmatpush.bf16.msrb.mxu3 %v8747_v40 }
 0x200   :  { %5646 = vmatpush.bf16.msrb.mxu0 %v8722_v43  ;;  %v5420_v5 = vpop.f32.mrf.mxu2  ;;  %v8752_v43 = vld [vmem:[#allocation2 + $0x1010] sm:$0xff] }
 0x201   :  { %5659 = vmatpush.bf16.msrb.mxu1 %v8730_v44  ;;  %v5433_v8 = vpop.f32.mrf.mxu3  ;;  %v8760_v44 = vld [vmem:[#allocation2 + $0x1050] sm:$0xff] }
 0x202   :  { %5672 = vmatpush.bf16.msrb.mxu2 %v8738_v46  ;;  %v8768_v46 = vld [vmem:[#allocation2 + $0x1090] sm:$0xff]  ;;  %v8803_v8 = vld [vmem:[#allocation2 + $0x11a8] sm:$0xff] }
 0x203   :  { %5685 = vmatpush.bf16.msrb.mxu3 %v8746_v47  ;;  %v8776_v47 = vld [vmem:[#allocation2 + $0x10d0] sm:$0xff] }
 0x204   :  { %5647 = vmatpush.bf16.msrb.mxu0 %v8721_v49  ;;  %v8759_v49 = vld [vmem:[#allocation2 + $0x1048] sm:$0xff]  ;;  %v8812_v5 = vld [vmem:[#allocation2 + $0x11f0] sm:$0xff] }
 0x205   :  { %5660 = vmatpush.bf16.msrb.mxu1 %v8729_v50  ;;  %v8767_v50 = vld [vmem:[#allocation2 + $0x1088] sm:$0xff] }
 0x206   :  { %5673 = vmatpush.bf16.msrb.mxu2 %v8737_v51  ;;  %v8775_v51 = vld [vmem:[#allocation2 + $0x10c8] sm:$0xff] }
 0x207   :  { %5686 = vmatpush.bf16.msrb.mxu3 %v8745_v52 }
 0x208   :  { %5648 = vmatpush.bf16.msrb.mxu0 %v8720_v58  ;;  %v8789_v58 = vld [vmem:[#allocation2 + $0x1138] sm:$0xff] }
 0x209   :  { %5661 = vmatpush.bf16.msrb.mxu1 %v8728_v59  ;;  %v8797_v59 = vld [vmem:[#allocation2 + $0x1178] sm:$0xff] }
 0x20a   :  { %5674 = vmatpush.bf16.msrb.mxu2 %v8736_v61  ;;  %v8813_v61 = vld [vmem:[#allocation2 + $0x11f8] sm:$0xff] }
 0x20b   :  { %5687 = vmatpush.bf16.msrb.mxu3 %v8744_v62  ;;  %v1327_v62 = vld [vmem:[#allocation1] sm:$0xff] }
 0x20c   :  { %5649 = vmatpush.bf16.msrb.mxu0 %v8719_v63  ;;  %v1329_v63 = vld [vmem:[#allocation1 + $0x12] sm:$0xff] }
 0x20d   :  { %5662 = vmatpush.bf16.msrb.mxu1 %v8727_v0  ;;  %v1328_v0 = vld [vmem:[#allocation1 + $0x9] sm:$0xff] }
 0x20e   :  { %5675 = vmatpush.bf16.msrb.mxu2 %v8735_v1  ;;  %v1330_v1 = vld [vmem:[#allocation1 + $0x1b] sm:$0xff] }
 0x20f   :  { %5688 = vmatpush.bf16.msrb.mxu3 %v8743_v2  ;;  %v8788_v2 = vld [vmem:[#allocation2 + $0x1130] sm:$0xff] }
 0x210   :  { %5650 = vmatpush.bf16.msrb.mxu0 %v8718_v10  ;;  %v5444_v26 = vpop.f32.mrf.mxu0 }
 0x211   :  { %5663 = vmatpush.bf16.msrb.mxu1 %v8726_v11  ;;  %v5445_v27 = vadd.f32 %v5444_v26, %v9047_v57  ;;  %v5457_v30 = vpop.f32.mrf.mxu1  ;;  %v8774_v57 = vld [vmem:[#allocation2 + $0x10c0] sm:$0xff] }
 0x212   :  { %5676 = vmatpush.bf16.msrb.mxu2 %v8734_v12  ;;  %v8786_v12 = vld [vmem:[#allocation2 + $0x1120] sm:$0xff] }
 0x213   :  { %5689 = vmatpush.bf16.msrb.mxu3 %v8742_v13  ;;  %5651 = vmatmul.bf16.vlgmr.msrb.gmra.mxu0 %v1321_v3  ;;  %v5458_v33 = vadd.f32 %v5457_v30, %v5445_v27  ;;  %v8796_v3 = vld [vmem:[#allocation2 + $0x1170] sm:$0xff]  ;;  %v8794_v13 = vld [vmem:[#allocation2 + $0x1160] sm:$0xff] }
 0x214   :  { %5695 = vmatpush.bf16.msra.mxu0 %v8757_v14  ;;  %5664 = vmatmul.bf16.vlgmr.msrb.gmra.mxu1 %v1322_v6  ;;  %v8787_v6 = vld [vmem:[#allocation2 + $0x1128] sm:$0xff]  ;;  %v8784_v27 = vld [vmem:[#allocation2 + $0x1110] sm:$0xff] }
 0x215   :  { %5708 = vmatpush.bf16.msra.mxu1 %v8765_v15  ;;  %5677 = vmatmul.bf16.vlgmr.msrb.gmra.mxu2 %v1323_v4  ;;  %v8804_v4 = vld [vmem:[#allocation2 + $0x11b0] sm:$0xff]  ;;  %v8802_v15 = vld [vmem:[#allocation2 + $0x11a0] sm:$0xff] }
 0x216   :  { %5721 = vmatpush.bf16.msra.mxu2 %v8773_v16  ;;  %5690 = vmatmul.bf16.vlgmr.msrb.gmra.mxu3 %v1324_v7  ;;  %v8795_v7 = vld [vmem:[#allocation2 + $0x1168] sm:$0xff]  ;;  %v8810_v16 = vld [vmem:[#allocation2 + $0x11e0] sm:$0xff]  ;;  %v8800_v30 = vld [vmem:[#allocation2 + $0x1190] sm:$0xff] }
 0x217   :  { %5734 = vmatpush.bf16.msra.mxu3 %v8781_v17 }
 0x218   :  { %5696 = vmatpush.bf16.msra.mxu0 %v8756_v18  ;;  %v5470_v38 = vpop.f32.mrf.mxu2  ;;  %v5446_v41 = vpop.f32.mrf.mxu0  ;;  %v8785_v18 = vld [vmem:[#allocation2 + $0x1118] sm:$0xff] }
 0x219   :  { %5709 = vmatpush.bf16.msra.mxu1 %v8764_v19  ;;  %v5471_v39 = vadd.f32 %v5470_v38, %v5458_v33  ;;  %v5483_v40 = vpop.f32.mrf.mxu3  ;;  %v5459_v45 = vpop.f32.mrf.mxu1  ;;  %v8793_v19 = vld [vmem:[#allocation2 + $0x1158] sm:$0xff]  ;;  %v8791_v33 = vld [vmem:[#allocation2 + $0x1148] sm:$0xff]  ;;  %v8782_v38 = vld [vmem:[#allocation2 + $0x1100] sm:$0xff] }
 0x21a   :  { %5722 = vmatpush.bf16.msra.mxu2 %v8772_v20  ;;  %v8801_v20 = vld [vmem:[#allocation2 + $0x1198] sm:$0xff]  ;;  %v8806_v41 = vld [vmem:[#allocation2 + $0x11c0] sm:$0xff] }
 0x21b   :  { %5735 = vmatpush.bf16.msra.mxu3 %v8780_v21  ;;  %v5484_v42 = vadd.f32 %v5483_v40, %v5471_v39  ;;  %v8809_v21 = vld [vmem:[#allocation2 + $0x11d8] sm:$0xff]  ;;  %v8790_v39 = vld [vmem:[#allocation2 + $0x1140] sm:$0xff] }
 0x21c   :  { %5697 = vmatpush.bf16.msra.mxu0 %v8755_v22  ;;  %v8798_v40 = vld [vmem:[#allocation2 + $0x1180] sm:$0xff]  ;;  %v1334_v45 = vld [vmem:[#allocation1 + $0x3f] sm:$0xff] }
 0x21d   :  { %5710 = vmatpush.bf16.msra.mxu1 %v8763_v23 }
 0x21e   :  { %5723 = vmatpush.bf16.msra.mxu2 %v8771_v24 }
 0x21f   :  { %5736 = vmatpush.bf16.msra.mxu3 %v8779_v25 }
 0x220   :  { %5698 = vmatpush.bf16.msra.mxu0 %v8754_v28  ;;  %v5472_v52 = vpop.f32.mrf.mxu2  ;;  %v8792_v28 = vld [vmem:[#allocation2 + $0x1150] sm:$0xff] }
 0x221   :  { %5711 = vmatpush.bf16.msra.mxu1 %v8762_v29  ;;  %v5485_v53 = vpop.f32.mrf.mxu3 }
 0x222   :  { %5724 = vmatpush.bf16.msra.mxu2 %v8770_v31  ;;  %v8808_v31 = vld [vmem:[#allocation2 + $0x11d0] sm:$0xff] }
 0x223   :  { %5737 = vmatpush.bf16.msra.mxu3 %v8778_v32  ;;  %v8783_v32 = vld [vmem:[#allocation2 + $0x1108] sm:$0xff] }
 0x224   :  { %5699 = vmatpush.bf16.msra.mxu0 %v8753_v34  ;;  %v8799_v34 = vld [vmem:[#allocation2 + $0x1188] sm:$0xff] }
 0x225   :  { %5712 = vmatpush.bf16.msra.mxu1 %v8761_v35  ;;  %v8807_v35 = vld [vmem:[#allocation2 + $0x11c8] sm:$0xff] }
 0x226   :  { %5725 = vmatpush.bf16.msra.mxu2 %v8769_v36 }
 0x227   :  { %5738 = vmatpush.bf16.msra.mxu3 %v8777_v37 }
 0x228   :  { %5700 = vmatpush.bf16.msra.mxu0 %v8752_v43  ;;  %v1332_v43 = vld [vmem:[#allocation1 + $0x2d] sm:$0xff] }
 0x229   :  { %5713 = vmatpush.bf16.msra.mxu1 %v8760_v44  ;;  %v1333_v44 = vld [vmem:[#allocation1 + $0x36] sm:$0xff] }
 0x22a   :  { %5726 = vmatpush.bf16.msra.mxu2 %v8768_v46 }
 0x22b   :  { %5739 = vmatpush.bf16.msra.mxu3 %v8776_v47 }
 0x22c   :  { %5701 = vmatpush.bf16.msra.mxu0 %v8751_v48 }
 0x22d   :  { %5714 = vmatpush.bf16.msra.mxu1 %v8759_v49 }
 0x22e   :  { %5727 = vmatpush.bf16.msra.mxu2 %v8767_v50 }
 0x22f   :  { %5740 = vmatpush.bf16.msra.mxu3 %v8775_v51 }
 0x230   :  { %5702 = vmatpush.bf16.msra.mxu0 %v8750_v54  ;;  %v5496_v10 = vpop.f32.mrf.mxu0 }
 0x231   :  { %5715 = vmatpush.bf16.msra.mxu1 %v8758_v55  ;;  %v5497_v11 = vadd.f32 %v5496_v10, %v5484_v42  ;;  %v5509_v14 = vpop.f32.mrf.mxu1  ;;  %v1331_v42 = vld [vmem:[#allocation1 + $0x24] sm:$0xff] }
 0x232   :  { %5728 = vmatpush.bf16.msra.mxu2 %v8766_v56  ;;  %v8821_v10 = vld [vmem:[#allocation7 + $0x38] sm:$0xff] }
 0x233   :  { %5741 = vmatpush.bf16.msra.mxu3 %v8774_v57  ;;  %5703 = vmatmul.bf16.vlgmr.msra.gmra.mxu0 %v1327_v62  ;;  %v5510_v17 = vadd.f32 %v5509_v14, %v5497_v11  ;;  %v8819_v14 = vld [vmem:[#allocation7 + $0x28] sm:$0xff] }
 0x234   :  { %5747 = vmatpush.bf16.msrb.mxu0 %v8789_v58  ;;  %5716 = vmatmul.bf16.vlgmr.msra.gmra.mxu1 %v1328_v0 }
 0x235   :  { %5760 = vmatpush.bf16.msrb.mxu1 %v8797_v59  ;;  %5729 = vmatmul.bf16.vlgmr.msra.gmra.mxu2 %v1329_v63 }
 0x236   :  { %5773 = vmatpush.bf16.msrb.mxu2 %v8805_v60  ;;  %5742 = vmatmul.bf16.vlgmr.msra.gmra.mxu3 %v1330_v1 }
 0x237   :  { %5786 = vmatpush.bf16.msrb.mxu3 %v8813_v61 }
 0x238   :  { %5748 = vmatpush.bf16.msrb.mxu0 %v8788_v2  ;;  %v5522_v22 = vpop.f32.mrf.mxu2  ;;  %v5498_v25 = vpop.f32.mrf.mxu0 }
 0x239   :  { %5761 = vmatpush.bf16.msrb.mxu1 %v8796_v3  ;;  %v5523_v23 = vadd.f32 %v5522_v22, %v5510_v17  ;;  %v5535_v24 = vpop.f32.mrf.mxu3  ;;  %v5511_v29 = vpop.f32.mrf.mxu1  ;;  %v8818_v17 = vld [vmem:[#allocation7 + $0x20] sm:$0xff]  ;;  %v8815_v22 = vld [vmem:[#allocation7 + $0x8] sm:$0xff] }
 0x23a   :  { %5774 = vmatpush.bf16.msrb.mxu2 %v8804_v4 }
 0x23b   :  { %5787 = vmatpush.bf16.msrb.mxu3 %v8812_v5  ;;  %v5536_v26 = vadd.f32 %v5535_v24, %v5523_v23 }
 0x23c   :  { %5749 = vmatpush.bf16.msrb.mxu0 %v8787_v6 }
 0x23d   :  { %5762 = vmatpush.bf16.msrb.mxu1 %v8795_v7 }
 0x23e   :  { %5775 = vmatpush.bf16.msrb.mxu2 %v8803_v8 }
 0x23f   :  { %5788 = vmatpush.bf16.msrb.mxu3 %v8811_v9 }
 0x240   :  { %5750 = vmatpush.bf16.msrb.mxu0 %v8786_v12  ;;  %v5524_v36 = vpop.f32.mrf.mxu2 }
 0x241   :  { %5763 = vmatpush.bf16.msrb.mxu1 %v8794_v13  ;;  %v5537_v37 = vpop.f32.mrf.mxu3  ;;  %v8820_v13 = vld [vmem:[#allocation7 + $0x30] sm:$0xff] }
 0x242   :  { %5776 = vmatpush.bf16.msrb.mxu2 %v8802_v15 }
 0x243   :  { %5789 = vmatpush.bf16.msrb.mxu3 %v8810_v16 }
 0x244   :  { %5751 = vmatpush.bf16.msrb.mxu0 %v8785_v18  ;;  %v8817_v18 = vld [vmem:[#allocation7 + $0x18] sm:$0xff] }
 0x245   :  { %5764 = vmatpush.bf16.msrb.mxu1 %v8793_v19 }
 0x246   :  { %5777 = vmatpush.bf16.msrb.mxu2 %v8801_v20  ;;  %v8816_v20 = vld [vmem:[#allocation7 + $0x10] sm:$0xff] }
 0x247   :  { %5790 = vmatpush.bf16.msrb.mxu3 %v8809_v21 }
 0x248   :  { %5752 = vmatpush.bf16.msrb.mxu0 %v8784_v27  ;;  %v8814_v27 = vld [vmem:[#allocation7] sm:$0xff] }
 0x249   :  { %5765 = vmatpush.bf16.msrb.mxu1 %v8792_v28 }
 0x24a   :  { %5778 = vmatpush.bf16.msrb.mxu2 %v8800_v30 }
 0x24b   :  { %5791 = vmatpush.bf16.msrb.mxu3 %v8808_v31 }
 0x24c   :  { %5753 = vmatpush.bf16.msrb.mxu0 %v8783_v32 }
 0x24d   :  { %5766 = vmatpush.bf16.msrb.mxu1 %v8791_v33 }
 0x24e   :  { %5779 = vmatpush.bf16.msrb.mxu2 %v8799_v34 }
 0x24f   :  { %5792 = vmatpush.bf16.msrb.mxu3 %v8807_v35 }
 0x250   :  { %5754 = vmatpush.bf16.msrb.mxu0 %v8782_v38  ;;  %v5548_v46 = vpop.f32.mrf.mxu0 }
 0x251   :  { %5767 = vmatpush.bf16.msrb.mxu1 %v8790_v39  ;;  %v5549_v47 = vadd.f32 %v5548_v46, %v5536_v26  ;;  %v5561_v48 = vpop.f32.mrf.mxu1 }
 0x252   :  { %5780 = vmatpush.bf16.msrb.mxu2 %v8798_v40 }
 0x253   :  { %5793 = vmatpush.bf16.msrb.mxu3 %v8806_v41  ;;  %5755 = vmatmul.bf16.vlgmr.msrb.gmra.mxu0 %v1331_v42  ;;  %v5562_v49 = vadd.f32 %v5561_v48, %v5549_v47 }
 0x254   :  { %5768 = vmatmul.bf16.vlgmr.msrb.gmra.mxu1 %v1332_v43  ;;  %5869 = vmatpush.bf16.msra.mxu0 %v8821_v10 }
 0x255   :  { %5781 = vmatmul.bf16.vlgmr.msrb.gmra.mxu2 %v1333_v44 }
 0x256   :  { %5794 = vmatmul.bf16.vlgmr.msrb.gmra.mxu3 %v1334_v45 }
 0x258   :  { %v5574_v50 = vpop.f32.mrf.mxu2  ;;  %v5550_v53 = vpop.f32.mrf.mxu0  ;;  %5870 = vmatpush.bf16.msra.mxu0 %v8820_v13 }
 0x259   :  { %v5575_v51 = vadd.f32 %v5574_v50, %v5562_v49  ;;  %v5587_v52 = vpop.f32.mrf.mxu3  ;;  %v5563_v55 = vpop.f32.mrf.mxu1 }
 0x25b   :  { %v5588_v54 = vadd.f32 %v5587_v52, %v5575_v51  ;;  %v8830_v52 = vld [vmem:[#allocation8] ss:$0 sm:$0xff] }
 0x25c   :  { %5871 = vmatpush.bf16.msra.mxu0 %v8819_v14 }
 0x260   :  { %v5576_v56 = vpop.f32.mrf.mxu2  ;;  %5872 = vmatpush.bf16.msra.mxu0 %v8818_v17 }
 0x261   :  { %v5589_v57 = vpop.f32.mrf.mxu3 }
 0x264   :  { %5873 = vmatpush.bf16.msra.mxu0 %v8817_v18 }
 0x268   :  { %5874 = vmatpush.bf16.msra.mxu0 %v8816_v20 }
 0x26c   :  { %5875 = vmatpush.bf16.msra.mxu0 %v8815_v22 }
 0x270   :  { %v5600_v58 = vpop.f32.mrf.mxu0  ;;  %5876 = vmatpush.bf16.msra.mxu0 %v8814_v27 }
 0x271   :  { %v5601_v59 = vadd.f32 %v5600_v58, %v5588_v54  ;;  %v5613_v60 = vpop.f32.mrf.mxu1 }
 0x273   :  { %v5614_v61 = vadd.f32 %v5613_v60, %v5601_v59 }
 0x278   :  { %v5626_v62 = vpop.f32.mrf.mxu2  ;;  %v5602_v1 = vpop.f32.mrf.mxu0 }
 0x279   :  { %v5627_v63 = vadd.f32 %v5626_v62, %v5614_v61  ;;  %v5639_v0 = vpop.f32.mrf.mxu3  ;;  %v5615_v3 = vpop.f32.mrf.mxu1 }
 0x27b   :  { %v5640_v2 = vadd.f32 %v5639_v0, %v5627_v63 }
 0x280   :  { %v5628_v4 = vpop.f32.mrf.mxu2 }
 0x281   :  { %v5641_v5 = vpop.f32.mrf.mxu3 }
 0x290   :  { %v5652_v6 = vpop.f32.mrf.mxu0 }
 0x291   :  { %v5665_v7 = vpop.f32.mrf.mxu1  ;;  %v5653_v24 = vadd.f32 %v5652_v6, %v5640_v2 }
 0x293   :  { %v5666_v29 = vadd.f32 %v5665_v7, %v5653_v24 }
 0x298   :  { %v5678_v8 = vpop.f32.mrf.mxu2  ;;  %v5654_v11 = vpop.f32.mrf.mxu0 }
 0x299   :  { %v5691_v9 = vpop.f32.mrf.mxu3  ;;  %v5667_v12 = vpop.f32.mrf.mxu1  ;;  %v5679_v30 = vadd.f32 %v5678_v8, %v5666_v29 }
 0x29b   :  { %v5692_v33 = vadd.f32 %v5691_v9, %v5679_v30 }
 0x2a0   :  { %v5680_v15 = vpop.f32.mrf.mxu2 }
 0x2a1   :  { %v5693_v16 = vpop.f32.mrf.mxu3 }
 0x2b0   :  { %v5704_v19 = vpop.f32.mrf.mxu0 }
 0x2b1   :  { %v5717_v21 = vpop.f32.mrf.mxu1  ;;  %v5705_v34 = vadd.f32 %v5704_v19, %v5692_v33 }
 0x2b3   :  { %v5718_v35 = vadd.f32 %v5717_v21, %v5705_v34 }
 0x2b8   :  { %v5730_v23 = vpop.f32.mrf.mxu2  ;;  %v5706_v26 = vpop.f32.mrf.mxu0 }
 0x2b9   :  { %v5743_v25 = vpop.f32.mrf.mxu3  ;;  %v5719_v28 = vpop.f32.mrf.mxu1  ;;  %v5731_v36 = vadd.f32 %v5730_v23, %v5718_v35 }
 0x2bb   :  { %v5744_v37 = vadd.f32 %v5743_v25, %v5731_v36 }
 0x2c0   :  { %v5732_v31 = vpop.f32.mrf.mxu2 }
 0x2c1   :  { %v5745_v32 = vpop.f32.mrf.mxu3 }
 0x2d0   :  { %v5756_v38 = vpop.f32.mrf.mxu0 }
 0x2d1   :  { %v5769_v39 = vpop.f32.mrf.mxu1  ;;  %v5757_v40 = vadd.f32 %v5756_v38, %v5744_v37 }
 0x2d3   :  { %v5770_v41 = vadd.f32 %v5769_v39, %v5757_v40 }
 0x2d8   :  { %v5782_v42 = vpop.f32.mrf.mxu2  ;;  %v5758_v45 = vpop.f32.mrf.mxu0 }
 0x2d9   :  { %v5795_v43 = vpop.f32.mrf.mxu3  ;;  %v5783_v44 = vadd.f32 %v5782_v42, %v5770_v41  ;;  %v5771_v46 = vpop.f32.mrf.mxu1 }
 0x2db   :  { %v5796_v47 = vadd.f32 %v5795_v43, %v5783_v44 }
 0x2dd   :  { %v5799_v48 = vmax.f32 %v5796_v47, 0.0 }
 0x2df   :  { %v5800_v49 = vpack.c.bf16 %v5799_v48, %v5799_v48 }
 0x2e0   :  { %v5784_v50 = vpop.f32.mrf.mxu2 }
 0x2e1   :  { %v5797_v51 = vpop.f32.mrf.mxu3  ;;  %5877 = vmatmul.bf16.vlgmr.msra.gmra.mxu0 %v5800_v49 }
 0x35e   :  { %v5878_v53 = vpop.f32.mrf.mxu0 }
 0x35f   :  { %v5879_v54 = vadd.f32 %v8830_v52, %v5878_v53 }
 0x361   :  { %5882 = vst [vmem:[#allocation10] sm:$0x3] %v5879_v54 }
 0x362   :  { %5893 = dma.vmem_to_hbm [thread:$0]  %s5889_s29, 32, %s5891_s2, [#allocation4]  }
 0x366   :  { %v5880_v55 = vpop.f32.mrf.mxu0 }
 0x367   :  { %8957 = dma.done.wait [#allocation4], 32  }
 0x368   :  { %8958 = vsyncadd [#allocation4], 4294967264 }
 0x369   :  { %5898 = vsyncpa [#allocation3], 1 }
 0x36a   :  { %5899 = vsyncpa [#allocation6], 1 }
 0x36b   :  { %5900 = vsyncpa [#allocation9], 1 }
 0x36c   :  { %5901 = vsyncpa [#allocation4], 1 }

</bundles_post_ra>
